<compile_context>
chip_gen: v5e
topology: v5e:2x2
jax: 0.10.0
libtpu: 0.0.40
codegen_flags: <defaults>
</compile_context>

<pallas_src>
import functools
import math

import jax
import jax.numpy as jnp
from jax import lax
from jax.experimental import pallas as pl
from jax.experimental.pallas import tpu as pltpu


# bf16 MXU operands (f32 accumulation): f32xf32 matmuls are decomposed into
# multiple bf16 MXU passes on v5e/v6e/v7x alike, so bf16 operands are the fast
# path on every generation.  Set to None for exact-f32 parity with PyTorch.
MXU_INPUT_DTYPE = jnp.bfloat16
_COMPUTE_DT = MXU_INPUT_DTYPE if MXU_INPUT_DTYPE is not None else jnp.float32


def _vmem_limit_bytes():
    # Generation-aware scoped-VMEM budget: ~half of physical VMEM, clamped to
    # [32 MiB, 96 MiB].  v5e/v6e (128 MiB phys) -> 64 MiB; v7x (64 MiB) -> 32 MiB.
    try:
        cap = pltpu.get_tpu_info().vmem_capacity_bytes
    except Exception:
        cap = None
    if not cap:
        return 32 * 1024 * 1024
    return int(min(max(cap // 2, 32 * 1024 * 1024), 96 * 1024 * 1024))


_VMEM_LIMIT = _vmem_limit_bytes()


def _cp(semantics):
    return pltpu.CompilerParams(dimension_semantics=semantics,
                                vmem_limit_bytes=_VMEM_LIMIT)


def _maybe_lowp(x):
    return x.astype(MXU_INPUT_DTYPE) if MXU_INPUT_DTYPE is not None else x


def _pick_row_tile(m):
    """Largest row tile dividing m, preferring >=4 (then >=2) grid steps."""
    cands = (512, 256, 128, 64, 32, 16, 8)
    for min_steps in (4, 2):
        for t in cands:
            if m % t == 0 and m // t >= min_steps:
                return t
    for t in cands:
        if m % t == 0:
            return t
    return m


# ---------------------------------------------------------------------------
# Exact GELU (erf) helpers, usable inside kernels
# ---------------------------------------------------------------------------
_SQRT_HALF = 0.7071067811865476


def _erf(x):
    # TODO(synk): lax.erf has no guaranteed Mosaic lowering; use Abramowitz&Stegun
    # 7.1.26 (max abs err ~1.5e-7, i.e. f32-exact for GELU purposes).
    p = 0.3275911
    a1, a2, a3, a4, a5 = (0.254829592, -0.284496736, 1.421413741,
                          -1.453152027, 1.061405429)
    ax = jnp.abs(x)
    t = 1.0 / (1.0 + p * ax)
    poly = ((((a5 * t + a4) * t + a3) * t + a2) * t + a1) * t
    y = 1.0 - poly * jnp.exp(-ax * ax)
    return jnp.where(x < 0.0, -y, y)


def _gelu_exact(x):
    return 0.5 * x * (1.0 + _erf(x * _SQRT_HALF))


# ---------------------------------------------------------------------------
# Depthwise 3x3 conv + bias + residual, lane-dense (TH, W*C) strips
#   out = x + dwconv3x3(x) + bias      (pad=1, stride=1)
# ---------------------------------------------------------------------------
def _dwconv_kernel(xs_ref, w_ref, b_ref, o_ref, *, TH, W, C):
    WC = W * C
    rows = xs_ref[0, 0]                                   # (TH+2, (W+2)*C)
    acc = jnp.broadcast_to(b_ref[...], (TH, WC))          # conv bias (hoisted)
    for kw in range(3):
        # one lane-shift per kw (3 total instead of 9); when C % 128 == 0 the
        # offsets are lane-aligned and these slices are free VPU-side copies.
        sh = rows[:, kw * C:kw * C + WC]                   # (TH+2, WC)
        if kw == 1:
            acc = acc + sh[1:1 + TH, :]                    # fused residual (+x)
        for kh in range(3):
            tap = w_ref[kh * 3 + kw:kh * 3 + kw + 1, :]    # (1, WC), pre-tiled
            acc = acc + sh[kh:kh + TH, :] * tap
    o_ref[0, 0] = acc


def _pick_strip(h):
    for t in (16, 8, 4, 2):
        if h % t == 0 and h // t >= 2:
            return t
    return h


def dwconv_residual(tok, w, b, H, W):
    """tok: (B, N, C) tokens; returns tok + DWConv3x3(tok) + bias, same shape."""
    B, N, C = tok.shape
    WC = W * C
    TH = _pick_strip(H)
    ns = H // TH
    xp = jnp.pad(tok.reshape(B, H, W, C), ((0, 0), (1, 1), (1, 1), (0, 0)))
    xp = xp.reshape(B, H + 2, (W + 2) * C)                 # lane-dense padded view
    # Overlapping H strips (1-row halo each) -> B*ns grid steps and a bounded
    # (TH, W*C) in-kernel accumulator.
    # TODO(synk): handle the halo in-kernel (masked boundary rows) to avoid this
    #             wrapper-side padded/strided copy of the activation.
    strips = jnp.stack([xp[:, j * TH:j * TH + TH + 2, :] for j in range(ns)],
                       axis=1)                             # (B, ns, TH+2, (W+2)C)
    w_t = jnp.broadcast_to(w[:, :, None, :], (3, 3, W, C)).reshape(9, WC)
    b_t = jnp.tile(b, (W,)).reshape(1, WC)
    kern = functools.partial(_dwconv_kernel, TH=TH, W=W, C=C)
    out = pl.pallas_call(
        kern,
        out_shape=jax.ShapeDtypeStruct((B, ns, TH, WC), jnp.float32),
        grid=(B, ns),
        in_specs=[
            pl.BlockSpec((1, 1, TH + 2, (W + 2) * C), lambda i, j: (i, j, 0, 0)),
            pl.BlockSpec((9, WC), lambda i, j: (0, 0)),
            pl.BlockSpec((1, WC), lambda i, j: (0, 0)),
        ],
        out_specs=pl.BlockSpec((1, 1, TH, WC), lambda i, j: (i, j, 0, 0)),
        compiler_params=_cp(("parallel", "parallel")),
    )(strips, w_t, b_t)
    return out.reshape(B, N, C)


# ---------------------------------------------------------------------------
# Linear: out = [gelu](x) @ W [+ b], tiled over rows, "parallel" grid
# (weights are cast to bf16 once in the wrapper, not per grid step)
# ---------------------------------------------------------------------------
def _linear_kernel(*refs, has_bias, gelu_in):
    x_ref, w_ref = refs[0], refs[1]
    b_ref = refs[2] if has_bias else None
    o_ref = refs[-1]
    x = x_ref[...]
    if gelu_in:
        x = _gelu_exact(x)
    y = jnp.dot(_maybe_lowp(x), w_ref[...], preferred_element_type=jnp.float32)
    if has_bias:
        y = y + b_ref[...]
    o_ref[...] = y


def linear(x2d, w, b=None, *, gelu_in=False):
    M, K = x2d.shape
    _, Cout = w.shape
    tm = _pick_row_tile(M)
    in_specs = [pl.BlockSpec((tm, K), lambda i: (i, 0)),
                pl.BlockSpec((K, Cout), lambda i: (0, 0))]
    args = [x2d, _maybe_lowp(w)]          # weight cast once, outside the kernel
    if b is not None:
        in_specs.append(pl.BlockSpec((1, Cout), lambda i: (0, 0)))
        args.append(b.reshape(1, Cout))
    kern = functools.partial(_linear_kernel, has_bias=b is not None, gelu_in=gelu_in)
    return pl.pallas_call(
        kern,
        out_shape=jax.ShapeDtypeStruct((M, Cout), jnp.float32),
        grid=(M // tm,),
        in_specs=in_specs,
        out_specs=pl.BlockSpec((tm, Cout), lambda i: (i, 0)),
        compiler_params=_cp(("parallel",)),
    )(*args)


# ---------------------------------------------------------------------------
# Fused attention: q/kv projection + softmax attention + output projection in
# one kernel.  grid = (B, q_tiles); the kv projection is computed once per
# batch item (qi == 0) and kept resident in VMEM scratch across q tiles.
# ---------------------------------------------------------------------------
def _attn_kernel(xq_ref, xkv_ref, wq_ref, wkv_ref, wp_ref, bp_ref, o_ref, kv_sc,
                 *, num_heads, scale, C):
    hd = C // num_heads

    @pl.when(pl.program_id(1) == 0)
    def _():
        xk = _maybe_lowp(xkv_ref[0])                               # (N, C)
        kv = jnp.dot(xk, wkv_ref[...], preferred_element_type=jnp.float32)
        kv_sc[...] = kv.astype(kv_sc.dtype)                        # (N, 2C)

    xq = _maybe_lowp(xq_ref[0])                                    # (tq, C)
    q_all = jnp.dot(xq, wq_ref[...],
                    preferred_element_type=jnp.float32) * scale    # (tq, C) f32
    kv = kv_sc[...]                                                # (N, 2C)

    outs = []
    for h in range(num_heads):
        q = _maybe_lowp(q_all[:, h * hd:(h + 1) * hd])             # (tq, hd)
        k = kv[:, h * hd:(h + 1) * hd]                             # (N, hd)
        v = kv[:, C + h * hd:C + (h + 1) * hd]                     # (N, hd)
        # contract on the last dims (no in-kernel k transpose)
        s = lax.dot_general(q, k, (((1,), (1,)), ((), ())),
                            preferred_element_type=jnp.float32)    # (tq, N)
        m = jnp.max(s, axis=-1, keepdims=True)
        p = jnp.exp(s - m)
        denom = jnp.sum(p, axis=-1, keepdims=True)
        pv = jnp.dot(_maybe_lowp(p), v, preferred_element_type=jnp.float32)
        # normalize the small (tq, hd) output, not the (tq, N) matrix
        outs.append(pv * pl.reciprocal(denom, approx=True))
    # single lane-dense (tq, C) slab; one store instead of num_heads partials
    o = jnp.concatenate(outs, axis=-1)                             # (tq, C) f32
    y = jnp.dot(_maybe_lowp(o), wp_ref[...],
                preferred_element_type=jnp.float32) + bp_ref[...]
    o_ref[0] = y


def _pick_q_tile(n):
    for t in (256, 128, 64, 32, 16, 8):
        if n % t == 0 and n // t >= 2:
            return t
    return n


def attention_pvtv2(x, params, num_heads):
    """Attention_PVTV2 with sr_ratio=1, linear=False, no qkv bias (eval mode)."""
    B, N, C = x.shape
    hd = C // num_heads
    scale = hd ** (-0.5)
    tq = _pick_q_tile(N)
    kern = functools.partial(_attn_kernel, num_heads=num_heads, scale=scale, C=C)
    q_w = _maybe_lowp(params["q_w"])
    kv_w = _maybe_lowp(params["kv_w"])
    p_w = _maybe_lowp(params["proj_w"])
    p_b = params["proj_b"].reshape(1, C)
    return pl.pallas_call(
        kern,
        out_shape=jax.ShapeDtypeStruct((B, N, C), jnp.float32),
        grid=(B, N // tq),
        in_specs=[
            pl.BlockSpec((1, tq, C), lambda b, qi: (b, qi, 0)),   # q-tile rows
            pl.BlockSpec((1, N, C), lambda b, qi: (b, 0, 0)),     # full seq (kv)
            pl.BlockSpec((C, C), lambda b, qi: (0, 0)),           # q weight
            pl.BlockSpec((C, 2 * C), lambda b, qi: (0, 0)),       # kv weight
            pl.BlockSpec((C, C), lambda b, qi: (0, 0)),           # proj weight
            pl.BlockSpec((1, C), lambda b, qi: (0, 0)),           # proj bias
        ],
        out_specs=pl.BlockSpec((1, tq, C), lambda b, qi: (b, qi, 0)),
        scratch_shapes=[pltpu.VMEM((N, 2 * C), _COMPUTE_DT)],
        # q-tile axis must stay sequential: kv scratch is filled at qi == 0.
        compiler_params=_cp(("parallel", "arbitrary")),
    )(x, x, q_w, kv_w, p_w, p_b)


# ---------------------------------------------------------------------------
# LayerNorm (channels_last, eps=1e-6) with fused pre-add and post-residual:
#   out = LN(x [+ add]) [+ res]
# ---------------------------------------------------------------------------
def _ln_kernel(*refs, eps, has_add, has_res):
    o_ref = refs[-1]
    idx = 0
    x = refs[idx][...]; idx += 1
    if has_add:
        x = x + refs[idx][...]; idx += 1
    res = None
    if has_res:
        res = refs[idx][...]; idx += 1
    g = refs[idx][...]
    b = refs[idx + 1][...]
    mu = jnp.mean(x, axis=-1, keepdims=True)
    xc = x - mu
    var = jnp.mean(xc * xc, axis=-1, keepdims=True)
    y = xc * lax.rsqrt(var + eps) * g + b
    if has_res:
        y = y + res
    o_ref[...] = y


def layer_norm_fused(x, gamma, beta, add=None, res=None, eps=1e-6):
    B, N, C = x.shape
    M = B * N
    tm = _pick_row_tile(M)
    row_spec = pl.BlockSpec((tm, C), lambda i: (i, 0))
    par_spec = pl.BlockSpec((1, C), lambda i: (0, 0))
    args, specs = [x.reshape(M, C)], [row_spec]
    if add is not None:
        args.append(add.reshape(M, C)); specs.append(row_spec)
    if res is not None:
        args.append(res.reshape(M, C)); specs.append(row_spec)
    args += [gamma.reshape(1, C), beta.reshape(1, C)]
    specs += [par_spec, par_spec]
    kern = functools.partial(_ln_kernel, eps=eps,
                             has_add=add is not None, has_res=res is not None)
    out = pl.pallas_call(
        kern,
        out_shape=jax.ShapeDtypeStruct((M, C), jnp.float32),
        grid=(M // tm,),
        in_specs=specs,
        out_specs=row_spec,
        compiler_params=_cp(("parallel",)),
    )(*args)
    return out.reshape(B, N, C)


# ---------------------------------------------------------------------------
# Block forward (eval mode: DropPath / Dropout are identity)
# ---------------------------------------------------------------------------
def block_forward(params, x, H, W, num_heads):
    B, N, C = x.shape
    g, b = params["ln_g"], params["ln_b"]          # shared LN of the Block

    # out1 = x + DWC(x)                              (conv + bias + residual fused)
    out1 = dwconv_residual(x, params["dwc_w"], params["dwc_b"], H, W)

    # up_out = LN(Attention(out1)) + out1            (LN + residual fused)
    attn = attention_pvtv2(out1, params, num_heads)
    up_out = layer_norm_fused(attn, g, b, res=out1)

    # down_out = DWC(out1) + out1                    (act_layer=False)
    down_out = dwconv_residual(out1, params["dwc_w"], params["dwc_b"], H, W)

    # out2 = LN(up_out + down_out) + out1            (add + LN + residual fused)
    out2 = layer_norm_fused(up_out, g, b, add=down_out, res=out1)

    # MLP: fc1 -> (dwconv + residual) -> GELU -> fc2 (GELU fused into fc2 prologue)
    h = linear(out2.reshape(B * N, C), params["fc1_w"], params["fc1_b"])
    hidden = h.shape[-1]
    h_tok = dwconv_residual(h.reshape(B, N, hidden),
                            params["mlp_dw_w"], params["mlp_dw_b"], H, W)
    mlp = linear(h_tok.reshape(B * N, hidden), params["fc2_w"], params["fc2_b"],
                 gelu_in=True)

    # out = out2 + LN(MLP(out2))                     (LN + residual fused)
    return layer_norm_fused(mlp.reshape(B, N, C), g, b, res=out2)


# ---------------------------------------------------------------------------
# Deterministic parameter construction (synthetic init, shapes from __init__)
# ---------------------------------------------------------------------------
def make_params(key, dim, heads, mlp_ratio):
    hidden = dim * mlp_ratio
    ks = jax.random.split(key, 8)
    n = lambda k, shape, std: std * jax.random.normal(k, shape, jnp.float32)
    conv_std = math.sqrt(2.0 / 9.0)  # fan_out per-channel for depthwise 3x3
    return {
        # shared DWConv(dim) of the Block
        "dwc_w": n(ks[0], (3, 3, dim), conv_std),
        "dwc_b": jnp.zeros((dim,), jnp.float32),
        # Attention (qkv_bias=None -> no bias on q / kv)
        "q_w": n(ks[1], (dim, dim), 0.02),
        "kv_w": n(ks[2], (dim, 2 * dim), 0.02),
        "proj_w": n(ks[3], (dim, dim), 0.02),
        "proj_b": jnp.zeros((dim,), jnp.float32),
        # shared LayerNorm (channels_last), weight=1, bias=0 per _init_weights
        "ln_g": jnp.ones((dim,), jnp.float32),
        "ln_b": jnp.zeros((dim,), jnp.float32),
        # MLP
        "fc1_w": n(ks[4], (dim, hidden), 0.02),
        "fc1_b": jnp.zeros((hidden,), jnp.float32),
        "mlp_dw_w": n(ks[5], (3, 3, hidden), conv_std),
        "mlp_dw_b": jnp.zeros((hidden,), jnp.float32),
        "fc2_w": n(ks[6], (hidden, dim), 0.02),
        "fc2_b": jnp.zeros((dim,), jnp.float32),
    }


if __name__ == "__main__":
    B, dim, heads, mlp_ratio = 2, 32, 8, 4
    H = W = 8
    N = H * W

    root = jax.random.PRNGKey(0)
    kp, kx = jax.random.split(root)
    params = make_params(kp, dim, heads, mlp_ratio)
    x = jax.random.normal(kx, (B, N, dim), jnp.float32)

    fwd = jax.jit(functools.partial(block_forward, H=H, W=W, num_heads=heads))
    out = jax.block_until_ready(fwd(params, x))
    assert out.shape == (B, N, dim) and out.dtype == jnp.float32
    assert bool(jnp.all(jnp.isfinite(out)))
    print("KERNEL_OK")
</pallas_src>

<mosaic_0001>
module attributes {stable_mosaic.version = 11 : i64} {
  func.func @_ln_kernel(%arg0: i32, %arg1: memref<32x32xf32, #tpu.memory_space<vmem>>, %arg2: memref<32x32xf32, #tpu.memory_space<vmem>>, %arg3: memref<1x32xf32, #tpu.memory_space<vmem>>, %arg4: memref<1x32xf32, #tpu.memory_space<vmem>>, %arg5: memref<32x32xf32, #tpu.memory_space<vmem>>) attributes {dimension_semantics = [#tpu.dimension_semantics<parallel>], iteration_bounds = array<i64: 4>, scalar_prefetch = 0 : i64, scratch_operands = 0 : i64, tpu.core_type = #tpu.core_type<tc>, window_params = [{transform_indices = @transform_0, window_bounds = array<i64: 32, 32>}, {transform_indices = @transform_1, window_bounds = array<i64: 32, 32>}, {pipeline_mode = #tpu.pipeline_mode<synchronous>, transform_indices = @transform_2, window_bounds = array<i64: 1, 32>}, {pipeline_mode = #tpu.pipeline_mode<synchronous>, transform_indices = @transform_3, window_bounds = array<i64: 1, 32>}, {transform_indices = @transform_4, window_bounds = array<i64: 32, 32>}]} {
    %c0 = arith.constant 0 : index
    %c0_0 = arith.constant 0 : index
    %0 = vector.load %arg1[%c0, %c0_0] : memref<32x32xf32, #tpu.memory_space<vmem>>, vector<32x32xf32>
    %c0_1 = arith.constant 0 : index
    %c0_2 = arith.constant 0 : index
    %1 = vector.load %arg2[%c0_1, %c0_2] : memref<32x32xf32, #tpu.memory_space<vmem>>, vector<32x32xf32>
    %c0_3 = arith.constant 0 : index
    %c0_4 = arith.constant 0 : index
    %2 = vector.load %arg3[%c0_3, %c0_4] : memref<1x32xf32, #tpu.memory_space<vmem>>, vector<1x32xf32>
    %c0_5 = arith.constant 0 : index
    %c0_6 = arith.constant 0 : index
    %3 = vector.load %arg4[%c0_5, %c0_6] : memref<1x32xf32, #tpu.memory_space<vmem>>, vector<1x32xf32>
    %cst = arith.constant dense<0.000000e+00> : vector<32xf32>
    %4 = vector.multi_reduction <add>, %0, %cst [1] : vector<32x32xf32> to vector<32xf32>
    %5 = vector.shape_cast %4 : vector<32xf32> to vector<32x1xf32>
    %cst_7 = arith.constant 3.200000e+01 : f32
    %6 = vector.broadcast %cst_7 : f32 to vector<32x1xf32>
    %7 = arith.divf %5, %6 : vector<32x1xf32>
    %8 = vector.broadcast %7 : vector<32x1xf32> to vector<32x32xf32>
    %9 = arith.subf %0, %8 : vector<32x32xf32>
    %10 = arith.mulf %9, %9 : vector<32x32xf32>
    %cst_8 = arith.constant dense<0.000000e+00> : vector<32xf32>
    %11 = vector.multi_reduction <add>, %10, %cst_8 [1] : vector<32x32xf32> to vector<32xf32>
    %12 = vector.shape_cast %11 : vector<32xf32> to vector<32x1xf32>
    %cst_9 = arith.constant 3.200000e+01 : f32
    %13 = vector.broadcast %cst_9 : f32 to vector<32x1xf32>
    %14 = arith.divf %12, %13 : vector<32x1xf32>
    %cst_10 = arith.constant 9.99999997E-7 : f32
    %15 = vector.broadcast %cst_10 : f32 to vector<32x1xf32>
    %16 = arith.addf %14, %15 : vector<32x1xf32>
    %17 = math.rsqrt %16 : vector<32x1xf32>
    %18 = vector.broadcast %17 : vector<32x1xf32> to vector<32x32xf32>
    %19 = arith.mulf %9, %18 : vector<32x32xf32>
    %20 = vector.broadcast %2 : vector<1x32xf32> to vector<32x32xf32>
    %21 = arith.mulf %19, %20 : vector<32x32xf32>
    %22 = vector.broadcast %3 : vector<1x32xf32> to vector<32x32xf32>
    %23 = arith.addf %21, %22 : vector<32x32xf32>
    %24 = arith.addf %23, %1 : vector<32x32xf32>
    %c0_11 = arith.constant 0 : index
    %c0_12 = arith.constant 0 : index
    %25 = vector.load %arg5[%c0_11, %c0_12] : memref<32x32xf32, #tpu.memory_space<vmem>>, vector<32x32xf32>
    tpu.vector_store %arg5[%c0_11, %c0_12], %24 {strides = array<i32>} : memref<32x32xf32, #tpu.memory_space<vmem>>, vector<32x32xf32>,
    return
  }
  func.func @transform_0(%arg0: i32) -> (i32, i32) {
    %c0_i32 = arith.constant 0 : i32
    %c0_i32_0 = arith.constant 0 : i32
    return %arg0, %c0_i32 : i32, i32
  }
  func.func @transform_1(%arg0: i32) -> (i32, i32) {
    %c0_i32 = arith.constant 0 : i32
    %c0_i32_0 = arith.constant 0 : i32
    return %arg0, %c0_i32 : i32, i32
  }
  func.func @transform_2(%arg0: i32) -> (i32, i32) {
    %c0_i32 = arith.constant 0 : i32
    %c0_i32_0 = arith.constant 0 : i32
    %c0_i32_1 = arith.constant 0 : i32
    return %c0_i32, %c0_i32_0 : i32, i32
  }
  func.func @transform_3(%arg0: i32) -> (i32, i32) {
    %c0_i32 = arith.constant 0 : i32
    %c0_i32_0 = arith.constant 0 : i32
    %c0_i32_1 = arith.constant 0 : i32
    return %c0_i32, %c0_i32_0 : i32, i32
  }
  func.func @transform_4(%arg0: i32) -> (i32, i32) {
    %c0_i32 = arith.constant 0 : i32
    %c0_i32_0 = arith.constant 0 : i32
    return %arg0, %c0_i32 : i32, i32
  }
}

module attributes {stable_mosaic.version = 11 : i64} {
  func.func @_dwconv_kernel(%arg0: i32, %arg1: i32, %arg2: memref<1x1x6x320xf32, #tpu.memory_space<vmem>>, %arg3: memref<9x256xf32, #tpu.memory_space<vmem>>, %arg4: memref<1x256xf32, #tpu.memory_space<vmem>>, %arg5: memref<1x1x4x256xf32, #tpu.memory_space<vmem>>) attributes {dimension_semantics = [#tpu.dimension_semantics<parallel>, #tpu.dimension_semantics<parallel>], iteration_bounds = array<i64: 2, 2>, scalar_prefetch = 0 : i64, scratch_operands = 0 : i64, tpu.core_type = #tpu.core_type<tc>, window_params = [{transform_indices = @transform_0, window_bounds = array<i64: 1, 1, 6, 320>}, {pipeline_mode = #tpu.pipeline_mode<synchronous>, transform_indices = @transform_1, window_bounds = array<i64: 9, 256>}, {pipeline_mode = #tpu.pipeline_mode<synchronous>, transform_indices = @transform_2, window_bounds = array<i64: 1, 256>}, {transform_indices = @transform_3, window_bounds = array<i64: 1, 1, 4, 256>}]} {
    %c0 = arith.constant 0 : index
    %c0_0 = arith.constant 0 : index
    %c0_1 = arith.constant 0 : index
    %c0_2 = arith.constant 0 : index
    %0 = vector.load %arg2[%c0, %c0_0, %c0_1, %c0_2] : memref<1x1x6x320xf32, #tpu.memory_space<vmem>>, vector<1x1x6x320xf32>
    %1 = vector.shape_cast %0 : vector<1x1x6x320xf32> to vector<6x320xf32>
    %c0_3 = arith.constant 0 : index
    %c0_4 = arith.constant 0 : index
    %2 = vector.load %arg4[%c0_3, %c0_4] : memref<1x256xf32, #tpu.memory_space<vmem>>, vector<1x256xf32>
    %3 = vector.shape_cast %2 : vector<1x256xf32> to vector<1x256xf32>
    %4 = vector.broadcast %3 : vector<1x256xf32> to vector<4x256xf32>
    %5 = vector.extract_strided_slice %1 {offsets = [0, 0], sizes = [6, 256], strides = [1, 1]} : vector<6x320xf32> to vector<6x256xf32>
    %c0_5 = arith.constant 0 : index
    %c0_6 = arith.constant 0 : index
    %6 = vector.load %arg3[%c0_5, %c0_6] : memref<9x256xf32, #tpu.memory_space<vmem>>, vector<1x256xf32>
    %7 = vector.extract_strided_slice %5 {offsets = [0, 0], sizes = [4, 256], strides = [1, 1]} : vector<6x256xf32> to vector<4x256xf32>
    %8 = vector.broadcast %6 : vector<1x256xf32> to vector<4x256xf32>
    %9 = arith.mulf %7, %8 : vector<4x256xf32>
    %10 = arith.addf %4, %9 : vector<4x256xf32>
    %c3 = arith.constant 3 : index
    %c0_7 = arith.constant 0 : index
    %11 = vector.load %arg3[%c3, %c0_7] : memref<9x256xf32, #tpu.memory_space<vmem>>, vector<1x256xf32>
    %12 = vector.extract_strided_slice %5 {offsets = [1, 0], sizes = [4, 256], strides = [1, 1]} : vector<6x256xf32> to vector<4x256xf32>
    %13 = vector.broadcast %11 : vector<1x256xf32> to vector<4x256xf32>
    %14 = arith.mulf %12, %13 : vector<4x256xf32>
    %15 = arith.addf %10, %14 : vector<4x256xf32>
    %c6 = arith.constant 6 : index
    %c0_8 = arith.constant 0 : index
    %16 = vector.load %arg3[%c6, %c0_8] : memref<9x256xf32, #tpu.memory_space<vmem>>, vector<1x256xf32>
    %17 = vector.extract_strided_slice %5 {offsets = [2, 0], sizes = [4, 256], strides = [1, 1]} : vector<6x256xf32> to vector<4x256xf32>
    %18 = vector.broadcast %16 : vector<1x256xf32> to vector<4x256xf32>
    %19 = arith.mulf %17, %18 : vector<4x256xf32>
    %20 = arith.addf %15, %19 : vector<4x256xf32>
    %21 = vector.extract_strided_slice %1 {offsets = [0, 32], sizes = [6, 256], strides = [1, 1]} : vector<6x320xf32> to vector<6x256xf32>
    %22 = vector.extract_strided_slice %21 {offsets = [1, 0], sizes = [4, 256], strides = [1, 1]} : vector<6x256xf32> to vector<4x256xf32>
    %23 = arith.addf %20, %22 : vector<4x256xf32>
    %c1 = arith.constant 1 : index
    %c0_9 = arith.constant 0 : index
    %24 = vector.load %arg3[%c1, %c0_9] : memref<9x256xf32, #tpu.memory_space<vmem>>, vector<1x256xf32>
    %25 = vector.extract_strided_slice %21 {offsets = [0, 0], sizes = [4, 256], strides = [1, 1]} : vector<6x256xf32> to vector<4x256xf32>
    %26 = vector.broadcast %24 : vector<1x256xf32> to vector<4x256xf32>
    %27 = arith.mulf %25, %26 : vector<4x256xf32>
    %28 = arith.addf %23, %27 : vector<4x256xf32>
    %c4 = arith.constant 4 : index
    %c0_10 = arith.constant 0 : index
    %29 = vector.load %arg3[%c4, %c0_10] : memref<9x256xf32, #tpu.memory_space<vmem>>, vector<1x256xf32>
    %30 = vector.extract_strided_slice %21 {offsets = [1, 0], sizes = [4, 256], strides = [1, 1]} : vector<6x256xf32> to vector<4x256xf32>
    %31 = vector.broadcast %29 : vector<1x256xf32> to vector<4x256xf32>
    %32 = arith.mulf %30, %31 : vector<4x256xf32>
    %33 = arith.addf %28, %32 : vector<4x256xf32>
    %c7 = arith.constant 7 : index
    %c0_11 = arith.constant 0 : index
    %34 = vector.load %arg3[%c7, %c0_11] : memref<9x256xf32, #tpu.memory_space<vmem>>, vector<1x256xf32>
    %35 = vector.extract_strided_slice %21 {offsets = [2, 0], sizes = [4, 256], strides = [1, 1]} : vector<6x256xf32> to vector<4x256xf32>
    %36 = vector.broadcast %34 : vector<1x256xf32> to vector<4x256xf32>
    %37 = arith.mulf %35, %36 : vector<4x256xf32>
    %38 = arith.addf %33, %37 : vector<4x256xf32>
    %39 = vector.extract_strided_slice %1 {offsets = [0, 64], sizes = [6, 256], strides = [1, 1]} : vector<6x320xf32> to vector<6x256xf32>
    %c2 = arith.constant 2 : index
    %c0_12 = arith.constant 0 : index
    %40 = vector.load %arg3[%c2, %c0_12] : memref<9x256xf32, #tpu.memory_space<vmem>>, vector<1x256xf32>
    %41 = vector.extract_strided_slice %39 {offsets = [0, 0], sizes = [4, 256], strides = [1, 1]} : vector<6x256xf32> to vector<4x256xf32>
    %42 = vector.broadcast %40 : vector<1x256xf32> to vector<4x256xf32>
    %43 = arith.mulf %41, %42 : vector<4x256xf32>
    %44 = arith.addf %38, %43 : vector<4x256xf32>
    %c5 = arith.constant 5 : index
    %c0_13 = arith.constant 0 : index
    %45 = vector.load %arg3[%c5, %c0_13] : memref<9x256xf32, #tpu.memory_space<vmem>>, vector<1x256xf32>
    %46 = vector.extract_strided_slice %39 {offsets = [1, 0], sizes = [4, 256], strides = [1, 1]} : vector<6x256xf32> to vector<4x256xf32>
    %47 = vector.broadcast %45 : vector<1x256xf32> to vector<4x256xf32>
    %48 = arith.mulf %46, %47 : vector<4x256xf32>
    %49 = arith.addf %44, %48 : vector<4x256xf32>
    %c8 = arith.constant 8 : index
    %c0_14 = arith.constant 0 : index
    %50 = vector.load %arg3[%c8, %c0_14] : memref<9x256xf32, #tpu.memory_space<vmem>>, vector<1x256xf32>
    %51 = vector.extract_strided_slice %39 {offsets = [2, 0], sizes = [4, 256], strides = [1, 1]} : vector<6x256xf32> to vector<4x256xf32>
    %52 = vector.broadcast %50 : vector<1x256xf32> to vector<4x256xf32>
    %53 = arith.mulf %51, %52 : vector<4x256xf32>
    %54 = arith.addf %49, %53 : vector<4x256xf32>
    %c0_15 = arith.constant 0 : index
    %c0_16 = arith.constant 0 : index
    %c0_17 = arith.constant 0 : index
    %c0_18 = arith.constant 0 : index
    %55 = vector.load %arg5[%c0_15, %c0_16, %c0_17, %c0_18] : memref<1x1x4x256xf32, #tpu.memory_space<vmem>>, vector<1x1x4x256xf32>
    %56 = vector.shape_cast %55 : vector<1x1x4x256xf32> to vector<4x256xf32>
    %57 = vector.shape_cast %54 : vector<4x256xf32> to vector<1x1x4x256xf32>
    tpu.vector_store %arg5[%c0_15, %c0_16, %c0_17, %c0_18], %57 {strides = array<i32>} : memref<1x1x4x256xf32, #tpu.memory_space<vmem>>, vector<1x1x4x256xf32>,
    return
  }
  func.func @transform_0(%arg0: i32, %arg1: i32) -> (i32, i32, i32, i32) {
    %c0_i32 = arith.constant 0 : i32
    %c0_i32_0 = arith.constant 0 : i32
    %c0_i32_1 = arith.constant 0 : i32
    return %arg0, %arg1, %c0_i32, %c0_i32_0 : i32, i32, i32, i32
  }
  func.func @transform_1(%arg0: i32, %arg1: i32) -> (i32, i32) {
    %c0_i32 = arith.constant 0 : i32
    %c0_i32_0 = arith.constant 0 : i32
    %c0_i32_1 = arith.constant 0 : i32
    return %c0_i32, %c0_i32_0 : i32, i32
  }
  func.func @transform_2(%arg0: i32, %arg1: i32) -> (i32, i32) {
    %c0_i32 = arith.constant 0 : i32
    %c0_i32_0 = arith.constant 0 : i32
    %c0_i32_1 = arith.constant 0 : i32
    return %c0_i32, %c0_i32_0 : i32, i32
  }
  func.func @transform_3(%arg0: i32, %arg1: i32) -> (i32, i32, i32, i32) {
    %c0_i32 = arith.constant 0 : i32
    %c0_i32_0 = arith.constant 0 : i32
    %c0_i32_1 = arith.constant 0 : i32
    return %arg0, %arg1, %c0_i32, %c0_i32_0 : i32, i32, i32, i32
  }
}

module attributes {stable_mosaic.version = 11 : i64} {
  func.func @_attn_kernel(%arg0: i32, %arg1: i32, %arg2: memref<1x32x32xf32, #tpu.memory_space<vmem>>, %arg3: memref<1x64x32xf32, #tpu.memory_space<vmem>>, %arg4: memref<32x32xbf16, #tpu.memory_space<vmem>>, %arg5: memref<32x64xbf16, #tpu.memory_space<vmem>>, %arg6: memref<32x32xbf16, #tpu.memory_space<vmem>>, %arg7: memref<1x32xf32, #tpu.memory_space<vmem>>, %arg8: memref<1x32x32xf32, #tpu.memory_space<vmem>>, %arg9: memref<64x64xbf16, #tpu.memory_space<vmem>>) attributes {dimension_semantics = [#tpu.dimension_semantics<parallel>, #tpu.dimension_semantics<arbitrary>], iteration_bounds = array<i64: 2, 2>, scalar_prefetch = 0 : i64, scratch_operands = 1 : i64, tpu.core_type = #tpu.core_type<tc>, window_params = [{transform_indices = @transform_0, window_bounds = array<i64: 1, 32, 32>}, {transform_indices = @transform_1, window_bounds = array<i64: 1, 64, 32>}, {pipeline_mode = #tpu.pipeline_mode<synchronous>, transform_indices = @transform_2, window_bounds = array<i64: 32, 32>}, {pipeline_mode = #tpu.pipeline_mode<synchronous>, transform_indices = @transform_3, window_bounds = array<i64: 32, 64>}, {pipeline_mode = #tpu.pipeline_mode<synchronous>, transform_indices = @transform_4, window_bounds = array<i64: 32, 32>}, {pipeline_mode = #tpu.pipeline_mode<synchronous>, transform_indices = @transform_5, window_bounds = array<i64: 1, 32>}, {transform_indices = @transform_6, window_bounds = array<i64: 1, 32, 32>}]} {
    %c0_i32 = arith.constant 0 : i32
    %0 = arith.cmpi eq, %arg1, %c0_i32 : i32
    %1 = arith.extui %0 : i1 to i32
    %c0_i32_0 = arith.constant 0 : i32
    %2 = arith.cmpi ne, %1, %c0_i32_0 : i32
    scf.if %2 {
      %c0_48 = arith.constant 0 : index
      %c0_49 = arith.constant 0 : index
      %c0_50 = arith.constant 0 : index
      %157 = vector.load %arg3[%c0_48, %c0_49, %c0_50] : memref<1x64x32xf32, #tpu.memory_space<vmem>>, vector<1x64x32xf32>
      %158 = vector.shape_cast %157 : vector<1x64x32xf32> to vector<64x32xf32>
      %159 = arith.truncf %158 : vector<64x32xf32> to vector<64x32xbf16>
      %c0_51 = arith.constant 0 : index
      %c0_52 = arith.constant 0 : index
      %160 = vector.load %arg5[%c0_51, %c0_52] : memref<32x64xbf16, #tpu.memory_space<vmem>>, vector<32x64xbf16>
      %cst_53 = arith.constant dense<0.000000e+00> : vector<64x64xf32>
      %161 = tpu.matmul %159, %160, %cst_53 {dimension_numbers = #tpu.dot_dimension_numbers<[1], [0], [0], [1], [0, 0, 1, 1], [], []>} : vector<64x32xbf16>, vector<32x64xbf16>, vector<64x64xf32> -> vector<64x64xf32>
      %162 = arith.truncf %161 : vector<64x64xf32> to vector<64x64xbf16>
      %c0_54 = arith.constant 0 : index
      %c0_55 = arith.constant 0 : index
      %163 = vector.load %arg9[%c0_54, %c0_55] : memref<64x64xbf16, #tpu.memory_space<vmem>>, vector<64x64xbf16>
      tpu.vector_store %arg9[%c0_54, %c0_55], %162 {strides = array<i32>} : memref<64x64xbf16, #tpu.memory_space<vmem>>, vector<64x64xbf16>,
    } else {
    }
    %c0 = arith.constant 0 : index
    %c0_1 = arith.constant 0 : index
    %c0_2 = arith.constant 0 : index
    %3 = vector.load %arg2[%c0, %c0_1, %c0_2] : memref<1x32x32xf32, #tpu.memory_space<vmem>>, vector<1x32x32xf32>
    %4 = vector.shape_cast %3 : vector<1x32x32xf32> to vector<32x32xf32>
    %5 = arith.truncf %4 : vector<32x32xf32> to vector<32x32xbf16>
    %c0_3 = arith.constant 0 : index
    %c0_4 = arith.constant 0 : index
    %6 = vector.load %arg4[%c0_3, %c0_4] : memref<32x32xbf16, #tpu.memory_space<vmem>>, vector<32x32xbf16>
    %cst = arith.constant dense<0.000000e+00> : vector<32x32xf32>
    %7 = tpu.matmul %5, %6, %cst {dimension_numbers = #tpu.dot_dimension_numbers<[1], [0], [0], [1], [0, 0, 1, 1], [], []>} : vector<32x32xbf16>, vector<32x32xbf16>, vector<32x32xf32> -> vector<32x32xf32>
    %cst_5 = arith.constant 5.000000e-01 : f32
    %8 = vector.broadcast %cst_5 : f32 to vector<32x32xf32>
    %9 = arith.mulf %7, %8 : vector<32x32xf32>
    %c0_6 = arith.constant 0 : index
    %c0_7 = arith.constant 0 : index
    %10 = vector.load %arg9[%c0_6, %c0_7] : memref<64x64xbf16, #tpu.memory_space<vmem>>, vector<64x64xbf16>
    %11 = vector.extract_strided_slice %9 {offsets = [0, 0], sizes = [32, 4], strides = [1, 1]} : vector<32x32xf32> to vector<32x4xf32>
    %12 = arith.truncf %11 : vector<32x4xf32> to vector<32x4xbf16>
    %13 = vector.extract_strided_slice %10 {offsets = [0, 0], sizes = [64, 4], strides = [1, 1]} : vector<64x64xbf16> to vector<64x4xbf16>
    %14 = vector.extract_strided_slice %10 {offsets = [0, 32], sizes = [64, 4], strides = [1, 1]} : vector<64x64xbf16> to vector<64x4xbf16>
    %cst_8 = arith.constant dense<0.000000e+00> : vector<32x64xf32>
    %15 = tpu.matmul %12, %13, %cst_8 {dimension_numbers = #tpu.dot_dimension_numbers<[1], [1], [0], [0], [0, 0, 1, 0], [], []>} : vector<32x4xbf16>, vector<64x4xbf16>, vector<32x64xf32> -> vector<32x64xf32>
    %cst_9 = arith.constant dense<0xFF800000> : vector<32xf32>
    %16 = vector.multi_reduction <maximumf>, %15, %cst_9 [1] : vector<32x64xf32> to vector<32xf32>
    %17 = vector.shape_cast %16 : vector<32xf32> to vector<32x1xf32>
    %18 = vector.broadcast %17 : vector<32x1xf32> to vector<32x64xf32>
    %19 = arith.subf %15, %18 : vector<32x64xf32>
    %20 = math.exp %19 : vector<32x64xf32>
    %cst_10 = arith.constant dense<0.000000e+00> : vector<32xf32>
    %21 = vector.multi_reduction <add>, %20, %cst_10 [1] : vector<32x64xf32> to vector<32xf32>
    %22 = vector.shape_cast %21 : vector<32xf32> to vector<32x1xf32>
    %23 = arith.truncf %20 : vector<32x64xf32> to vector<32x64xbf16>
    %cst_11 = arith.constant dense<0.000000e+00> : vector<32x4xf32>
    %24 = tpu.matmul %23, %14, %cst_11 {dimension_numbers = #tpu.dot_dimension_numbers<[1], [0], [0], [1], [0, 0, 1, 1], [], []>} : vector<32x64xbf16>, vector<64x4xbf16>, vector<32x4xf32> -> vector<32x4xf32>
    %25 = tpu.reciprocal %22 {approx = true} : vector<32x1xf32> -> vector<32x1xf32>
    %26 = vector.broadcast %25 : vector<32x1xf32> to vector<32x4xf32>
    %27 = arith.mulf %24, %26 : vector<32x4xf32>
    %28 = vector.extract_strided_slice %9 {offsets = [0, 4], sizes = [32, 4], strides = [1, 1]} : vector<32x32xf32> to vector<32x4xf32>
    %29 = arith.truncf %28 : vector<32x4xf32> to vector<32x4xbf16>
    %30 = vector.extract_strided_slice %10 {offsets = [0, 4], sizes = [64, 4], strides = [1, 1]} : vector<64x64xbf16> to vector<64x4xbf16>
    %31 = vector.extract_strided_slice %10 {offsets = [0, 36], sizes = [64, 4], strides = [1, 1]} : vector<64x64xbf16> to vector<64x4xbf16>
    %cst_12 = arith.constant dense<0.000000e+00> : vector<32x64xf32>
    %32 = tpu.matmul %29, %30, %cst_12 {dimension_numbers = #tpu.dot_dimension_numbers<[1], [1], [0], [0], [0, 0, 1, 0], [], []>} : vector<32x4xbf16>, vector<64x4xbf16>, vector<32x64xf32> -> vector<32x64xf32>
    %cst_13 = arith.constant dense<0xFF800000> : vector<32xf32>
    %33 = vector.multi_reduction <maximumf>, %32, %cst_13 [1] : vector<32x64xf32> to vector<32xf32>
    %34 = vector.shape_cast %33 : vector<32xf32> to vector<32x1xf32>
    %35 = vector.broadcast %34 : vector<32x1xf32> to vector<32x64xf32>
    %36 = arith.subf %32, %35 : vector<32x64xf32>
    %37 = math.exp %36 : vector<32x64xf32>
    %cst_14 = arith.constant dense<0.000000e+00> : vector<32xf32>
    %38 = vector.multi_reduction <add>, %37, %cst_14 [1] : vector<32x64xf32> to vector<32xf32>
    %39 = vector.shape_cast %38 : vector<32xf32> to vector<32x1xf32>
    %40 = arith.truncf %37 : vector<32x64xf32> to vector<32x64xbf16>
    %cst_15 = arith.constant dense<0.000000e+00> : vector<32x4xf32>
    %41 = tpu.matmul %40, %31, %cst_15 {dimension_numbers = #tpu.dot_dimension_numbers<[1], [0], [0], [1], [0, 0, 1, 1], [], []>} : vector<32x64xbf16>, vector<64x4xbf16>, vector<32x4xf32> -> vector<32x4xf32>
    %42 = tpu.reciprocal %39 {approx = true} : vector<32x1xf32> -> vector<32x1xf32>
    %43 = vector.broadcast %42 : vector<32x1xf32> to vector<32x4xf32>
    %44 = arith.mulf %41, %43 : vector<32x4xf32>
    %45 = vector.extract_strided_slice %9 {offsets = [0, 8], sizes = [32, 4], strides = [1, 1]} : vector<32x32xf32> to vector<32x4xf32>
    %46 = arith.truncf %45 : vector<32x4xf32> to vector<32x4xbf16>
    %47 = vector.extract_strided_slice %10 {offsets = [0, 8], sizes = [64, 4], strides = [1, 1]} : vector<64x64xbf16> to vector<64x4xbf16>
    %48 = vector.extract_strided_slice %10 {offsets = [0, 40], sizes = [64, 4], strides = [1, 1]} : vector<64x64xbf16> to vector<64x4xbf16>
    %cst_16 = arith.constant dense<0.000000e+00> : vector<32x64xf32>
    %49 = tpu.matmul %46, %47, %cst_16 {dimension_numbers = #tpu.dot_dimension_numbers<[1], [1], [0], [0], [0, 0, 1, 0], [], []>} : vector<32x4xbf16>, vector<64x4xbf16>, vector<32x64xf32> -> vector<32x64xf32>
    %cst_17 = arith.constant dense<0xFF800000> : vector<32xf32>
    %50 = vector.multi_reduction <maximumf>, %49, %cst_17 [1] : vector<32x64xf32> to vector<32xf32>
    %51 = vector.shape_cast %50 : vector<32xf32> to vector<32x1xf32>
    %52 = vector.broadcast %51 : vector<32x1xf32> to vector<32x64xf32>
    %53 = arith.subf %49, %52 : vector<32x64xf32>
    %54 = math.exp %53 : vector<32x64xf32>
    %cst_18 = arith.constant dense<0.000000e+00> : vector<32xf32>
    %55 = vector.multi_reduction <add>, %54, %cst_18 [1] : vector<32x64xf32> to vector<32xf32>
    %56 = vector.shape_cast %55 : vector<32xf32> to vector<32x1xf32>
    %57 = arith.truncf %54 : vector<32x64xf32> to vector<32x64xbf16>
    %cst_19 = arith.constant dense<0.000000e+00> : vector<32x4xf32>
    %58 = tpu.matmul %57, %48, %cst_19 {dimension_numbers = #tpu.dot_dimension_numbers<[1], [0], [0], [1], [0, 0, 1, 1], [], []>} : vector<32x64xbf16>, vector<64x4xbf16>, vector<32x4xf32> -> vector<32x4xf32>
    %59 = tpu.reciprocal %56 {approx = true} : vector<32x1xf32> -> vector<32x1xf32>
    %60 = vector.broadcast %59 : vector<32x1xf32> to vector<32x4xf32>
    %61 = arith.mulf %58, %60 : vector<32x4xf32>
    %62 = vector.extract_strided_slice %9 {offsets = [0, 12], sizes = [32, 4], strides = [1, 1]} : vector<32x32xf32> to vector<32x4xf32>
    %63 = arith.truncf %62 : vector<32x4xf32> to vector<32x4xbf16>
    %64 = vector.extract_strided_slice %10 {offsets = [0, 12], sizes = [64, 4], strides = [1, 1]} : vector<64x64xbf16> to vector<64x4xbf16>
    %65 = vector.extract_strided_slice %10 {offsets = [0, 44], sizes = [64, 4], strides = [1, 1]} : vector<64x64xbf16> to vector<64x4xbf16>
    %cst_20 = arith.constant dense<0.000000e+00> : vector<32x64xf32>
    %66 = tpu.matmul %63, %64, %cst_20 {dimension_numbers = #tpu.dot_dimension_numbers<[1], [1], [0], [0], [0, 0, 1, 0], [], []>} : vector<32x4xbf16>, vector<64x4xbf16>, vector<32x64xf32> -> vector<32x64xf32>
    %cst_21 = arith.constant dense<0xFF800000> : vector<32xf32>
    %67 = vector.multi_reduction <maximumf>, %66, %cst_21 [1] : vector<32x64xf32> to vector<32xf32>
    %68 = vector.shape_cast %67 : vector<32xf32> to vector<32x1xf32>
    %69 = vector.broadcast %68 : vector<32x1xf32> to vector<32x64xf32>
    %70 = arith.subf %66, %69 : vector<32x64xf32>
    %71 = math.exp %70 : vector<32x64xf32>
    %cst_22 = arith.constant dense<0.000000e+00> : vector<32xf32>
    %72 = vector.multi_reduction <add>, %71, %cst_22 [1] : vector<32x64xf32> to vector<32xf32>
    %73 = vector.shape_cast %72 : vector<32xf32> to vector<32x1xf32>
    %74 = arith.truncf %71 : vector<32x64xf32> to vector<32x64xbf16>
    %cst_23 = arith.constant dense<0.000000e+00> : vector<32x4xf32>
    %75 = tpu.matmul %74, %65, %cst_23 {dimension_numbers = #tpu.dot_dimension_numbers<[1], [0], [0], [1], [0, 0, 1, 1], [], []>} : vector<32x64xbf16>, vector<64x4xbf16>, vector<32x4xf32> -> vector<32x4xf32>
    %76 = tpu.reciprocal %73 {approx = true} : vector<32x1xf32> -> vector<32x1xf32>
    %77 = vector.broadcast %76 : vector<32x1xf32> to vector<32x4xf32>
    %78 = arith.mulf %75, %77 : vector<32x4xf32>
    %79 = vector.extract_strided_slice %9 {offsets = [0, 16], sizes = [32, 4], strides = [1, 1]} : vector<32x32xf32> to vector<32x4xf32>
    %80 = arith.truncf %79 : vector<32x4xf32> to vector<32x4xbf16>
    %81 = vector.extract_strided_slice %10 {offsets = [0, 16], sizes = [64, 4], strides = [1, 1]} : vector<64x64xbf16> to vector<64x4xbf16>
    %82 = vector.extract_strided_slice %10 {offsets = [0, 48], sizes = [64, 4], strides = [1, 1]} : vector<64x64xbf16> to vector<64x4xbf16>
    %cst_24 = arith.constant dense<0.000000e+00> : vector<32x64xf32>
    %83 = tpu.matmul %80, %81, %cst_24 {dimension_numbers = #tpu.dot_dimension_numbers<[1], [1], [0], [0], [0, 0, 1, 0], [], []>} : vector<32x4xbf16>, vector<64x4xbf16>, vector<32x64xf32> -> vector<32x64xf32>
    %cst_25 = arith.constant dense<0xFF800000> : vector<32xf32>
    %84 = vector.multi_reduction <maximumf>, %83, %cst_25 [1] : vector<32x64xf32> to vector<32xf32>
    %85 = vector.shape_cast %84 : vector<32xf32> to vector<32x1xf32>
    %86 = vector.broadcast %85 : vector<32x1xf32> to vector<32x64xf32>
    %87 = arith.subf %83, %86 : vector<32x64xf32>
    %88 = math.exp %87 : vector<32x64xf32>
    %cst_26 = arith.constant dense<0.000000e+00> : vector<32xf32>
    %89 = vector.multi_reduction <add>, %88, %cst_26 [1] : vector<32x64xf32> to vector<32xf32>
    %90 = vector.shape_cast %89 : vector<32xf32> to vector<32x1xf32>
    %91 = arith.truncf %88 : vector<32x64xf32> to vector<32x64xbf16>
    %cst_27 = arith.constant dense<0.000000e+00> : vector<32x4xf32>
    %92 = tpu.matmul %91, %82, %cst_27 {dimension_numbers = #tpu.dot_dimension_numbers<[1], [0], [0], [1], [0, 0, 1, 1], [], []>} : vector<32x64xbf16>, vector<64x4xbf16>, vector<32x4xf32> -> vector<32x4xf32>
    %93 = tpu.reciprocal %90 {approx = true} : vector<32x1xf32> -> vector<32x1xf32>
    %94 = vector.broadcast %93 : vector<32x1xf32> to vector<32x4xf32>
    %95 = arith.mulf %92, %94 : vector<32x4xf32>
    %96 = vector.extract_strided_slice %9 {offsets = [0, 20], sizes = [32, 4], strides = [1, 1]} : vector<32x32xf32> to vector<32x4xf32>
    %97 = arith.truncf %96 : vector<32x4xf32> to vector<32x4xbf16>
    %98 = vector.extract_strided_slice %10 {offsets = [0, 20], sizes = [64, 4], strides = [1, 1]} : vector<64x64xbf16> to vector<64x4xbf16>
    %99 = vector.extract_strided_slice %10 {offsets = [0, 52], sizes = [64, 4], strides = [1, 1]} : vector<64x64xbf16> to vector<64x4xbf16>
    %cst_28 = arith.constant dense<0.000000e+00> : vector<32x64xf32>
    %100 = tpu.matmul %97, %98, %cst_28 {dimension_numbers = #tpu.dot_dimension_numbers<[1], [1], [0], [0], [0, 0, 1, 0], [], []>} : vector<32x4xbf16>, vector<64x4xbf16>, vector<32x64xf32> -> vector<32x64xf32>
    %cst_29 = arith.constant dense<0xFF800000> : vector<32xf32>
    %101 = vector.multi_reduction <maximumf>, %100, %cst_29 [1] : vector<32x64xf32> to vector<32xf32>
    %102 = vector.shape_cast %101 : vector<32xf32> to vector<32x1xf32>
    %103 = vector.broadcast %102 : vector<32x1xf32> to vector<32x64xf32>
    %104 = arith.subf %100, %103 : vector<32x64xf32>
    %105 = math.exp %104 : vector<32x64xf32>
    %cst_30 = arith.constant dense<0.000000e+00> : vector<32xf32>
    %106 = vector.multi_reduction <add>, %105, %cst_30 [1] : vector<32x64xf32> to vector<32xf32>
    %107 = vector.shape_cast %106 : vector<32xf32> to vector<32x1xf32>
    %108 = arith.truncf %105 : vector<32x64xf32> to vector<32x64xbf16>
    %cst_31 = arith.constant dense<0.000000e+00> : vector<32x4xf32>
    %109 = tpu.matmul %108, %99, %cst_31 {dimension_numbers = #tpu.dot_dimension_numbers<[1], [0], [0], [1], [0, 0, 1, 1], [], []>} : vector<32x64xbf16>, vector<64x4xbf16>, vector<32x4xf32> -> vector<32x4xf32>
    %110 = tpu.reciprocal %107 {approx = true} : vector<32x1xf32> -> vector<32x1xf32>
    %111 = vector.broadcast %110 : vector<32x1xf32> to vector<32x4xf32>
    %112 = arith.mulf %109, %111 : vector<32x4xf32>
    %113 = vector.extract_strided_slice %9 {offsets = [0, 24], sizes = [32, 4], strides = [1, 1]} : vector<32x32xf32> to vector<32x4xf32>
    %114 = arith.truncf %113 : vector<32x4xf32> to vector<32x4xbf16>
    %115 = vector.extract_strided_slice %10 {offsets = [0, 24], sizes = [64, 4], strides = [1, 1]} : vector<64x64xbf16> to vector<64x4xbf16>
    %116 = vector.extract_strided_slice %10 {offsets = [0, 56], sizes = [64, 4], strides = [1, 1]} : vector<64x64xbf16> to vector<64x4xbf16>
    %cst_32 = arith.constant dense<0.000000e+00> : vector<32x64xf32>
    %117 = tpu.matmul %114, %115, %cst_32 {dimension_numbers = #tpu.dot_dimension_numbers<[1], [1], [0], [0], [0, 0, 1, 0], [], []>} : vector<32x4xbf16>, vector<64x4xbf16>, vector<32x64xf32> -> vector<32x64xf32>
    %cst_33 = arith.constant dense<0xFF800000> : vector<32xf32>
    %118 = vector.multi_reduction <maximumf>, %117, %cst_33 [1] : vector<32x64xf32> to vector<32xf32>
    %119 = vector.shape_cast %118 : vector<32xf32> to vector<32x1xf32>
    %120 = vector.broadcast %119 : vector<32x1xf32> to vector<32x64xf32>
    %121 = arith.subf %117, %120 : vector<32x64xf32>
    %122 = math.exp %121 : vector<32x64xf32>
    %cst_34 = arith.constant dense<0.000000e+00> : vector<32xf32>
    %123 = vector.multi_reduction <add>, %122, %cst_34 [1] : vector<32x64xf32> to vector<32xf32>
    %124 = vector.shape_cast %123 : vector<32xf32> to vector<32x1xf32>
    %125 = arith.truncf %122 : vector<32x64xf32> to vector<32x64xbf16>
    %cst_35 = arith.constant dense<0.000000e+00> : vector<32x4xf32>
    %126 = tpu.matmul %125, %116, %cst_35 {dimension_numbers = #tpu.dot_dimension_numbers<[1], [0], [0], [1], [0, 0, 1, 1], [], []>} : vector<32x64xbf16>, vector<64x4xbf16>, vector<32x4xf32> -> vector<32x4xf32>
    %127 = tpu.reciprocal %124 {approx = true} : vector<32x1xf32> -> vector<32x1xf32>
    %128 = vector.broadcast %127 : vector<32x1xf32> to vector<32x4xf32>
    %129 = arith.mulf %126, %128 : vector<32x4xf32>
    %130 = vector.extract_strided_slice %9 {offsets = [0, 28], sizes = [32, 4], strides = [1, 1]} : vector<32x32xf32> to vector<32x4xf32>
    %131 = arith.truncf %130 : vector<32x4xf32> to vector<32x4xbf16>
    %132 = vector.extract_strided_slice %10 {offsets = [0, 28], sizes = [64, 4], strides = [1, 1]} : vector<64x64xbf16> to vector<64x4xbf16>
    %133 = vector.extract_strided_slice %10 {offsets = [0, 60], sizes = [64, 4], strides = [1, 1]} : vector<64x64xbf16> to vector<64x4xbf16>
    %cst_36 = arith.constant dense<0.000000e+00> : vector<32x64xf32>
    %134 = tpu.matmul %131, %132, %cst_36 {dimension_numbers = #tpu.dot_dimension_numbers<[1], [1], [0], [0], [0, 0, 1, 0], [], []>} : vector<32x4xbf16>, vector<64x4xbf16>, vector<32x64xf32> -> vector<32x64xf32>
    %cst_37 = arith.constant dense<0xFF800000> : vector<32xf32>
    %135 = vector.multi_reduction <maximumf>, %134, %cst_37 [1] : vector<32x64xf32> to vector<32xf32>
    %136 = vector.shape_cast %135 : vector<32xf32> to vector<32x1xf32>
    %137 = vector.broadcast %136 : vector<32x1xf32> to vector<32x64xf32>
    %138 = arith.subf %134, %137 : vector<32x64xf32>
    %139 = math.exp %138 : vector<32x64xf32>
    %cst_38 = arith.constant dense<0.000000e+00> : vector<32xf32>
    %140 = vector.multi_reduction <add>, %139, %cst_38 [1] : vector<32x64xf32> to vector<32xf32>
    %141 = vector.shape_cast %140 : vector<32xf32> to vector<32x1xf32>
    %142 = arith.truncf %139 : vector<32x64xf32> to vector<32x64xbf16>
    %cst_39 = arith.constant dense<0.000000e+00> : vector<32x4xf32>
    %143 = tpu.matmul %142, %133, %cst_39 {dimension_numbers = #tpu.dot_dimension_numbers<[1], [0], [0], [1], [0, 0, 1, 1], [], []>} : vector<32x64xbf16>, vector<64x4xbf16>, vector<32x4xf32> -> vector<32x4xf32>
    %144 = tpu.reciprocal %141 {approx = true} : vector<32x1xf32> -> vector<32x1xf32>
    %145 = vector.broadcast %144 : vector<32x1xf32> to vector<32x4xf32>
    %146 = arith.mulf %143, %145 : vector<32x4xf32>
    %147 = tpu.concatenate %27, %44, %61, %78, %95, %112, %129, %146 in 1 : vector<32x4xf32>, vector<32x4xf32>, vector<32x4xf32>, vector<32x4xf32>, vector<32x4xf32>, vector<32x4xf32>, vector<32x4xf32>, vector<32x4xf32> -> vector<32x32xf32>
    %148 = arith.truncf %147 : vector<32x32xf32> to vector<32x32xbf16>
    %c0_40 = arith.constant 0 : index
    %c0_41 = arith.constant 0 : index
    %149 = vector.load %arg6[%c0_40, %c0_41] : memref<32x32xbf16, #tpu.memory_space<vmem>>, vector<32x32xbf16>
    %cst_42 = arith.constant dense<0.000000e+00> : vector<32x32xf32>
    %150 = tpu.matmul %148, %149, %cst_42 {dimension_numbers = #tpu.dot_dimension_numbers<[1], [0], [0], [1], [0, 0, 1, 1], [], []>} : vector<32x32xbf16>, vector<32x32xbf16>, vector<32x32xf32> -> vector<32x32xf32>
    %c0_43 = arith.constant 0 : index
    %c0_44 = arith.constant 0 : index
    %151 = vector.load %arg7[%c0_43, %c0_44] : memref<1x32xf32, #tpu.memory_space<vmem>>, vector<1x32xf32>
    %152 = vector.broadcast %151 : vector<1x32xf32> to vector<32x32xf32>
    %153 = arith.addf %150, %152 : vector<32x32xf32>
    %c0_45 = arith.constant 0 : index
    %c0_46 = arith.constant 0 : index
    %c0_47 = arith.constant 0 : index
    %154 = vector.load %arg8[%c0_45, %c0_46, %c0_47] : memref<1x32x32xf32, #tpu.memory_space<vmem>>, vector<1x32x32xf32>
    %155 = vector.shape_cast %154 : vector<1x32x32xf32> to vector<32x32xf32>
    %156 = vector.shape_cast %153 : vector<32x32xf32> to vector<1x32x32xf32>
    tpu.vector_store %arg8[%c0_45, %c0_46, %c0_47], %156 {strides = array<i32>} : memref<1x32x32xf32, #tpu.memory_space<vmem>>, vector<1x32x32xf32>,
    return
  }
  func.func @transform_0(%arg0: i32, %arg1: i32) -> (i32, i32, i32) {
    %c0_i32 = arith.constant 0 : i32
    %c0_i32_0 = arith.constant 0 : i32
    return %arg0, %arg1, %c0_i32 : i32, i32, i32
  }
  func.func @transform_1(%arg0: i32, %arg1: i32) -> (i32, i32, i32) {
    %c0_i32 = arith.constant 0 : i32
    %c0_i32_0 = arith.constant 0 : i32
    %c0_i32_1 = arith.constant 0 : i32
    return %arg0, %c0_i32, %c0_i32_0 : i32, i32, i32
  }
  func.func @transform_2(%arg0: i32, %arg1: i32) -> (i32, i32) {
    %c0_i32 = arith.constant 0 : i32
    %c0_i32_0 = arith.constant 0 : i32
    %c0_i32_1 = arith.constant 0 : i32
    return %c0_i32, %c0_i32_0 : i32, i32
  }
  func.func @transform_3(%arg0: i32, %arg1: i32) -> (i32, i32) {
    %c0_i32 = arith.constant 0 : i32
    %c0_i32_0 = arith.constant 0 : i32
    %c0_i32_1 = arith.constant 0 : i32
    return %c0_i32, %c0_i32_0 : i32, i32
  }
  func.func @transform_4(%arg0: i32, %arg1: i32) -> (i32, i32) {
    %c0_i32 = arith.constant 0 : i32
    %c0_i32_0 = arith.constant 0 : i32
    %c0_i32_1 = arith.constant 0 : i32
    return %c0_i32, %c0_i32_0 : i32, i32
  }
  func.func @transform_5(%arg0: i32, %arg1: i32) -> (i32, i32) {
    %c0_i32 = arith.constant 0 : i32
    %c0_i32_0 = arith.constant 0 : i32
    %c0_i32_1 = arith.constant 0 : i32
    return %c0_i32, %c0_i32_0 : i32, i32
  }
  func.func @transform_6(%arg0: i32, %arg1: i32) -> (i32, i32, i32) {
    %c0_i32 = arith.constant 0 : i32
    %c0_i32_0 = arith.constant 0 : i32
    return %arg0, %arg1, %c0_i32 : i32, i32, i32
  }
}

module attributes {stable_mosaic.version = 11 : i64} {
  func.func @_ln_kernel(%arg0: i32, %arg1: memref<32x32xf32, #tpu.memory_space<vmem>>, %arg2: memref<32x32xf32, #tpu.memory_space<vmem>>, %arg3: memref<32x32xf32, #tpu.memory_space<vmem>>, %arg4: memref<1x32xf32, #tpu.memory_space<vmem>>, %arg5: memref<1x32xf32, #tpu.memory_space<vmem>>, %arg6: memref<32x32xf32, #tpu.memory_space<vmem>>) attributes {dimension_semantics = [#tpu.dimension_semantics<parallel>], iteration_bounds = array<i64: 4>, scalar_prefetch = 0 : i64, scratch_operands = 0 : i64, tpu.core_type = #tpu.core_type<tc>, window_params = [{transform_indices = @transform_0, window_bounds = array<i64: 32, 32>}, {transform_indices = @transform_1, window_bounds = array<i64: 32, 32>}, {transform_indices = @transform_2, window_bounds = array<i64: 32, 32>}, {pipeline_mode = #tpu.pipeline_mode<synchronous>, transform_indices = @transform_3, window_bounds = array<i64: 1, 32>}, {pipeline_mode = #tpu.pipeline_mode<synchronous>, transform_indices = @transform_4, window_bounds = array<i64: 1, 32>}, {transform_indices = @transform_5, window_bounds = array<i64: 32, 32>}]} {
    %c0 = arith.constant 0 : index
    %c0_0 = arith.constant 0 : index
    %0 = vector.load %arg1[%c0, %c0_0] : memref<32x32xf32, #tpu.memory_space<vmem>>, vector<32x32xf32>
    %c0_1 = arith.constant 0 : index
    %c0_2 = arith.constant 0 : index
    %1 = vector.load %arg2[%c0_1, %c0_2] : memref<32x32xf32, #tpu.memory_space<vmem>>, vector<32x32xf32>
    %2 = arith.addf %0, %1 : vector<32x32xf32>
    %c0_3 = arith.constant 0 : index
    %c0_4 = arith.constant 0 : index
    %3 = vector.load %arg3[%c0_3, %c0_4] : memref<32x32xf32, #tpu.memory_space<vmem>>, vector<32x32xf32>
    %c0_5 = arith.constant 0 : index
    %c0_6 = arith.constant 0 : index
    %4 = vector.load %arg4[%c0_5, %c0_6] : memref<1x32xf32, #tpu.memory_space<vmem>>, vector<1x32xf32>
    %c0_7 = arith.constant 0 : index
    %c0_8 = arith.constant 0 : index
    %5 = vector.load %arg5[%c0_7, %c0_8] : memref<1x32xf32, #tpu.memory_space<vmem>>, vector<1x32xf32>
    %cst = arith.constant dense<0.000000e+00> : vector<32xf32>
    %6 = vector.multi_reduction <add>, %2, %cst [1] : vector<32x32xf32> to vector<32xf32>
    %7 = vector.shape_cast %6 : vector<32xf32> to vector<32x1xf32>
    %cst_9 = arith.constant 3.200000e+01 : f32
    %8 = vector.broadcast %cst_9 : f32 to vector<32x1xf32>
    %9 = arith.divf %7, %8 : vector<32x1xf32>
    %10 = vector.broadcast %9 : vector<32x1xf32> to vector<32x32xf32>
    %11 = arith.subf %2, %10 : vector<32x32xf32>
    %12 = arith.mulf %11, %11 : vector<32x32xf32>
    %cst_10 = arith.constant dense<0.000000e+00> : vector<32xf32>
    %13 = vector.multi_reduction <add>, %12, %cst_10 [1] : vector<32x32xf32> to vector<32xf32>
    %14 = vector.shape_cast %13 : vector<32xf32> to vector<32x1xf32>
    %cst_11 = arith.constant 3.200000e+01 : f32
    %15 = vector.broadcast %cst_11 : f32 to vector<32x1xf32>
    %16 = arith.divf %14, %15 : vector<32x1xf32>
    %cst_12 = arith.constant 9.99999997E-7 : f32
    %17 = vector.broadcast %cst_12 : f32 to vector<32x1xf32>
    %18 = arith.addf %16, %17 : vector<32x1xf32>
    %19 = math.rsqrt %18 : vector<32x1xf32>
    %20 = vector.broadcast %19 : vector<32x1xf32> to vector<32x32xf32>
    %21 = arith.mulf %11, %20 : vector<32x32xf32>
    %22 = vector.broadcast %4 : vector<1x32xf32> to vector<32x32xf32>
    %23 = arith.mulf %21, %22 : vector<32x32xf32>
    %24 = vector.broadcast %5 : vector<1x32xf32> to vector<32x32xf32>
    %25 = arith.addf %23, %24 : vector<32x32xf32>
    %26 = arith.addf %25, %3 : vector<32x32xf32>
    %c0_13 = arith.constant 0 : index
    %c0_14 = arith.constant 0 : index
    %27 = vector.load %arg6[%c0_13, %c0_14] : memref<32x32xf32, #tpu.memory_space<vmem>>, vector<32x32xf32>
    tpu.vector_store %arg6[%c0_13, %c0_14], %26 {strides = array<i32>} : memref<32x32xf32, #tpu.memory_space<vmem>>, vector<32x32xf32>,
    return
  }
  func.func @transform_0(%arg0: i32) -> (i32, i32) {
    %c0_i32 = arith.constant 0 : i32
    %c0_i32_0 = arith.constant 0 : i32
    return %arg0, %c0_i32 : i32, i32
  }
  func.func @transform_1(%arg0: i32) -> (i32, i32) {
    %c0_i32 = arith.constant 0 : i32
    %c0_i32_0 = arith.constant 0 : i32
    return %arg0, %c0_i32 : i32, i32
  }
  func.func @transform_2(%arg0: i32) -> (i32, i32) {
    %c0_i32 = arith.constant 0 : i32
    %c0_i32_0 = arith.constant 0 : i32
    return %arg0, %c0_i32 : i32, i32
  }
  func.func @transform_3(%arg0: i32) -> (i32, i32) {
    %c0_i32 = arith.constant 0 : i32
    %c0_i32_0 = arith.constant 0 : i32
    %c0_i32_1 = arith.constant 0 : i32
    return %c0_i32, %c0_i32_0 : i32, i32
  }
  func.func @transform_4(%arg0: i32) -> (i32, i32) {
    %c0_i32 = arith.constant 0 : i32
    %c0_i32_0 = arith.constant 0 : i32
    %c0_i32_1 = arith.constant 0 : i32
    return %c0_i32, %c0_i32_0 : i32, i32
  }
  func.func @transform_5(%arg0: i32) -> (i32, i32) {
    %c0_i32 = arith.constant 0 : i32
    %c0_i32_0 = arith.constant 0 : i32
    return %arg0, %c0_i32 : i32, i32
  }
}

module attributes {stable_mosaic.version = 11 : i64} {
  func.func @_linear_kernel(%arg0: i32, %arg1: memref<32x32xf32, #tpu.memory_space<vmem>>, %arg2: memref<32x128xbf16, #tpu.memory_space<vmem>>, %arg3: memref<1x128xf32, #tpu.memory_space<vmem>>, %arg4: memref<32x128xf32, #tpu.memory_space<vmem>>) attributes {dimension_semantics = [#tpu.dimension_semantics<parallel>], iteration_bounds = array<i64: 4>, scalar_prefetch = 0 : i64, scratch_operands = 0 : i64, tpu.core_type = #tpu.core_type<tc>, window_params = [{transform_indices = @transform_0, window_bounds = array<i64: 32, 32>}, {pipeline_mode = #tpu.pipeline_mode<synchronous>, transform_indices = @transform_1, window_bounds = array<i64: 32, 128>}, {pipeline_mode = #tpu.pipeline_mode<synchronous>, transform_indices = @transform_2, window_bounds = array<i64: 1, 128>}, {transform_indices = @transform_3, window_bounds = array<i64: 32, 128>}]} {
    %c0 = arith.constant 0 : index
    %c0_0 = arith.constant 0 : index
    %0 = vector.load %arg1[%c0, %c0_0] : memref<32x32xf32, #tpu.memory_space<vmem>>, vector<32x32xf32>
    %1 = arith.truncf %0 : vector<32x32xf32> to vector<32x32xbf16>
    %c0_1 = arith.constant 0 : index
    %c0_2 = arith.constant 0 : index
    %2 = vector.load %arg2[%c0_1, %c0_2] : memref<32x128xbf16, #tpu.memory_space<vmem>>, vector<32x128xbf16>
    %cst = arith.constant dense<0.000000e+00> : vector<32x128xf32>
    %3 = tpu.matmul %1, %2, %cst {dimension_numbers = #tpu.dot_dimension_numbers<[1], [0], [0], [1], [0, 0, 1, 1], [], []>} : vector<32x32xbf16>, vector<32x128xbf16>, vector<32x128xf32> -> vector<32x128xf32>
    %c0_3 = arith.constant 0 : index
    %c0_4 = arith.constant 0 : index
    %4 = vector.load %arg3[%c0_3, %c0_4] : memref<1x128xf32, #tpu.memory_space<vmem>>, vector<1x128xf32>
    %5 = vector.broadcast %4 : vector<1x128xf32> to vector<32x128xf32>
    %6 = arith.addf %3, %5 : vector<32x128xf32>
    %c0_5 = arith.constant 0 : index
    %c0_6 = arith.constant 0 : index
    %7 = vector.load %arg4[%c0_5, %c0_6] : memref<32x128xf32, #tpu.memory_space<vmem>>, vector<32x128xf32>
    tpu.vector_store %arg4[%c0_5, %c0_6], %6 {strides = array<i32>} : memref<32x128xf32, #tpu.memory_space<vmem>>, vector<32x128xf32>,
    return
  }
  func.func @transform_0(%arg0: i32) -> (i32, i32) {
    %c0_i32 = arith.constant 0 : i32
    %c0_i32_0 = arith.constant 0 : i32
    return %arg0, %c0_i32 : i32, i32
  }
  func.func @transform_1(%arg0: i32) -> (i32, i32) {
    %c0_i32 = arith.constant 0 : i32
    %c0_i32_0 = arith.constant 0 : i32
    %c0_i32_1 = arith.constant 0 : i32
    return %c0_i32, %c0_i32_0 : i32, i32
  }
  func.func @transform_2(%arg0: i32) -> (i32, i32) {
    %c0_i32 = arith.constant 0 : i32
    %c0_i32_0 = arith.constant 0 : i32
    %c0_i32_1 = arith.constant 0 : i32
    return %c0_i32, %c0_i32_0 : i32, i32
  }
  func.func @transform_3(%arg0: i32) -> (i32, i32) {
    %c0_i32 = arith.constant 0 : i32
    %c0_i32_0 = arith.constant 0 : i32
    return %arg0, %c0_i32 : i32, i32
  }
}

module attributes {stable_mosaic.version = 11 : i64} {
  func.func @_linear_kernel(%arg0: i32, %arg1: memref<32x128xf32, #tpu.memory_space<vmem>>, %arg2: memref<128x32xbf16, #tpu.memory_space<vmem>>, %arg3: memref<1x32xf32, #tpu.memory_space<vmem>>, %arg4: memref<32x32xf32, #tpu.memory_space<vmem>>) attributes {dimension_semantics = [#tpu.dimension_semantics<parallel>], iteration_bounds = array<i64: 4>, scalar_prefetch = 0 : i64, scratch_operands = 0 : i64, tpu.core_type = #tpu.core_type<tc>, window_params = [{transform_indices = @transform_0, window_bounds = array<i64: 32, 128>}, {pipeline_mode = #tpu.pipeline_mode<synchronous>, transform_indices = @transform_1, window_bounds = array<i64: 128, 32>}, {pipeline_mode = #tpu.pipeline_mode<synchronous>, transform_indices = @transform_2, window_bounds = array<i64: 1, 32>}, {transform_indices = @transform_3, window_bounds = array<i64: 32, 32>}]} {
    %c0 = arith.constant 0 : index
    %c0_0 = arith.constant 0 : index
    %0 = vector.load %arg1[%c0, %c0_0] : memref<32x128xf32, #tpu.memory_space<vmem>>, vector<32x128xf32>
    %cst = arith.constant 5.000000e-01 : f32
    %1 = vector.broadcast %cst : f32 to vector<32x128xf32>
    %2 = arith.mulf %1, %0 : vector<32x128xf32>
    %cst_1 = arith.constant 0.707106769 : f32
    %3 = vector.broadcast %cst_1 : f32 to vector<32x128xf32>
    %4 = arith.mulf %0, %3 : vector<32x128xf32>
    %5 = math.absf %4 : vector<32x128xf32>
    %cst_2 = arith.constant 0.327591091 : f32
    %6 = vector.broadcast %cst_2 : f32 to vector<32x128xf32>
    %7 = arith.mulf %6, %5 : vector<32x128xf32>
    %cst_3 = arith.constant 1.000000e+00 : f32
    %8 = vector.broadcast %cst_3 : f32 to vector<32x128xf32>
    %9 = arith.addf %8, %7 : vector<32x128xf32>
    %cst_4 = arith.constant 1.000000e+00 : f32
    %10 = vector.broadcast %cst_4 : f32 to vector<32x128xf32>
    %11 = arith.divf %10, %9 : vector<32x128xf32>
    %cst_5 = arith.constant 1.06140542 : f32
    %12 = vector.broadcast %cst_5 : f32 to vector<32x128xf32>
    %13 = arith.mulf %12, %11 : vector<32x128xf32>
    %cst_6 = arith.constant -1.45315206 : f32
    %14 = vector.broadcast %cst_6 : f32 to vector<32x128xf32>
    %15 = arith.addf %13, %14 : vector<32x128xf32>
    %16 = arith.mulf %15, %11 : vector<32x128xf32>
    %cst_7 = arith.constant 1.42141378 : f32
    %17 = vector.broadcast %cst_7 : f32 to vector<32x128xf32>
    %18 = arith.addf %16, %17 : vector<32x128xf32>
    %19 = arith.mulf %18, %11 : vector<32x128xf32>
    %cst_8 = arith.constant -0.284496725 : f32
    %20 = vector.broadcast %cst_8 : f32 to vector<32x128xf32>
    %21 = arith.addf %19, %20 : vector<32x128xf32>
    %22 = arith.mulf %21, %11 : vector<32x128xf32>
    %cst_9 = arith.constant 0.254829586 : f32
    %23 = vector.broadcast %cst_9 : f32 to vector<32x128xf32>
    %24 = arith.addf %22, %23 : vector<32x128xf32>
    %25 = arith.mulf %24, %11 : vector<32x128xf32>
    %cst_10 = arith.constant 0.000000e+00 : f32
    %26 = vector.broadcast %cst_10 : f32 to vector<32x128xf32>
    %27 = arith.subf %26, %5 : vector<32x128xf32>
    %28 = arith.mulf %27, %5 : vector<32x128xf32>
    %29 = math.exp %28 : vector<32x128xf32>
    %30 = arith.mulf %25, %29 : vector<32x128xf32>
    %cst_11 = arith.constant 1.000000e+00 : f32
    %31 = vector.broadcast %cst_11 : f32 to vector<32x128xf32>
    %32 = arith.subf %31, %30 : vector<32x128xf32>
    %cst_12 = arith.constant 0.000000e+00 : f32
    %33 = vector.broadcast %cst_12 : f32 to vector<32x128xf32>
    %34 = arith.cmpf olt, %4, %33 : vector<32x128xf32>
    %cst_13 = arith.constant 0.000000e+00 : f32
    %35 = vector.broadcast %cst_13 : f32 to vector<32x128xf32>
    %36 = arith.subf %35, %32 : vector<32x128xf32>
    %37 = arith.select %34, %36, %32 : vector<32x128xi1>, vector<32x128xf32>
    %cst_14 = arith.constant 1.000000e+00 : f32
    %38 = vector.broadcast %cst_14 : f32 to vector<32x128xf32>
    %39 = arith.addf %38, %37 : vector<32x128xf32>
    %40 = arith.mulf %2, %39 : vector<32x128xf32>
    %41 = arith.truncf %40 : vector<32x128xf32> to vector<32x128xbf16>
    %c0_15 = arith.constant 0 : index
    %c0_16 = arith.constant 0 : index
    %42 = vector.load %arg2[%c0_15, %c0_16] : memref<128x32xbf16, #tpu.memory_space<vmem>>, vector<128x32xbf16>
    %cst_17 = arith.constant dense<0.000000e+00> : vector<32x32xf32>
    %43 = tpu.matmul %41, %42, %cst_17 {dimension_numbers = #tpu.dot_dimension_numbers<[1], [0], [0], [1], [0, 0, 1, 1], [], []>} : vector<32x128xbf16>, vector<128x32xbf16>, vector<32x32xf32> -> vector<32x32xf32>
    %c0_18 = arith.constant 0 : index
    %c0_19 = arith.constant 0 : index
    %44 = vector.load %arg3[%c0_18, %c0_19] : memref<1x32xf32, #tpu.memory_space<vmem>>, vector<1x32xf32>
    %45 = vector.broadcast %44 : vector<1x32xf32> to vector<32x32xf32>
    %46 = arith.addf %43, %45 : vector<32x32xf32>
    %c0_20 = arith.constant 0 : index
    %c0_21 = arith.constant 0 : index
    %47 = vector.load %arg4[%c0_20, %c0_21] : memref<32x32xf32, #tpu.memory_space<vmem>>, vector<32x32xf32>
    tpu.vector_store %arg4[%c0_20, %c0_21], %46 {strides = array<i32>} : memref<32x32xf32, #tpu.memory_space<vmem>>, vector<32x32xf32>,
    return
  }
  func.func @transform_0(%arg0: i32) -> (i32, i32) {
    %c0_i32 = arith.constant 0 : i32
    %c0_i32_0 = arith.constant 0 : i32
    return %arg0, %c0_i32 : i32, i32
  }
  func.func @transform_1(%arg0: i32) -> (i32, i32) {
    %c0_i32 = arith.constant 0 : i32
    %c0_i32_0 = arith.constant 0 : i32
    %c0_i32_1 = arith.constant 0 : i32
    return %c0_i32, %c0_i32_0 : i32, i32
  }
  func.func @transform_2(%arg0: i32) -> (i32, i32) {
    %c0_i32 = arith.constant 0 : i32
    %c0_i32_0 = arith.constant 0 : i32
    %c0_i32_1 = arith.constant 0 : i32
    return %c0_i32, %c0_i32_0 : i32, i32
  }
  func.func @transform_3(%arg0: i32) -> (i32, i32) {
    %c0_i32 = arith.constant 0 : i32
    %c0_i32_0 = arith.constant 0 : i32
    return %arg0, %c0_i32 : i32, i32
  }
}

module attributes {stable_mosaic.version = 11 : i64} {
  func.func @_dwconv_kernel(%arg0: i32, %arg1: i32, %arg2: memref<1x1x6x1280xf32, #tpu.memory_space<vmem>>, %arg3: memref<9x1024xf32, #tpu.memory_space<vmem>>, %arg4: memref<1x1024xf32, #tpu.memory_space<vmem>>, %arg5: memref<1x1x4x1024xf32, #tpu.memory_space<vmem>>) attributes {dimension_semantics = [#tpu.dimension_semantics<parallel>, #tpu.dimension_semantics<parallel>], iteration_bounds = array<i64: 2, 2>, scalar_prefetch = 0 : i64, scratch_operands = 0 : i64, tpu.core_type = #tpu.core_type<tc>, window_params = [{transform_indices = @transform_0, window_bounds = array<i64: 1, 1, 6, 1280>}, {pipeline_mode = #tpu.pipeline_mode<synchronous>, transform_indices = @transform_1, window_bounds = array<i64: 9, 1024>}, {pipeline_mode = #tpu.pipeline_mode<synchronous>, transform_indices = @transform_2, window_bounds = array<i64: 1, 1024>}, {transform_indices = @transform_3, window_bounds = array<i64: 1, 1, 4, 1024>}]} {
    %c0 = arith.constant 0 : index
    %c0_0 = arith.constant 0 : index
    %c0_1 = arith.constant 0 : index
    %c0_2 = arith.constant 0 : index
    %0 = vector.load %arg2[%c0, %c0_0, %c0_1, %c0_2] : memref<1x1x6x1280xf32, #tpu.memory_space<vmem>>, vector<1x1x6x1280xf32>
    %1 = vector.shape_cast %0 : vector<1x1x6x1280xf32> to vector<6x1280xf32>
    %c0_3 = arith.constant 0 : index
    %c0_4 = arith.constant 0 : index
    %2 = vector.load %arg4[%c0_3, %c0_4] : memref<1x1024xf32, #tpu.memory_space<vmem>>, vector<1x1024xf32>
    %3 = vector.shape_cast %2 : vector<1x1024xf32> to vector<1x1024xf32>
    %4 = vector.broadcast %3 : vector<1x1024xf32> to vector<4x1024xf32>
    %5 = vector.extract_strided_slice %1 {offsets = [0, 0], sizes = [6, 1024], strides = [1, 1]} : vector<6x1280xf32> to vector<6x1024xf32>
    %c0_5 = arith.constant 0 : index
    %c0_6 = arith.constant 0 : index
    %6 = vector.load %arg3[%c0_5, %c0_6] : memref<9x1024xf32, #tpu.memory_space<vmem>>, vector<1x1024xf32>
    %7 = vector.extract_strided_slice %5 {offsets = [0, 0], sizes = [4, 1024], strides = [1, 1]} : vector<6x1024xf32> to vector<4x1024xf32>
    %8 = vector.broadcast %6 : vector<1x1024xf32> to vector<4x1024xf32>
    %9 = arith.mulf %7, %8 : vector<4x1024xf32>
    %10 = arith.addf %4, %9 : vector<4x1024xf32>
    %c3 = arith.constant 3 : index
    %c0_7 = arith.constant 0 : index
    %11 = vector.load %arg3[%c3, %c0_7] : memref<9x1024xf32, #tpu.memory_space<vmem>>, vector<1x1024xf32>
    %12 = vector.extract_strided_slice %5 {offsets = [1, 0], sizes = [4, 1024], strides = [1, 1]} : vector<6x1024xf32> to vector<4x1024xf32>
    %13 = vector.broadcast %11 : vector<1x1024xf32> to vector<4x1024xf32>
    %14 = arith.mulf %12, %13 : vector<4x1024xf32>
    %15 = arith.addf %10, %14 : vector<4x1024xf32>
    %c6 = arith.constant 6 : index
    %c0_8 = arith.constant 0 : index
    %16 = vector.load %arg3[%c6, %c0_8] : memref<9x1024xf32, #tpu.memory_space<vmem>>, vector<1x1024xf32>
    %17 = vector.extract_strided_slice %5 {offsets = [2, 0], sizes = [4, 1024], strides = [1, 1]} : vector<6x1024xf32> to vector<4x1024xf32>
    %18 = vector.broadcast %16 : vector<1x1024xf32> to vector<4x1024xf32>
    %19 = arith.mulf %17, %18 : vector<4x1024xf32>
    %20 = arith.addf %15, %19 : vector<4x1024xf32>
    %21 = vector.extract_strided_slice %1 {offsets = [0, 128], sizes = [6, 1024], strides = [1, 1]} : vector<6x1280xf32> to vector<6x1024xf32>
    %22 = vector.extract_strided_slice %21 {offsets = [1, 0], sizes = [4, 1024], strides = [1, 1]} : vector<6x1024xf32> to vector<4x1024xf32>
    %23 = arith.addf %20, %22 : vector<4x1024xf32>
    %c1 = arith.constant 1 : index
    %c0_9 = arith.constant 0 : index
    %24 = vector.load %arg3[%c1, %c0_9] : memref<9x1024xf32, #tpu.memory_space<vmem>>, vector<1x1024xf32>
    %25 = vector.extract_strided_slice %21 {offsets = [0, 0], sizes = [4, 1024], strides = [1, 1]} : vector<6x1024xf32> to vector<4x1024xf32>
    %26 = vector.broadcast %24 : vector<1x1024xf32> to vector<4x1024xf32>
    %27 = arith.mulf %25, %26 : vector<4x1024xf32>
    %28 = arith.addf %23, %27 : vector<4x1024xf32>
    %c4 = arith.constant 4 : index
    %c0_10 = arith.constant 0 : index
    %29 = vector.load %arg3[%c4, %c0_10] : memref<9x1024xf32, #tpu.memory_space<vmem>>, vector<1x1024xf32>
    %30 = vector.extract_strided_slice %21 {offsets = [1, 0], sizes = [4, 1024], strides = [1, 1]} : vector<6x1024xf32> to vector<4x1024xf32>
    %31 = vector.broadcast %29 : vector<1x1024xf32> to vector<4x1024xf32>
    %32 = arith.mulf %30, %31 : vector<4x1024xf32>
    %33 = arith.addf %28, %32 : vector<4x1024xf32>
    %c7 = arith.constant 7 : index
    %c0_11 = arith.constant 0 : index
    %34 = vector.load %arg3[%c7, %c0_11] : memref<9x1024xf32, #tpu.memory_space<vmem>>, vector<1x1024xf32>
    %35 = vector.extract_strided_slice %21 {offsets = [2, 0], sizes = [4, 1024], strides = [1, 1]} : vector<6x1024xf32> to vector<4x1024xf32>
    %36 = vector.broadcast %34 : vector<1x1024xf32> to vector<4x1024xf32>
    %37 = arith.mulf %35, %36 : vector<4x1024xf32>
    %38 = arith.addf %33, %37 : vector<4x1024xf32>
    %39 = vector.extract_strided_slice %1 {offsets = [0, 256], sizes = [6, 1024], strides = [1, 1]} : vector<6x1280xf32> to vector<6x1024xf32>
    %c2 = arith.constant 2 : index
    %c0_12 = arith.constant 0 : index
    %40 = vector.load %arg3[%c2, %c0_12] : memref<9x1024xf32, #tpu.memory_space<vmem>>, vector<1x1024xf32>
    %41 = vector.extract_strided_slice %39 {offsets = [0, 0], sizes = [4, 1024], strides = [1, 1]} : vector<6x1024xf32> to vector<4x1024xf32>
    %42 = vector.broadcast %40 : vector<1x1024xf32> to vector<4x1024xf32>
    %43 = arith.mulf %41, %42 : vector<4x1024xf32>
    %44 = arith.addf %38, %43 : vector<4x1024xf32>
    %c5 = arith.constant 5 : index
    %c0_13 = arith.constant 0 : index
    %45 = vector.load %arg3[%c5, %c0_13] : memref<9x1024xf32, #tpu.memory_space<vmem>>, vector<1x1024xf32>
    %46 = vector.extract_strided_slice %39 {offsets = [1, 0], sizes = [4, 1024], strides = [1, 1]} : vector<6x1024xf32> to vector<4x1024xf32>
    %47 = vector.broadcast %45 : vector<1x1024xf32> to vector<4x1024xf32>
    %48 = arith.mulf %46, %47 : vector<4x1024xf32>
    %49 = arith.addf %44, %48 : vector<4x1024xf32>
    %c8 = arith.constant 8 : index
    %c0_14 = arith.constant 0 : index
    %50 = vector.load %arg3[%c8, %c0_14] : memref<9x1024xf32, #tpu.memory_space<vmem>>, vector<1x1024xf32>
    %51 = vector.extract_strided_slice %39 {offsets = [2, 0], sizes = [4, 1024], strides = [1, 1]} : vector<6x1024xf32> to vector<4x1024xf32>
    %52 = vector.broadcast %50 : vector<1x1024xf32> to vector<4x1024xf32>
    %53 = arith.mulf %51, %52 : vector<4x1024xf32>
    %54 = arith.addf %49, %53 : vector<4x1024xf32>
    %c0_15 = arith.constant 0 : index
    %c0_16 = arith.constant 0 : index
    %c0_17 = arith.constant 0 : index
    %c0_18 = arith.constant 0 : index
    %55 = vector.load %arg5[%c0_15, %c0_16, %c0_17, %c0_18] : memref<1x1x4x1024xf32, #tpu.memory_space<vmem>>, vector<1x1x4x1024xf32>
    %56 = vector.shape_cast %55 : vector<1x1x4x1024xf32> to vector<4x1024xf32>
    %57 = vector.shape_cast %54 : vector<4x1024xf32> to vector<1x1x4x1024xf32>
    tpu.vector_store %arg5[%c0_15, %c0_16, %c0_17, %c0_18], %57 {strides = array<i32>} : memref<1x1x4x1024xf32, #tpu.memory_space<vmem>>, vector<1x1x4x1024xf32>,
    return
  }
  func.func @transform_0(%arg0: i32, %arg1: i32) -> (i32, i32, i32, i32) {
    %c0_i32 = arith.constant 0 : i32
    %c0_i32_0 = arith.constant 0 : i32
    %c0_i32_1 = arith.constant 0 : i32
    return %arg0, %arg1, %c0_i32, %c0_i32_0 : i32, i32, i32, i32
  }
  func.func @transform_1(%arg0: i32, %arg1: i32) -> (i32, i32) {
    %c0_i32 = arith.constant 0 : i32
    %c0_i32_0 = arith.constant 0 : i32
    %c0_i32_1 = arith.constant 0 : i32
    return %c0_i32, %c0_i32_0 : i32, i32
  }
  func.func @transform_2(%arg0: i32, %arg1: i32) -> (i32, i32) {
    %c0_i32 = arith.constant 0 : i32
    %c0_i32_0 = arith.constant 0 : i32
    %c0_i32_1 = arith.constant 0 : i32
    return %c0_i32, %c0_i32_0 : i32, i32
  }
  func.func @transform_3(%arg0: i32, %arg1: i32) -> (i32, i32, i32, i32) {
    %c0_i32 = arith.constant 0 : i32
    %c0_i32_0 = arith.constant 0 : i32
    %c0_i32_1 = arith.constant 0 : i32
    return %arg0, %arg1, %c0_i32, %c0_i32_0 : i32, i32, i32, i32
  }
}

</mosaic_0001>

<bundles_post_ra>
// kernel: tile.18
= control target key start
LH: loop header
LB: loop body
LE: loop exit
PB: predicated region body
PF: predicated region fallthrough
CT: control target
= control target key end

     0   :  { %s22_s0 = inlined_call_operand.vmem [shape: f32[32], index: 0, kind: input, shape index: {}]   ;;  %s23_s1 = inlined_call_operand.vmem [shape: f32[8,32], index: 1, kind: output, shape index: {}]  }
   0x1   :  { %v4_v0 = vld [vmem:[%s22_s0] ss:$0 sm:$0xff] }
   0x2   :  { %5 = vst [vmem:[%s23_s1] sm:$0xff] %v4_v0 }

// kernel: tile.19
= control target key start
LH: loop header
LB: loop body
LE: loop exit
PB: predicated region body
PF: predicated region fallthrough
CT: control target
= control target key end

     0   :  { %s7_s6 = smov 3  ;;  %s46_s9 = smov 96   ;;  %vm4_vm0 = vcmask 261120   ;;  %vm11_vm1 = vcmask 1048320   ;;  %vm18_vm2 = vcmask 785920   ;;  %vm25_vm3 = vcmask 523520   ;;  %s77_s0 = inlined_call_operand.vmem [shape: f32[8,32], index: 0, kind: input, shape index: {}]   ;;  %s78_s1 = inlined_call_operand.vmem [shape: f32[1,256], index: 1, kind: output, shape index: {}]  }
   0x1   :  { %v39_v0 = vld [vmem:[%s77_s0 + $0x3] ss:$4 sm:%s7_s6]   ;;  %s21_s10 = smov 3  ;;  %s14_s13 = smov 3 }
   0x2   :  { %9 = vrot.lane.b32.xlu0 %v39_v0, %s46_s9  ;;  %v41_v1 = vld [vmem:[%s77_s0 + $0x1] ss:$4 sm:%s21_s10]   ;;  %s47_s14 = smov 32   ;;  %s48_s17 = smov 64  }
   0x3   :  { %23 = vrot.lane.b32.xlu1 %v41_v1, %s47_s14  ;;  %v40_v2 = vld [vmem:[%s77_s0 + $0x2] ss:$4 sm:%s14_s13]   ;;  %s2_s18 = smov 3 }
   0x4   :  { %v3_v3 = vld [vmem:[%s77_s0] ss:$4 sm:%s2_s18]  }
   0x5   :  { %5 = vst.msk [vmem:[#allocation0] ss:$8 sm:$0x3] %vm4_vm0, %v3_v3  }
   0xa   :  { %16 = vrot.lane.b32.xlu0 %v40_v2, %s48_s17 }
  0x74   :  { %v10_v4 = vpop.permute.xlu0 %9  }
  0x75   :  { %12 = vst.msk [vmem:[#allocation0] ss:$8 sm:$0x3] %vm11_vm1, %v10_v4   ;;  %v24_v5 = vpop.permute.xlu1 %23  }
  0x7c   :  { %v17_v6 = vpop.permute.xlu0 %16  }
  0x7d   :  { %19 = vst.msk [vmem:[#allocation0] ss:$8 sm:$0x3] %vm18_vm2, %v17_v6  }
  0x7e   :  { %26 = vst.msk [vmem:[#allocation0] ss:$8 sm:$0x3] %vm25_vm3, %v24_v5  }
  0x85   :  { %v29_v7 = vld [vmem:[#allocation0] sm:$0x1]  ;;  %v34_v8 = vld [vmem:[#allocation0 + $0x8] sm:$0x1] }
  0x86   :  { %32 = vst [vmem:[%s78_s1] sm:$0x1] %v29_v7 }
  0x87   :  { %42 = vst [vmem:[%s78_s1 + $0x1] sm:$0x1] %v34_v8 }

// kernel: block_forward.9
= control target key start
LH: loop header
LB: loop body
LE: loop exit
PB: predicated region body
PF: predicated region fallthrough
CT: control target
= control target key end

     0   :  { %s708_s12 = smov 0   ;;  %s710_s13 = smov 0   ;;  %s888_s0 = inlined_call_operand.vmem [shape: f32[2,2,6,320], index: 0, kind: input, shape index: {}]   ;;  %s889_s1 = inlined_call_operand.vmem [shape: f32[9,256], index: 1, kind: input, shape index: {}]   ;;  %s890_s2 = inlined_call_operand.vmem [shape: f32[1,256], index: 2, kind: input, shape index: {}]   ;;  %s891_s3 = inlined_call_operand.vmem [shape: f32[2,2,4,256], index: 3, kind: output, shape index: {}]  }
   0x1   :  { %s712_s14 = smov 0   ;;  %s714_s15 = smov 0  }
   0x2   :  { %s716_s16 = smov 0  }
   0x3 LB: > { %s22_s17 = sadd.s32 1, %s675_s14  ;;  %s25_s18 = sadd.s32 1, %s679_s15  ;;  %s683_s16 = sphi %s716_s16, %s13_s16   ;;  %s679_s15 = sphi %s714_s15, %s895_s15   ;;  %s675_s14 = sphi %s712_s14, %s894_s14   ;;  %s671_s13 = sphi %s710_s13, %s893_s13   ;;  %s667_s12 = sphi %s708_s12, %s892_s12  }
   0x4   : > { %p23_p0 = scmp.ge.s32.totalorder %s22_s17, 2  ;;  %p585_p1 = scmp.ge.s32.totalorder %s683_s16, 1 }
   0x5   : > { %p157_p2 = scmp.lt.s32.totalorder %s683_s16, 5 }
   0x6   : > { %s897_s17 = smov (%p23_p0, %s22_s17), 0  ;;  %s899_s18 = smov (!%p23_p0, %s25_s18), %s679_s15 }
   0x7   : > { %p158_p3 = pnand %p585_p1, %p157_p2  ;;  %p27_p4 = scmp.ge.s32.totalorder %s899_s18, 2 }
   0x8   : > { %s685_s23 = smov (!%p158_p3), 32   ;;  %p189_p5 = scmp.lt.s32.totalorder (!%p158_p3), %s671_s13, 1 }
   0x9   : > { %s901_s18 = smov (%p27_p4, %s899_s18), 0  ;;  %161 = sbr.rel (%p158_p3) target bundleno = 305 (0x131), region = 32 }
   0xa   : > { %p191_p6 = scmp.lt.s32.totalorder (!%p158_p3), %s667_s12, 1  ;;  %s686_s5 = smov (!%p158_p3), 64  }
   0xb   : > { %s687_s20 = smov (!%p158_p3), 96  }
   0xe   : > { %v593_v0 = vld [vmem:[%s889_s1 + $0x4] ss:$8 sm:$0x3]  ;;  %v592_v2 = vld [vmem:[%s889_s1 + $0x1] ss:$8 sm:$0x3] }
   0xf   : > { %v314_v1 = vperm.slane %v593_v0, 0  ;;  %v282_v3 = vperm.slane %v592_v2, 0  ;;  %v594_v4 = vld [vmem:[%s889_s1 + $0x7] ss:$8 sm:$0x3]  ;;  %v315_v6 = vperm.slane %v593_v0, 1 }
  0x10   : > { %v348_v5 = vperm.slane %v594_v4, 0  ;;  %v283_v7 = vperm.slane %v592_v2, 1  ;;  %v349_v8 = vperm.slane %v594_v4, 1  ;;  %v595_v9 = vld [vmem:[%s889_s1 + $0x2] ss:$8 sm:$0x3] }
  0x11   : > { %316 = vrot.lane.b32.xlu1 %v314_v1, %s685_s23  ;;  %284 = vrot.lane.b32.xlu0 %v282_v3, %s685_s23  ;;  %s903_s13 = smov (!%p189_p5, %s671_s13), 1  ;;  %s905_s12 = smov (!%p191_p6, %s667_s12), 1  ;;  %v383_v10 = vperm.slane %v595_v9, 1  ;;  %v382_v11 = vperm.slane %v595_v9, 0  ;;  %vm288_vm0 = vcmask 261120   ;;  %vm388_vm1 = vcmask 523264  }
  0x12   : > { %350 = vrot.lane.b32.xlu2 %v348_v5, %s685_s23  ;;  %v596_v12 = vld [vmem:[%s889_s1 + $0x5] ss:$8 sm:$0x3]  ;;  %s601_s30 = smul.u32 6, %s903_s13  ;;  %vm272_vm2 = vcmask 785408   ;;  %s587_s29 = sshll.u32 %s905_s12, 1 }
  0x13   : > { %v414_v13 = vperm.slane %v596_v12, 0  ;;  %s600_s4 = smul.u32 3, %s905_s12  ;;  %v597_v14 = vld [vmem:[%s889_s1 + $0x10] ss:$8 sm:$0x3]  ;;  %v415_v16 = vperm.slane %v596_v12, 1 }
  0x14   : > { %v448_v15 = vperm.slane %v597_v14, 0  ;;  %v449_v17 = vperm.slane %v597_v14, 1  ;;  %vm482_vm3 = vcmask 1043456  }
  0x15   : > { %s195_s8 = sadd.s32 %s601_s30, %s600_s4  ;;  %s588_s30 = sshll.u32 %s903_s13, 2 }
  0x16   : > { %s586_s9 = sshll.u32 %s195_s8, 3  ;;  %s204_s4 = sadd.s32 %s588_s30, %s587_s29 }
  0x17   : > { %s197_s19 = scalar_lea.vmem %s888_s0, %s586_s9 }
  0x18   : > { %v779_v18 = vld [vmem:[%s197_s19 + $0x10] sm:$0x3f]  ;;  %v783_v20 = vld [vmem:[%s197_s19 + $0x8] sm:$0x3f]  ;;  %v785_v21 = vld [vmem:[%s197_s19] sm:$0x3f] }
  0x19   : > { %318 = vrot.lane.b32.xlu1 %v315_v6, %s685_s23  ;;  %286 = vrot.lane.b32.xlu0 %v283_v7, %s685_s23  ;;  %v265_v19 = vrot.slane %v779_v18, 1  ;;  %v264_v22 = vrot.slane %v783_v20, 1  ;;  %v263_v23 = vrot.slane %v785_v21, 1 }
  0x1a   : > { %352 = vrot.lane.b32.xlu2 %v349_v8, %s685_s23 }
  0x21   : > { %386 = vrot.lane.b32.xlu1 %v383_v10, %s686_s5  ;;  %384 = vrot.lane.b32.xlu0 %v382_v11, %s686_s5 }
  0x22   : > { %416 = vrot.lane.b32.xlu2 %v414_v13, %s686_s5 }
  0x29   : > { %450 = vrot.lane.b32.xlu1 %v448_v15, %s686_s5  ;;  %418 = vrot.lane.b32.xlu0 %v415_v16, %s686_s5  ;;  %v216_v15 = vld [vmem:[%s889_s1] ss:$8 sm:$0x3]  ;;  %v590_v16 = vld [vmem:[%s889_s1 + $0x3] ss:$8 sm:$0x3] }
  0x2a   : > { %452 = vrot.lane.b32.xlu2 %v449_v17, %s686_s5 }
  0x31   : > { %268 = vrot.lane.b32.xlu1 %v264_v22, %s687_s20  ;;  %266 = vrot.lane.b32.xlu0 %v263_v23, %s687_s20  ;;  %v210_v23 = vld [vmem:[%s890_s2] sm:$0x3] }
  0x32   : > { %270 = vrot.lane.b32.xlu2 %v265_v19, %s687_s20  ;;  %v230_v19 = vperm.slane %v590_v16, 1 }
  0x6c   : > { %v351_v32 = vpop.permute.xlu2 %350 }
  0x6d   : > { %v358_v50 = vmul.f32 %v351_v32, %v785_v21 }
  0x6f   : > { %v364_v54 = vrot.slane %v358_v50, 2 }
  0x74   : > { %v353_v40 = vpop.permute.xlu2 %352 }
  0x75   : > { %v354_v47 = vsel %vm288_vm0, %v351_v32, %v353_v40  ;;  %v360_v48 = vmul.f32 %v353_v40, %v779_v18  ;;  %v212_v32 = vperm.slane %v210_v23, 0 }
  0x76   : > { %v359_v51 = vmul.f32 %v354_v47, %v783_v20 }
  0x77   : > { %v366_v53 = vrot.slane %v360_v48, 2 }
  0x78   : > { %v365_v56 = vrot.slane %v359_v51, 2 }
  0x7c   : > { %v417_v49 = vpop.permute.xlu2 %416 }
  0x7d   : > { %v424_v57 = vmul.f32 %v417_v49, %v785_v21 }
  0x7f   : > { %v430_v62 = vrot.slane %v424_v57, 1 }
  0x83   : > { %v317_v24 = vpop.permute.xlu1 %316  ;;  %v285_v25 = vpop.permute.xlu0 %284 }
  0x84   : > { %v293_v26 = vmul.f32 %v285_v25, %v785_v21  ;;  %v324_v41 = vmul.f32 %v317_v24, %v785_v21  ;;  %v453_v60 = vpop.permute.xlu2 %452 }
  0x85   : > { %v460_v2 = vmul.f32 %v453_v60, %v779_v18 }
  0x86   : > { %299 = vrot.lane.b32.xlu2 %v293_v26, %s687_s20  ;;  %v330_v44 = vrot.slane %v324_v41, 1  ;;  %v218_v26 = vperm.slane %v216_v15, 0 }
  0x87   : > { %v466_v5 = vrot.slane %v460_v2, 2 }
  0x8b   : > { %v319_v27 = vpop.permute.xlu1 %318  ;;  %v287_v28 = vpop.permute.xlu0 %286 }
  0x8c   : > { %v289_v29 = vsel %vm288_vm0, %v285_v25, %v287_v28  ;;  %v295_v30 = vmul.f32 %v287_v28, %v779_v18  ;;  %v320_v39 = vsel %vm288_vm0, %v317_v24, %v319_v27  ;;  %v326_v42 = vmul.f32 %v319_v27, %v779_v18  ;;  %v271_v8 = vpop.permute.xlu2 %270  ;;  %v591_v24 = vld [vmem:[%s889_s1 + $0x6] ss:$8 sm:$0x3] }
  0x8d   : > { %v294_v31 = vmul.f32 %v289_v29, %v783_v20  ;;  %v325_v43 = vmul.f32 %v320_v39, %v783_v20  ;;  %v229_v27 = vperm.slane %v590_v16, 0  ;;  %v213_v28 = vperm.slane %v210_v23, 1 }
  0x8e   : > { %303 = vrot.lane.b32.xlu1 %v295_v30, %s687_s20  ;;  %v332_v45 = vrot.slane %v326_v42, 1  ;;  %v247_v29 = vperm.slane %v591_v24, 1 }
  0x8f   : > { %301 = vrot.lane.b32.xlu0 %v294_v31, %s687_s20  ;;  %v331_v46 = vrot.slane %v325_v43, 1  ;;  %v234_v31 = vmul.f32 %v230_v19, %v783_v20 }
  0x90   : > { %v251_v39 = vmul.f32 %v247_v29, %v783_v20 }
  0x93   : > { %v387_v33 = vpop.permute.xlu1 %386  ;;  %v385_v35 = vpop.permute.xlu0 %384 }
  0x94   : > { %v395_v34 = vmul.f32 %v387_v33, %v779_v18  ;;  %v389_v36 = vsel %vm388_vm1, %v385_v35, %v387_v33  ;;  %v393_v37 = vmul.f32 %v385_v35, %v785_v21  ;;  %v246_v33 = vperm.slane %v591_v24, 0 }
  0x95   : > { %v394_v38 = vmul.f32 %v389_v36, %v783_v20  ;;  %v233_v35 = vmul.f32 %v229_v27, %v785_v21 }
  0x96   : > { %403 = vrot.lane.b32.xlu1 %v395_v34, %s686_s5  ;;  %399 = vrot.lane.b32.xlu2 %v393_v37, %s686_s5  ;;  %v222_v34 = vmul.f32 %v218_v26, %v785_v21  ;;  %v250_v43 = vmul.f32 %v246_v33, %v785_v21 }
  0x97   : > { %401 = vrot.lane.b32.xlu0 %v394_v38, %s686_s5  ;;  %v238_v38 = vrot.slane %v234_v31, 1  ;;  %v237_v42 = vrot.slane %v233_v35, 1 }
  0x98   : > { %v224_v41 = vadd.f32 %v222_v34, %v212_v32  ;;  %v254_v48 = vrot.slane %v250_v43, 2 }
  0x9a   : > { %v241_v47 = vadd.f32 %v237_v42, %v224_v41 }
  0x9b   : > { %v419_v52 = vpop.permute.xlu0 %418  ;;  %v451_v61 = vpop.permute.xlu1 %450 }
  0x9c   : > { %v420_v55 = vsel %vm388_vm1, %v417_v49, %v419_v52  ;;  %v426_v58 = vmul.f32 %v419_v52, %v779_v18  ;;  %v454_v1 = vsel %vm388_vm1, %v451_v61, %v453_v60  ;;  %v458_v3 = vmul.f32 %v451_v61, %v785_v21 }
  0x9d   : > { %v425_v59 = vmul.f32 %v420_v55, %v783_v20  ;;  %v459_v4 = vmul.f32 %v454_v1, %v783_v20  ;;  %v219_v18 = vperm.slane %v216_v15, 1 }
  0x9e   : > { %337 = vrot.lane.b32.xlu1 %v332_v45, %s687_s20  ;;  %333 = vrot.lane.b32.xlu2 %v330_v44, %s687_s20  ;;  %v432_v63 = vrot.slane %v426_v58, 1  ;;  %v464_v6 = vrot.slane %v458_v3, 2  ;;  %v255_v45 = vrot.slane %v251_v39, 2 }
  0x9f   : > { %335 = vrot.lane.b32.xlu0 %v331_v46, %s687_s20  ;;  %v431_v0 = vrot.slane %v425_v59, 1  ;;  %v465_v7 = vrot.slane %v459_v4, 2  ;;  %v223_v30 = vmul.f32 %v219_v18, %v783_v20 }
  0xa1   : > { %v225_v37 = vadd.f32 %v223_v30, %v213_v28 }
  0xa3   : > { %v269_v9 = vpop.permute.xlu1 %268  ;;  %v267_v10 = vpop.permute.xlu0 %266  ;;  %v242_v44 = vadd.f32 %v238_v38, %v225_v37 }
  0xa4   : > { %v274_v52 = vsel %vm272_vm2, %v269_v9, %v271_v8 }
  0xa5   : > { %v259_v50 = vadd.f32 %v255_v45, %v242_v44 }
  0xa6   : > { %371 = vrot.lane.b32.xlu1 %v366_v53, %s687_s20  ;;  %367 = vrot.lane.b32.xlu2 %v364_v54, %s687_s20  ;;  %v258_v53 = vadd.f32 %v254_v48, %v241_v47  ;;  %v273_v54 = vsel %vm272_vm2, %v267_v10, %v269_v9 }
  0xa7   : > { %369 = vrot.lane.b32.xlu0 %v365_v56, %s687_s20  ;;  %v278_v55 = vadd.f32 %v274_v52, %v259_v50 }
  0xa8   : > { %v277_v57 = vadd.f32 %v273_v54, %v258_v53 }
  0xae   : > { %437 = vrot.lane.b32.xlu1 %v432_v63, %s686_s5  ;;  %433 = vrot.lane.b32.xlu2 %v430_v62, %s686_s5 }
  0xaf   : > { %435 = vrot.lane.b32.xlu0 %v431_v0, %s686_s5 }
  0xb6   : > { %471 = vrot.lane.b32.xlu1 %v466_v5, %s686_s5  ;;  %467 = vrot.lane.b32.xlu2 %v464_v6, %s686_s5 }
  0xb7   : > { %469 = vrot.lane.b32.xlu0 %v465_v7, %s686_s5  ;;  %s589_s5 = sshll.u32 %s204_s4, 2 }
  0xb8   : > { %s206_s6 = scalar_lea.vmem %s891_s3, %s589_s5 }
  0xe0   : > { %v300_v11 = vpop.permute.xlu2 %299 }
  0xf0   : > { %v833_v13 = vpop.permute.xlu2 %399 }
  0xf8   : > { %v334_v25 = vpop.permute.xlu2 %333 }
 0x100   : > { %v304_v12 = vpop.permute.xlu1 %303  ;;  %v368_v46 = vpop.permute.xlu2 %367 }
 0x101   : > { %v302_v14 = vpop.permute.xlu0 %301 }
 0x102   : > { %v306_v20 = vsel %vm272_vm2, %v302_v14, %v304_v12  ;;  %v305_v21 = vsel %vm272_vm2, %v300_v11, %v302_v14 }
 0x103   : > { %v310_v58 = vadd.f32 %v306_v20, %v278_v55  ;;  %v309_v63 = vadd.f32 %v305_v21, %v277_v57 }
 0x108   : > { %v404_v17 = vpop.permute.xlu1 %403  ;;  %v434_v59 = vpop.permute.xlu2 %433 }
 0x109   : > { %v402_v22 = vpop.permute.xlu0 %401 }
 0x10a   : > { %v406_v6 = vsel %vm388_vm1, %v402_v22, %v404_v17  ;;  %v405_v9 = vsel %vm388_vm1, %v833_v13, %v402_v22 }
 0x110   : > { %v338_v36 = vpop.permute.xlu1 %337  ;;  %v468_v12 = vpop.permute.xlu2 %467 }
 0x111   : > { %v336_v40 = vpop.permute.xlu0 %335 }
 0x112   : > { %v340_v56 = vsel %vm272_vm2, %v336_v40, %v338_v36  ;;  %v339_v60 = vsel %vm272_vm2, %v334_v25, %v336_v40 }
 0x113   : > { %v344_v0 = vadd.f32 %v340_v56, %v310_v58  ;;  %v343_v3 = vadd.f32 %v339_v60, %v309_v63 }
 0x118   : > { %v372_v49 = vpop.permute.xlu1 %371 }
 0x119   : > { %v370_v51 = vpop.permute.xlu0 %369 }
 0x11a   : > { %v374_v61 = vsel %vm272_vm2, %v370_v51, %v372_v49  ;;  %v373_v2 = vsel %vm272_vm2, %v368_v46, %v370_v51 }
 0x11b   : > { %v378_v4 = vadd.f32 %v374_v61, %v344_v0  ;;  %v377_v5 = vadd.f32 %v373_v2, %v343_v3 }
 0x11d   : > { %v410_v8 = vadd.f32 %v406_v6, %v378_v4  ;;  %v409_v14 = vadd.f32 %v405_v9, %v377_v5 }
 0x120   : > { %v438_v62 = vpop.permute.xlu1 %437 }
 0x121   : > { %v436_v1 = vpop.permute.xlu0 %435 }
 0x122   : > { %v440_v7 = vsel %vm388_vm1, %v436_v1, %v438_v62  ;;  %v439_v10 = vsel %vm388_vm1, %v434_v59, %v436_v1 }
 0x123   : > { %v444_v15 = vadd.f32 %v440_v7, %v410_v8  ;;  %v443_v17 = vadd.f32 %v439_v10, %v409_v14 }
 0x128   : > { %v472_v11 = vpop.permute.xlu1 %471 }
 0x129   : > { %v470_v16 = vpop.permute.xlu0 %469 }
 0x12a   : > { %v473_v18 = vsel %vm388_vm1, %v468_v12, %v470_v16  ;;  %v474_v19 = vsel %vm388_vm1, %v470_v16, %v472_v11 }
 0x12b   : > { %v478_v23 = vadd.f32 %v474_v19, %v444_v15  ;;  %v477_v13 = vadd.f32 %v473_v18, %v443_v17 }
 0x12d   : > { %v481_v22 = vrot.slane %v478_v23, 4 }
 0x12f   : > { %v483_v24 = vsel %vm482_vm3, %v477_v13, %v481_v22 }
 0x130   : > { %485 = vst [vmem:[%s206_s6] sm:$0xff] %v483_v24 }
 0x131 PF: > { %s13_s16 = sadd.s32 1, %s683_s16   ;;  %s892_s12 = smov %s675_s14 }
 0x132   : > { %p10_p7 = scmp.ge.s32.totalorder %s13_s16, 6   ;;  %s893_s13 = smov %s679_s15 }
 0x133   : > { %s894_s14 = smov %s897_s17  ;;  %s895_s15 = smov %s901_s18 }
 0x134   :  { %12 = sbr.rel (!%p10_p7) target bundleno = 3 (0x3), region = 70 }

// kernel: block_forward.11
= control target key start
LH: loop header
LB: loop body
LE: loop exit
PB: predicated region body
PF: predicated region fallthrough
CT: control target
= control target key end

     0   :  { %s487_s15 = smov 0   ;;  %s556_s0 = inlined_call_operand.vmem [shape: f32[128,32], index: 0, kind: input, shape index: {}]   ;;  %s557_s1 = inlined_call_operand.vmem [shape: f32[128,32], index: 1, kind: input, shape index: {}]   ;;  %s558_s2 = inlined_call_operand.vmem [shape: f32[1,32], index: 2, kind: input, shape index: {}]   ;;  %s559_s3 = inlined_call_operand.vmem [shape: f32[1,32], index: 3, kind: input, shape index: {}]   ;;  %s560_s4 = inlined_call_operand.vmem [shape: f32[128,32], index: 4, kind: output, shape index: {}]  }
   0x1 LB: > { %s419_s16 = sadd.s32 4294967295, %s459_s15   ;;  %p423_p0 = scmp.ge.s32.totalorder %s459_s15, 1  ;;  %s459_s15 = sphi %s487_s15, %s14_s15  }
   0x2   : > { %p174_p1 = scmp.lt.s32.totalorder %s459_s15, 5 }
   0x4   : > { %p175_p2 = pnand %p423_p0, %p174_p1 }
   0x5   : > { %s424_s17 = sshll.u32 (!%p175_p2), %s419_s16, 2 }
   0x6   : > { %178 = sbr.rel (%p175_p2) target bundleno = 295 (0x127), region = 36  ;;  %p206_p3 = scmp.lt.s32.totalorder (!%p175_p2), %s424_s17, 15 }
   0xb   : > { %s562_s17 = smov (!%p206_p3, %s424_s17), 15  ;;  %vm233_vm0 = vcmask 261120   ;;  %v461_v8 = vmov 32.0   ;;  %v441_v61 = vld [vmem:[%s558_s2] ss:$0 sm:$0xff] }
   0xc   : > { %s495_s18 = sshll.u32 %s562_s17, 3  ;;  %443 = vrcp.f32 %v461_v8 }
   0xd   : > { %s209_s21 = scalar_lea.vmem %s556_s0, %s495_s18  ;;  %s532_s26 = scalar_lea.vmem %s557_s1, %s495_s18 }
   0xe   : > { %v225_v0 = vld [vmem:[%s209_s21 + $0x10] sm:$0xff]  ;;  %v223_v2 = vld [vmem:[%s209_s21] sm:$0xff]  ;;  %v226_v4 = vld [vmem:[%s209_s21 + $0x18] sm:$0xff]  ;;  %s221_s5 = scalar_lea.vmem %s560_s4, %s495_s18 }
   0xf   : > { %v240_v1 = vsel %vm233_vm0, %v225_v0, 0.0  ;;  %v234_v3 = vsel %vm233_vm0, %v223_v2, 0.0  ;;  %v224_v5 = vld [vmem:[%s209_s21 + $0x8] sm:$0xff]  ;;  %v243_v6 = vsel %vm233_vm0, %v226_v4, 0.0 }
  0x10   : > { %241 = vadd.xlane.f32.xlu1 %v240_v1  ;;  %235 = vadd.xlane.f32.xlu0 %v234_v3  ;;  %v237_v7 = vsel %vm233_vm0, %v224_v5, 0.0 }
  0x12   : > { %v444_v9 = vpop.eup %443 }
  0x13   : > { %v247_v10 = vmul.f32 32.0, %v444_v9  ;;  %vm251_vm1 = vweird.f32 %v444_v9 }
  0x15   : > { %v248_v11 = vsub.f32 1.0, %v247_v10  ;;  %v229_v10 = vld [vmem:[%s532_s26 + $0x10] sm:$0xff] }
  0x17   : > { %v249_v12 = vmul.f32 %v444_v9, %v248_v11 }
  0x18   : > { %244 = vadd.xlane.f32.xlu1 %v243_v6  ;;  %238 = vadd.xlane.f32.xlu0 %v237_v7 }
  0x19   : > { %v250_v13 = vadd.f32 %v444_v9, %v249_v12 }
  0x1b   : > { %v252_v14 = vsel %vm251_vm1, %v444_v9, %v250_v13  ;;  %v227_v13 = vld [vmem:[%s532_s26] sm:$0xff] }
  0x83   : > { %v242_v15 = vpop.xlane.xlu1 %241  ;;  %v236_v17 = vpop.xlane.xlu0 %235 }
  0x84   : > { %v255_v16 = vmul.f32 %v252_v14, %v242_v15  ;;  %v253_v18 = vmul.f32 %v252_v14, %v236_v17 }
  0x86   : > { %v505_v19 = vsub.f32 %v225_v0, %v255_v16  ;;  %v507_v20 = vsub.f32 %v223_v2, %v253_v18  ;;  %v442_v2 = vld [vmem:[%s559_s3] ss:$0 sm:$0xff] }
  0x88   : > { %v263_v21 = vmul.f32 %v505_v19, %v505_v19  ;;  %v261_v22 = vmul.f32 %v507_v20, %v507_v20 }
  0x8a   : > { %v271_v23 = vsel %vm233_vm0, %v263_v21, 0.0  ;;  %v265_v25 = vsel %vm233_vm0, %v261_v22, 0.0 }
  0x8b   : > { %v245_v24 = vpop.xlane.xlu1 %244  ;;  %272 = vadd.xlane.f32.xlu0 %v271_v23  ;;  %266 = vadd.xlane.f32.xlu2 %v265_v25  ;;  %v239_v27 = vpop.xlane.xlu0 %238 }
  0x8c   : > { %v256_v26 = vmul.f32 %v252_v14, %v245_v24  ;;  %v254_v28 = vmul.f32 %v252_v14, %v239_v27 }
  0x8e   : > { %v515_v29 = vsub.f32 %v226_v4, %v256_v26  ;;  %v517_v30 = vsub.f32 %v224_v5, %v254_v28  ;;  %v230_v26 = vld [vmem:[%s532_s26 + $0x18] sm:$0xff]  ;;  %v228_v28 = vld [vmem:[%s532_s26 + $0x8] sm:$0xff] }
  0x90   : > { %v264_v31 = vmul.f32 %v515_v29, %v515_v29  ;;  %v262_v32 = vmul.f32 %v517_v30, %v517_v30 }
  0x92   : > { %v274_v33 = vsel %vm233_vm0, %v264_v31, 0.0  ;;  %v268_v34 = vsel %vm233_vm0, %v262_v32, 0.0 }
  0x93   : > { %275 = vadd.xlane.f32.xlu1 %v274_v33  ;;  %269 = vadd.xlane.f32.xlu2 %v268_v34 }
  0xfe   : > { %v273_v35 = vpop.xlane.xlu0 %272  ;;  %v267_v36 = vpop.xlane.xlu2 %266 }
  0xff   : > { %v279_v37 = vmul.f32 %v273_v35, %v252_v14  ;;  %v277_v38 = vmul.f32 %v267_v36, %v252_v14 }
 0x101   : > { %v283_v39 = vadd.f32 1e-06, %v279_v37  ;;  %v281_v40 = vadd.f32 1e-06, %v277_v38 }
 0x103   : > { %445 = vrsqrt.f32 %v283_v39  ;;  %vm311_vm4 = vweird.f32 %v283_v39  ;;  %vm291_vm5 = vweird.f32 %v281_v40 }
 0x104   : > { %447 = vrsqrt.f32 %v281_v40 }
 0x106   : > { %v276_v41 = vpop.xlane.xlu1 %275  ;;  %v270_v43 = vpop.xlane.xlu2 %269 }
 0x107   : > { %v280_v42 = vmul.f32 %v276_v41, %v252_v14  ;;  %v278_v44 = vmul.f32 %v270_v43, %v252_v14 }
 0x109   : > { %v446_v45 = vpop.eup %445  ;;  %v284_v46 = vadd.f32 1e-06, %v280_v42  ;;  %v282_v49 = vadd.f32 1e-06, %v278_v44 }
 0x10a   : > { %v448_v47 = vpop.eup %447  ;;  %v306_v48 = vmul.f32 %v446_v45, %v283_v39  ;;  %vm312_vm2 = vweird.f32 %v446_v45 }
 0x10b   : > { %v286_v50 = vmul.f32 %v448_v47, %v281_v40  ;;  %449 = vrsqrt.f32 %v284_v46  ;;  %vm292_vm3 = vweird.f32 %v448_v47  ;;  %vm313_vm6 = vmor %vm311_vm4, %vm312_vm2  ;;  %vm321_vm10 = vweird.f32 %v284_v46 }
 0x10c   : > { %v307_v51 = vmul.f32 %v446_v45, %v306_v48  ;;  %451 = vrsqrt.f32 %v282_v49  ;;  %vm293_vm7 = vmor %vm291_vm5, %vm292_vm3  ;;  %vm301_vm12 = vweird.f32 %v282_v49 }
 0x10d   : > { %v287_v52 = vmul.f32 %v448_v47, %v286_v50 }
 0x10e   : > { %v308_v53 = vmul.f32 0.5, %v307_v51 }
 0x10f   : > { %v288_v54 = vmul.f32 0.5, %v287_v52 }
 0x110   : > { %v309_v55 = vsub.f32 1.5, %v308_v53 }
 0x111   : > { %v450_v56 = vpop.eup %449  ;;  %v289_v57 = vsub.f32 1.5, %v288_v54 }
 0x112   : > { %v452_v58 = vpop.eup %451  ;;  %v310_v59 = vmul.f32 %v446_v45, %v309_v55  ;;  %v316_v60 = vmul.f32 %v450_v56, %v284_v46  ;;  %vm322_vm8 = vweird.f32 %v450_v56 }
 0x113   : > { %v290_v62 = vmul.f32 %v448_v47, %v289_v57  ;;  %v296_v63 = vmul.f32 %v452_v58, %v282_v49  ;;  %vm302_vm9 = vweird.f32 %v452_v58  ;;  %vm323_vm11 = vmor %vm321_vm10, %vm322_vm8 }
 0x114   : > { %v314_v0 = vsel %vm313_vm6, %v446_v45, %v310_v59  ;;  %v317_v1 = vmul.f32 %v450_v56, %v316_v60  ;;  %vm303_vm13 = vmor %vm301_vm12, %vm302_vm9 }
 0x115   : > { %v294_v3 = vsel %vm293_vm7, %v448_v47, %v290_v62  ;;  %v327_v4 = vmul.f32 %v314_v0, %v505_v19  ;;  %v297_v5 = vmul.f32 %v452_v58, %v296_v63 }
 0x116   : > { %v325_v6 = vmul.f32 %v294_v3, %v507_v20  ;;  %v318_v7 = vmul.f32 0.5, %v317_v1 }
 0x117   : > { %v334_v8 = vmul.f32 %v441_v61, %v327_v4  ;;  %v298_v9 = vmul.f32 0.5, %v297_v5 }
 0x118   : > { %v332_v11 = vmul.f32 %v441_v61, %v325_v6  ;;  %v319_v12 = vsub.f32 1.5, %v318_v7 }
 0x119   : > { %v341_v14 = vadd.f32 %v442_v2, %v334_v8  ;;  %v299_v15 = vsub.f32 1.5, %v298_v9 }
 0x11a   : > { %v339_v16 = vadd.f32 %v442_v2, %v332_v11  ;;  %v320_v17 = vmul.f32 %v450_v56, %v319_v12 }
 0x11b   : > { %v345_v18 = vadd.f32 %v341_v14, %v229_v10  ;;  %v300_v19 = vmul.f32 %v452_v58, %v299_v15 }
 0x11c   : > { %v343_v20 = vadd.f32 %v339_v16, %v227_v13  ;;  %v324_v21 = vsel %vm323_vm11, %v450_v56, %v320_v17 }
 0x11d   : > { %349 = vst.msk [vmem:[%s221_s5 + $0x10] sm:$0xff] %vm233_vm0, %v345_v18  ;;  %v328_v22 = vmul.f32 %v324_v21, %v515_v29  ;;  %v304_v23 = vsel %vm303_vm13, %v452_v58, %v300_v19 }
 0x11e   : > { %347 = vst.msk [vmem:[%s221_s5] sm:$0xff] %vm233_vm0, %v343_v20  ;;  %v326_v24 = vmul.f32 %v304_v23, %v517_v30 }
 0x11f   : > { %v335_v25 = vmul.f32 %v441_v61, %v328_v22 }
 0x120   : > { %v333_v27 = vmul.f32 %v441_v61, %v326_v24 }
 0x121   : > { %v342_v31 = vadd.f32 %v442_v2, %v335_v25 }
 0x122   : > { %v340_v32 = vadd.f32 %v442_v2, %v333_v27 }
 0x123   : > { %v346_v33 = vadd.f32 %v342_v31, %v230_v26 }
 0x124   : > { %v344_v34 = vadd.f32 %v340_v32, %v228_v28 }
 0x125   : > { %350 = vst.msk [vmem:[%s221_s5 + $0x18] sm:$0xff] %vm233_vm0, %v346_v33 }
 0x126   : > { %348 = vst.msk [vmem:[%s221_s5 + $0x8] sm:$0xff] %vm233_vm0, %v344_v34 }
 0x127 PF: > { %s14_s15 = sadd.s32 1, %s459_s15  }
 0x128   : > { %p11_p4 = scmp.ge.s32.totalorder %s14_s15, 6  }
 0x12a   :  { %13 = sbr.rel (!%p11_p4) target bundleno = 1 (0x1), region = 69 }

// kernel: block_forward.13
= control target key start
LH: loop header
LB: loop body
LE: loop exit
PB: predicated region body
PF: predicated region fallthrough
CT: control target
= control target key end

     0   :  { %s563_s18 = smov 0   ;;  %s636_s0 = inlined_call_operand.vmem [shape: f32[128,32], index: 0, kind: input, shape index: {}]   ;;  %s637_s1 = inlined_call_operand.vmem [shape: f32[128,32], index: 1, kind: input, shape index: {}]   ;;  %s638_s2 = inlined_call_operand.vmem [shape: f32[128,32], index: 2, kind: input, shape index: {}]   ;;  %s639_s3 = inlined_call_operand.vmem [shape: f32[1,32], index: 3, kind: input, shape index: {}]   ;;  %s640_s4 = inlined_call_operand.vmem [shape: f32[1,32], index: 4, kind: input, shape index: {}]   ;;  %s641_s5 = inlined_call_operand.vmem [shape: f32[128,32], index: 5, kind: output, shape index: {}]  }
   0x1 LB: > { %s488_s19 = sadd.s32 4294967295, %s530_s18   ;;  %p492_p0 = scmp.ge.s32.totalorder %s530_s18, 1  ;;  %s530_s18 = sphi %s563_s18, %s15_s18  }
   0x2   : > { %p210_p1 = scmp.lt.s32.totalorder %s530_s18, 5 }
   0x4   : > { %p211_p2 = pnand %p492_p0, %p210_p1 }
   0x5   : > { %s493_s20 = sshll.u32 (!%p211_p2), %s488_s19, 2 }
   0x6   : > { %214 = sbr.rel (%p211_p2) target bundleno = 298 (0x12a), region = 40  ;;  %p249_p3 = scmp.lt.s32.totalorder (!%p211_p2), %s493_s20, 15 }
   0xb   : > { %s643_s20 = smov (!%p249_p3, %s493_s20), 15  ;;  %vm290_vm0 = vcmask 261120   ;;  %v532_v16 = vmov 32.0  }
   0xc   : > { %s571_s21 = sshll.u32 %s643_s20, 3  ;;  %514 = vrcp.f32 %v532_v16 }
   0xd   : > { %s252_s24 = scalar_lea.vmem %s636_s0, %s571_s21  ;;  %s258_s27 = scalar_lea.vmem %s637_s1, %s571_s21 }
   0xe   : > { %v274_v0 = vld [vmem:[%s252_s24 + $0x10] sm:$0xff]  ;;  %v272_v2 = vld [vmem:[%s252_s24] sm:$0xff]  ;;  %v275_v6 = vld [vmem:[%s252_s24 + $0x18] sm:$0xff]  ;;  %s612_s7 = scalar_lea.vmem %s638_s2, %s571_s21  ;;  %s270_s12 = scalar_lea.vmem %s641_s5, %s571_s21 }
   0xf   : > { %v278_v1 = vld [vmem:[%s258_s27 + $0x10] sm:$0xff]  ;;  %v276_v4 = vld [vmem:[%s258_s27] sm:$0xff]  ;;  %v279_v7 = vld [vmem:[%s258_s27 + $0x18] sm:$0xff] }
  0x10   : > { %v282_v3 = vadd.f32 %v278_v1, %v274_v0  ;;  %v280_v5 = vadd.f32 %v276_v4, %v272_v2  ;;  %v273_v9 = vld [vmem:[%s252_s24 + $0x8] sm:$0xff]  ;;  %v283_v12 = vadd.f32 %v279_v7, %v275_v6 }
  0x11   : > { %v277_v10 = vld [vmem:[%s258_s27 + $0x8] sm:$0xff] }
  0x12   : > { %v297_v8 = vsel %vm290_vm0, %v282_v3, 0.0  ;;  %v291_v11 = vsel %vm290_vm0, %v280_v5, 0.0  ;;  %v281_v13 = vadd.f32 %v277_v10, %v273_v9  ;;  %v300_v14 = vsel %vm290_vm0, %v283_v12, 0.0  ;;  %v515_v17 = vpop.eup %514  ;;  %v513_v10 = vld [vmem:[%s640_s4] ss:$0 sm:$0xff] }
  0x13   : > { %298 = vadd.xlane.f32.xlu1 %v297_v8  ;;  %292 = vadd.xlane.f32.xlu0 %v291_v11  ;;  %v304_v18 = vmul.f32 32.0, %v515_v17  ;;  %vm308_vm1 = vweird.f32 %v515_v17 }
  0x14   : > { %v294_v15 = vsel %vm290_vm0, %v281_v13, 0.0 }
  0x15   : > { %v305_v19 = vsub.f32 1.0, %v304_v18 }
  0x17   : > { %v306_v20 = vmul.f32 %v515_v17, %v305_v19  ;;  %v286_v19 = vld [vmem:[%s612_s7 + $0x10] sm:$0xff] }
  0x19   : > { %v307_v21 = vadd.f32 %v515_v17, %v306_v20 }
  0x1b   : > { %301 = vadd.xlane.f32.xlu1 %v300_v14  ;;  %295 = vadd.xlane.f32.xlu0 %v294_v15  ;;  %v309_v22 = vsel %vm308_vm1, %v515_v17, %v307_v21  ;;  %v284_v21 = vld [vmem:[%s612_s7] sm:$0xff] }
  0x86   : > { %v299_v23 = vpop.xlane.xlu1 %298  ;;  %v293_v25 = vpop.xlane.xlu0 %292 }
  0x87   : > { %v312_v24 = vmul.f32 %v309_v22, %v299_v23  ;;  %v310_v26 = vmul.f32 %v309_v22, %v293_v25 }
  0x89   : > { %v585_v27 = vsub.f32 %v282_v3, %v312_v24  ;;  %v587_v28 = vsub.f32 %v280_v5, %v310_v26  ;;  %v512_v5 = vld [vmem:[%s639_s3] ss:$0 sm:$0xff] }
  0x8b   : > { %v320_v29 = vmul.f32 %v585_v27, %v585_v27  ;;  %v318_v30 = vmul.f32 %v587_v28, %v587_v28 }
  0x8d   : > { %v328_v31 = vsel %vm290_vm0, %v320_v29, 0.0  ;;  %v322_v33 = vsel %vm290_vm0, %v318_v30, 0.0 }
  0x8e   : > { %v302_v32 = vpop.xlane.xlu1 %301  ;;  %329 = vadd.xlane.f32.xlu0 %v328_v31  ;;  %323 = vadd.xlane.f32.xlu2 %v322_v33  ;;  %v296_v35 = vpop.xlane.xlu0 %295 }
  0x8f   : > { %v313_v34 = vmul.f32 %v309_v22, %v302_v32  ;;  %v311_v36 = vmul.f32 %v309_v22, %v296_v35 }
  0x91   : > { %v595_v37 = vsub.f32 %v283_v12, %v313_v34  ;;  %v597_v38 = vsub.f32 %v281_v13, %v311_v36  ;;  %v287_v34 = vld [vmem:[%s612_s7 + $0x18] sm:$0xff] }
  0x93   : > { %v321_v39 = vmul.f32 %v595_v37, %v595_v37  ;;  %v319_v40 = vmul.f32 %v597_v38, %v597_v38 }
  0x95   : > { %v331_v41 = vsel %vm290_vm0, %v321_v39, 0.0  ;;  %v325_v42 = vsel %vm290_vm0, %v319_v40, 0.0  ;;  %v285_v39 = vld [vmem:[%s612_s7 + $0x8] sm:$0xff] }
  0x96   : > { %332 = vadd.xlane.f32.xlu1 %v331_v41  ;;  %326 = vadd.xlane.f32.xlu2 %v325_v42 }
 0x101   : > { %v330_v43 = vpop.xlane.xlu0 %329  ;;  %v324_v44 = vpop.xlane.xlu2 %323 }
 0x102   : > { %v336_v45 = vmul.f32 %v330_v43, %v309_v22  ;;  %v334_v46 = vmul.f32 %v324_v44, %v309_v22 }
 0x104   : > { %v340_v47 = vadd.f32 1e-06, %v336_v45  ;;  %v338_v48 = vadd.f32 1e-06, %v334_v46 }
 0x106   : > { %516 = vrsqrt.f32 %v340_v47  ;;  %vm368_vm4 = vweird.f32 %v340_v47  ;;  %vm348_vm5 = vweird.f32 %v338_v48 }
 0x107   : > { %518 = vrsqrt.f32 %v338_v48 }
 0x109   : > { %v333_v49 = vpop.xlane.xlu1 %332  ;;  %v327_v51 = vpop.xlane.xlu2 %326 }
 0x10a   : > { %v337_v50 = vmul.f32 %v333_v49, %v309_v22  ;;  %v335_v52 = vmul.f32 %v327_v51, %v309_v22 }
 0x10c   : > { %v517_v53 = vpop.eup %516  ;;  %v341_v54 = vadd.f32 1e-06, %v337_v50  ;;  %v339_v57 = vadd.f32 1e-06, %v335_v52 }
 0x10d   : > { %v519_v55 = vpop.eup %518  ;;  %v363_v56 = vmul.f32 %v517_v53, %v340_v47  ;;  %vm369_vm2 = vweird.f32 %v517_v53 }
 0x10e   : > { %v343_v58 = vmul.f32 %v519_v55, %v338_v48  ;;  %520 = vrsqrt.f32 %v341_v54  ;;  %vm349_vm3 = vweird.f32 %v519_v55  ;;  %vm370_vm6 = vmor %vm368_vm4, %vm369_vm2  ;;  %vm378_vm10 = vweird.f32 %v341_v54 }
 0x10f   : > { %v364_v59 = vmul.f32 %v517_v53, %v363_v56  ;;  %522 = vrsqrt.f32 %v339_v57  ;;  %vm350_vm7 = vmor %vm348_vm5, %vm349_vm3  ;;  %vm358_vm12 = vweird.f32 %v339_v57 }
 0x110   : > { %v344_v60 = vmul.f32 %v519_v55, %v343_v58 }
 0x111   : > { %v365_v61 = vmul.f32 0.5, %v364_v59 }
 0x112   : > { %v345_v62 = vmul.f32 0.5, %v344_v60 }
 0x113   : > { %v366_v63 = vsub.f32 1.5, %v365_v61 }
 0x114   : > { %v521_v0 = vpop.eup %520  ;;  %v346_v1 = vsub.f32 1.5, %v345_v62 }
 0x115   : > { %v523_v2 = vpop.eup %522  ;;  %v367_v3 = vmul.f32 %v517_v53, %v366_v63  ;;  %v373_v4 = vmul.f32 %v521_v0, %v341_v54  ;;  %vm379_vm8 = vweird.f32 %v521_v0 }
 0x116   : > { %v347_v6 = vmul.f32 %v519_v55, %v346_v1  ;;  %v353_v7 = vmul.f32 %v523_v2, %v339_v57  ;;  %vm359_vm9 = vweird.f32 %v523_v2  ;;  %vm380_vm11 = vmor %vm378_vm10, %vm379_vm8 }
 0x117   : > { %v371_v8 = vsel %vm370_vm6, %v517_v53, %v367_v3  ;;  %v374_v9 = vmul.f32 %v521_v0, %v373_v4  ;;  %vm360_vm13 = vmor %vm358_vm12, %vm359_vm9 }
 0x118   : > { %v351_v11 = vsel %vm350_vm7, %v519_v55, %v347_v6  ;;  %v384_v12 = vmul.f32 %v371_v8, %v585_v27  ;;  %v354_v13 = vmul.f32 %v523_v2, %v353_v7 }
 0x119   : > { %v382_v14 = vmul.f32 %v351_v11, %v587_v28  ;;  %v375_v15 = vmul.f32 0.5, %v374_v9 }
 0x11a   : > { %v391_v16 = vmul.f32 %v512_v5, %v384_v12  ;;  %v355_v17 = vmul.f32 0.5, %v354_v13 }
 0x11b   : > { %v389_v18 = vmul.f32 %v512_v5, %v382_v14  ;;  %v376_v20 = vsub.f32 1.5, %v375_v15 }
 0x11c   : > { %v398_v22 = vadd.f32 %v513_v10, %v391_v16  ;;  %v356_v23 = vsub.f32 1.5, %v355_v17 }
 0x11d   : > { %v396_v24 = vadd.f32 %v513_v10, %v389_v18  ;;  %v377_v25 = vmul.f32 %v521_v0, %v376_v20 }
 0x11e   : > { %v402_v26 = vadd.f32 %v398_v22, %v286_v19  ;;  %v357_v27 = vmul.f32 %v523_v2, %v356_v23 }
 0x11f   : > { %v400_v28 = vadd.f32 %v396_v24, %v284_v21  ;;  %v381_v29 = vsel %vm380_vm11, %v521_v0, %v377_v25 }
 0x120   : > { %406 = vst.msk [vmem:[%s270_s12 + $0x10] sm:$0xff] %vm290_vm0, %v402_v26  ;;  %v385_v30 = vmul.f32 %v381_v29, %v595_v37  ;;  %v361_v31 = vsel %vm360_vm13, %v523_v2, %v357_v27 }
 0x121   : > { %404 = vst.msk [vmem:[%s270_s12] sm:$0xff] %vm290_vm0, %v400_v28  ;;  %v383_v32 = vmul.f32 %v361_v31, %v597_v38 }
 0x122   : > { %v392_v33 = vmul.f32 %v512_v5, %v385_v30 }
 0x123   : > { %v390_v35 = vmul.f32 %v512_v5, %v383_v32 }
 0x124   : > { %v399_v36 = vadd.f32 %v513_v10, %v392_v33 }
 0x125   : > { %v397_v40 = vadd.f32 %v513_v10, %v390_v35 }
 0x126   : > { %v403_v41 = vadd.f32 %v399_v36, %v287_v34 }
 0x127   : > { %v401_v42 = vadd.f32 %v397_v40, %v285_v39 }
 0x128   : > { %407 = vst.msk [vmem:[%s270_s12 + $0x18] sm:$0xff] %vm290_vm0, %v403_v41 }
 0x129   : > { %405 = vst.msk [vmem:[%s270_s12 + $0x8] sm:$0xff] %vm290_vm0, %v401_v42 }
 0x12a PF: > { %s15_s18 = sadd.s32 1, %s530_s18  }
 0x12b   : > { %p12_p4 = scmp.ge.s32.totalorder %s15_s18, 6  }
 0x12d   :  { %14 = sbr.rel (!%p12_p4) target bundleno = 1 (0x1), region = 76 }

// kernel: block_forward.10
= control target key start
LH: loop header
LB: loop body
LE: loop exit
PB: predicated region body
PF: predicated region fallthrough
CT: control target
= control target key end

     0   :  { %s2303_s21 = smov 0   ;;  %s2305_s22 = smov 0   ;;  %s3055_s0 = inlined_call_operand.vmem [shape: f32[2,64,32], index: 0, kind: input, shape index: {}, may-alias: {0,1}]   ;;  %s3056_s1 = inlined_call_operand.vmem [shape: f32[2,64,32], index: 1, kind: input, shape index: {}, may-alias: {0,1}]   ;;  %s3057_s2 = inlined_call_operand.vmem [shape: bf16[32,32], index: 2, kind: input, shape index: {}]   ;;  %s3058_s3 = inlined_call_operand.vmem [shape: bf16[32,64], index: 3, kind: input, shape index: {}]   ;;  %s3059_s4 = inlined_call_operand.vmem [shape: bf16[32,32], index: 4, kind: input, shape index: {}]   ;;  %s3060_s5 = inlined_call_operand.vmem [shape: f32[1,32], index: 5, kind: input, shape index: {}]   ;;  %s3061_s6 = inlined_call_operand.vmem [shape: f32[2,64,32], index: 6, kind: output, shape index: {}]  }
   0x1   :  { %s2307_s23 = smov 0   ;;  %s2309_s24 = smov 0  }
   0x2   :  { %s2311_s25 = smov 0  }
   0x3 LB: > { %s25_s26 = sadd.s32 1, %s2236_s23  ;;  %s28_s27 = sadd.s32 1, %s2240_s24  ;;  %s2244_s25 = sphi %s2311_s25, %s16_s25   ;;  %s2240_s24 = sphi %s2309_s24, %s3065_s24   ;;  %s2236_s23 = sphi %s2307_s23, %s3064_s23   ;;  %s2232_s22 = sphi %s2305_s22, %s3063_s22   ;;  %s2228_s21 = sphi %s2303_s21, %s3062_s21  }
   0x4   : > { %p26_p0 = scmp.ge.s32.totalorder %s25_s26, 2  ;;  %p1836_p1 = scmp.ge.s32.totalorder %s2244_s25, 1 }
   0x5   : > { %p243_p2 = scmp.lt.s32.totalorder %s2244_s25, 5 }
   0x6   : > { %s3067_s26 = smov (%p26_p0, %s25_s26), 0  ;;  %s3069_s27 = smov (!%p26_p0, %s28_s27), %s2240_s24 }
   0x7   : > { %p244_p3 = pnand %p1836_p1, %p243_p2  ;;  %p30_p4 = scmp.ge.s32.totalorder %s3069_s27, 2 }
   0x8   : > { %s1837_s28 = sshll.u32 (!%p244_p3), %s2228_s21, 2  ;;  %p287_p5 = scmp.lt.s32.totalorder (!%p244_p3), %s2232_s22, 1 }
   0x9   : > { %s3071_s27 = smov (%p30_p4, %s3069_s27), 0  ;;  %247 = sbr.rel (%p244_p3) target bundleno = 1476 (0x5c4), region = 44 }
   0xa   : > { %p289_p6 = scmp.lt.s32.totalorder (!%p244_p3), %s1837_s28, 7  ;;  %p1845_p7 = scmp.ne.s32.totalorder (!%p244_p3), %s2228_s21, 0 }
   0xe   : > { %s3073_s22 = smov (!%p287_p5, %s2232_s22), 1  ;;  %s3075_s28 = smov (!%p289_p6, %s1837_s28), 7 }
   0xf   : > { %s1838_s29 = sshll.u32 %s3073_s22, 3  ;;  %s1928_s30 = sshll.u32 %s3073_s22, 6 }
  0x10   : > { %s292_s7 = sadd.s32 %s1838_s29, %s3075_s28  ;;  %s300_s10 = scalar_lea.vmem %s3056_s1, %s1928_s30 }
  0x11   : > { %s1839_s11 = sshll.u32 %s292_s7, 3  ;;  %315 = sbr.rel (%p1845_p7) target bundleno = 175 (0xaf), region = 48 }
  0x12   : > { %s2339_s14 = scalar_lea.vmem %s3055_s0, %s1839_s11  ;;  %s2344_s17 = scalar_lea.vmem %s3061_s6, %s1839_s11 }
  0x16   : > { %v1930_v0 = vld [vmem:[%s3058_s3 + $0x8] sm:$0xff]  ;;  %v1929_v1 = vld [vmem:[%s3058_s3] sm:$0xff]  ;;  %v318_v4 = vld [vmem:[%s300_s10 + $0x10] sm:$0xff]  ;;  %vm344_vm0 = vcmask 261120   ;;  %vm394_vm1 = vcmask 519168  }
  0x17   : > { %v316_v2 = vld [vmem:[%s300_s10] sm:$0xff]  ;;  %v317_v3 = vld [vmem:[%s300_s10 + $0x8] sm:$0xff]  ;;  %363 = vmatpush.bf16.msra.mxu0 %v1930_v0  ;;  %1939 = vmatpush.bf16.msra.mxu1 %v1930_v0  ;;  %v319_v5 = vld [vmem:[%s300_s10 + $0x18] sm:$0xff] }
  0x18   : > { %v320_v6 = vld [vmem:[%s300_s10 + $0x20] sm:$0xff]  ;;  %1940 = vmatpush.bf16.msra.mxu2 %v1930_v0  ;;  %1941 = vmatpush.bf16.msra.mxu3 %v1930_v0  ;;  %v321_v7 = vld [vmem:[%s300_s10 + $0x28] sm:$0xff]  ;;  %v322_v8 = vld [vmem:[%s300_s10 + $0x30] sm:$0xff]  ;;  %v324_v10 = vpack.c.bf16 %v317_v3, %v316_v2  ;;  %v325_v11 = vpack.c.bf16 %v319_v5, %v318_v4 }
  0x19   : > { %v323_v9 = vld [vmem:[%s300_s10 + $0x38] sm:$0xff]  ;;  %v326_v12 = vpack.c.bf16 %v321_v7, %v320_v6 }
  0x1a   : > { %v327_v13 = vpack.c.bf16 %v323_v9, %v322_v8 }
  0x1b   : > { %364 = vmatpush.bf16.msra.mxu0 %v1929_v1  ;;  %1942 = vmatpush.bf16.msra.mxu1 %v1929_v1 }
  0x1c   : > { %1943 = vmatpush.bf16.msra.mxu2 %v1929_v1  ;;  %1944 = vmatpush.bf16.msra.mxu3 %v1929_v1 }
  0x1e   : > { %1854 = vmatmul.msk.bf16.vlgmr.msra.gmra.mxu0 %vm344_vm0, %v324_v10  ;;  %1855 = vmatmul.msk.bf16.vlgmr.msra.gmra.mxu1 %vm344_vm0, %v325_v11 }
  0x1f   : > { %1856 = vmatmul.msk.bf16.vlgmr.msra.gmra.mxu2 %vm344_vm0, %v326_v12  ;;  %1857 = vmatmul.msk.bf16.vlgmr.msra.gmra.mxu3 %vm344_vm0, %v327_v13 }
  0x9b   : > { %v366_v14 = vpop.f32.mrf.mxu0  ;;  %v371_v15 = vpop.f32.mrf.mxu1 }
  0x9c   : > { %v386_v16 = vpack.c.bf16 %v366_v14, %v366_v14  ;;  %v388_v17 = vpack.c.bf16 %v371_v15, %v371_v15 }
  0x9e   : > { %395 = vst.msk [vmem:[#allocation2] sm:$0xf] %vm394_vm1, %v386_v16 }
  0x9f   : > { %397 = vst.msk [vmem:[#allocation2 + $0x8] sm:$0xf] %vm394_vm1, %v388_v17 }
  0xa2   : > { %v376_v18 = vpop.f32.mrf.mxu2  ;;  %v381_v19 = vpop.f32.mrf.mxu3 }
  0xa3   : > { %v390_v20 = vpack.c.bf16 %v376_v18, %v376_v18  ;;  %v392_v21 = vpack.c.bf16 %v381_v19, %v381_v19  ;;  %v368_v22 = vpop.f32.mrf.mxu0  ;;  %v373_v23 = vpop.f32.mrf.mxu1 }
  0xa4   : > { %v387_v24 = vpack.c.bf16 %v368_v22, %v368_v22  ;;  %v389_v25 = vpack.c.bf16 %v373_v23, %v373_v23 }
  0xa5   : > { %399 = vst.msk [vmem:[#allocation2 + $0x10] sm:$0xf] %vm394_vm1, %v390_v20 }
  0xa6   : > { %401 = vst.msk [vmem:[#allocation2 + $0x18] sm:$0xf] %vm394_vm1, %v392_v21 }
  0xa7   : > { %396 = vst.msk [vmem:[#allocation2 + $0x4] sm:$0xf] %vm394_vm1, %v387_v24 }
  0xa8   : > { %398 = vst.msk [vmem:[#allocation2 + $0xc] sm:$0xf] %vm394_vm1, %v389_v25 }
  0xaa   : > { %v378_v26 = vpop.f32.mrf.mxu2  ;;  %v383_v27 = vpop.f32.mrf.mxu3 }
  0xab   : > { %v391_v28 = vpack.c.bf16 %v378_v26, %v378_v26  ;;  %v393_v29 = vpack.c.bf16 %v383_v27, %v383_v27 }
  0xad   : > { %400 = vst.msk [vmem:[#allocation2 + $0x14] sm:$0xf] %vm394_vm1, %v391_v28 }
  0xae   : > { %402 = vst.msk [vmem:[#allocation2 + $0x1c] sm:$0xf] %vm394_vm1, %v393_v29 }
  0xaf PF: > { %v1932_v30 = vld [vmem:[%s3057_s2 + $0x8] sm:$0xff]  ;;  %v1931_v31 = vld [vmem:[%s3057_s2] sm:$0xff]  ;;  %s2246_s7 = smov 124   ;;  %s2247_s8 = smov 96   ;;  %vm485_vm2 = vcmask 31744   ;;  %vm425_vm3 = vcmask 261120  }
  0xb0   : > { %v403_v32 = vld [vmem:[%s2339_s14] sm:$0xff]  ;;  %438 = vmatpush.bf16.msra.mxu0 %v1932_v30  ;;  %v404_v33 = vld [vmem:[%s2339_s14 + $0x8] sm:$0xff]  ;;  %s2248_s9 = smov 120   ;;  %v405_v41 = vld [vmem:[%s2339_s14 + $0x10] sm:$0xff]  ;;  %s2249_s10 = smov 116   ;;  %vm523_vm4 = vcmask 523264  }
  0xb1   : > { %v2368_v34 = vld [vmem:[#allocation2] sm:$0xff]  ;;  %v407_v36 = vpack.c.bf16 %v404_v33, %v403_v32  ;;  %v2382_v39 = vld [vmem:[#allocation2 + $0x8] sm:$0xff]  ;;  %v406_v42 = vld [vmem:[%s2339_s14 + $0x18] sm:$0xff]  ;;  %s2250_s11 = smov 108   ;;  %s2251_s12 = smov 112   ;;  %vm1649_vm5 = vcmask 64512  }
  0xb2   : > { %613 = vrot.lane.b32.xlu2 %v2368_v34, %s2246_s7  ;;  %v496_v43 = vsel %vm485_vm2, %v2382_v39, 0  ;;  %v408_v44 = vpack.c.bf16 %v406_v42, %v405_v41  ;;  %v493_v45 = vsel %vm485_vm2, %v2368_v34, 0  ;;  %s2252_s13 = smov 100   ;;  %s2253_s14 = smov 104   ;;  %vm1654_vm6 = vcmask 97280  }
  0xb3   : > { %s2254_s15 = smov 84   ;;  %s2255_s16 = smov 88   ;;  %vm1659_vm7 = vcmask 130048   ;;  %vm1664_vm8 = vcmask 162816   ;;  %vm1669_vm9 = vcmask 195584   ;;  %vm1674_vm10 = vcmask 228352  }
  0xb4   : > { %439 = vmatpush.bf16.msra.mxu0 %v1931_v31  ;;  %v2380_v38 = vld [vmem:[#allocation2 + $0x10] sm:$0xff]  ;;  %s2256_s18 = smov 76   ;;  %s2257_s19 = smov 92  }
  0xb5   : > { %v2370_v35 = vld [vmem:[#allocation2 + $0x18] sm:$0xff]  ;;  %v499_v40 = vsel %vm485_vm2, %v2380_v38, 0  ;;  %s2258_s20 = smov 80   ;;  %s2259_s22 = smov 68  }
  0xb6   : > { %568 = vrot.lane.b32.xlu1 %v2370_v35, %s2247_s8  ;;  %619 = vrot.lane.b32.xlu0 %v2370_v35, %s2246_s7  ;;  %v502_v37 = vsel %vm485_vm2, %v2370_v35, 0  ;;  %s2260_s21 = smov 72   ;;  %s2261_s28 = smov 4  }
  0xb7   : > { %508 = vmatpush.bf16.xpose.msra.mxu1 %v502_v37  ;;  %1866 = vmatmul.msk.bf16.vlgmr.msra.gmra.mxu0 %vm425_vm3, %v407_v36  ;;  %s2262_s29 = smov 20   ;;  %s2263_s30 = smov 12  }
  0xba   : > { %749 = vrot.lane.b32.xlu2 %v2380_v38, %s2248_s9 }
  0xbe   : > { %615 = vrot.lane.b32.xlu1 %v2382_v39, %s2246_s7  ;;  %617 = vrot.lane.b32.xlu0 %v2380_v38, %s2246_s7 }
  0xbf   : > { %509 = vmatpush.bf16.xpose.msra.mxu1 %v499_v40 }
  0xc2   : > { %881 = vrot.lane.b32.xlu2 %v2380_v38, %s2249_s10 }
  0xc6   : > { %564 = vrot.lane.b32.xlu1 %v2382_v39, %s2247_s8  ;;  %566 = vrot.lane.b32.xlu0 %v2380_v38, %s2247_s8 }
  0xc7   : > { %510 = vmatpush.bf16.xpose.msra.mxu1 %v496_v43  ;;  %1867 = vmatmul.msk.bf16.gmra.mxu0 %vm425_vm3, %v408_v44 }
  0xca   : > { %747 = vrot.lane.b32.xlu2 %v2382_v39, %s2248_s9 }
  0xce   : > { %751 = vrot.lane.b32.xlu1 %v2370_v35, %s2248_s9  ;;  %562 = vrot.lane.b32.xlu0 %v2368_v34, %s2247_s8  ;;  %s2265_s8 = smov 8  }
  0xcf   : > { %511 = vmatpush.bf16.xpose.msra.mxu1 %v493_v45 }
  0xd2   : > { %879 = vrot.lane.b32.xlu2 %v2382_v39, %s2249_s10 }
  0xd6   : > { %883 = vrot.lane.b32.xlu1 %v2370_v35, %s2249_s10  ;;  %877 = vrot.lane.b32.xlu0 %v2368_v34, %s2249_s10 }
  0xda   : > { %745 = vrot.lane.b32.xlu2 %v2368_v34, %s2248_s9 }
  0xde   : > { %1145 = vrot.lane.b32.xlu1 %v2380_v38, %s2250_s11  ;;  %1147 = vrot.lane.b32.xlu0 %v2370_v35, %s2250_s11 }
  0xe2   : > { %1015 = vrot.lane.b32.xlu2 %v2370_v35, %s2251_s12 }
  0xea   : > { %1013 = vrot.lane.b32.xlu2 %v2380_v38, %s2251_s12 }
 0x10c   : > { %v614_v62 = vpop.permute.xlu2 %613 }
 0x10d   : > { %v628_v8 = vsel %vm485_vm2, %v614_v62, 0 }
 0x114   : > { %v750_v1 = vpop.permute.xlu2 %749 }
 0x115   : > { %v766_v9 = vsel %vm485_vm2, %v750_v1, 0 }
 0x11c   : > { %v882_v6 = vpop.permute.xlu2 %881 }
 0x11d   : > { %v898_v13 = vsel %vm485_vm2, %v882_v6, 0 }
 0x124   : > { %v748_v11 = vpop.permute.xlu2 %747 }
 0x125   : > { %v763_v16 = vsel %vm485_vm2, %v748_v11, 0 }
 0x128   : > { %v569_v56 = vpop.permute.xlu1 %568  ;;  %v620_v57 = vpop.permute.xlu0 %619 }
 0x129   : > { %v637_v58 = vsel %vm485_vm2, %v620_v57, 0  ;;  %584 = vmatpush.bf16.msra.mxu2 %v569_v56 }
 0x12a   : > { %643 = vmatpush.bf16.xpose.msra.mxu3 %v637_v58 }
 0x12c   : > { %v880_v12 = vpop.permute.xlu2 %879 }
 0x12d   : > { %v895_v17 = vsel %vm485_vm2, %v880_v12, 0 }
 0x130   : > { %v618_v59 = vpop.permute.xlu0 %617  ;;  %v616_v60 = vpop.permute.xlu1 %615 }
 0x131   : > { %v634_v61 = vsel %vm485_vm2, %v618_v59, 0  ;;  %v631_v4 = vsel %vm485_vm2, %v616_v60, 0 }
 0x132   : > { %644 = vmatpush.bf16.xpose.msra.mxu3 %v634_v61 }
 0x134   : > { %v441_v46 = vpop.f32.mrf.mxu0  ;;  %v746_v14 = vpop.permute.xlu2 %745 }
 0x135   : > { %v451_v48 = vmul.f32 0.5, %v441_v46  ;;  %v760_v22 = vsel %vm485_vm2, %v746_v14, 0 }
 0x138   : > { %v567_v63 = vpop.permute.xlu0 %566  ;;  %v565_v0 = vpop.permute.xlu1 %564 }
 0x139   : > { %585 = vmatpush.bf16.msra.mxu2 %v567_v63 }
 0x13a   : > { %645 = vmatpush.bf16.xpose.msra.mxu3 %v631_v4 }
 0x13c   : > { %v443_v47 = vpop.f32.mrf.mxu0  ;;  %v2484_v18 = vpop.permute.xlu2 %1015 }
 0x13d   : > { %v452_v49 = vmul.f32 0.5, %v443_v47  ;;  %586 = vmatpush.bf16.msra.mxu2 %v565_v0  ;;  %v1033_v14 = vsel %vm485_vm2, %v2484_v18, 0 }
 0x13f   : > { %v2428_v50 = vpack.c.bf16 %v452_v49, %v451_v48 }
 0x140   : > { %v752_v2 = vpop.permute.xlu1 %751  ;;  %v563_v3 = vpop.permute.xlu0 %562 }
 0x141   : > { %873 = vrot.lane.b32.xlu2 %v2428_v50, %s2249_s10  ;;  %741 = vrot.lane.b32.xlu1 %v2428_v50, %s2248_s9  ;;  %v769_v5 = vsel %vm485_vm2, %v752_v2, 0 }
 0x142   : > { %609 = vrot.lane.b32.xlu0 %v2428_v50, %s2246_s7  ;;  %1884 = vmatmul.msk.bf16.vlgmr.msra.gmra.mxu1 %vm485_vm2, %v2428_v50 }
 0x143   : > { %587 = vmatpush.bf16.msra.mxu2 %v563_v3  ;;  %646 = vmatpush.bf16.xpose.msra.mxu3 %v628_v8 }
 0x144   : > { %v446_v51 = vpop.f32.mrf.mxu0  ;;  %v2488_v23 = vpop.permute.xlu2 %1013 }
 0x145   : > { %v453_v52 = vmul.f32 0.5, %v446_v51 }
 0x147   : > { %775 = vmatpush.bf16.xpose.msrb.mxu2 %v769_v5 }
 0x148   : > { %v884_v7 = vpop.permute.xlu1 %883  ;;  %v878_v15 = vpop.permute.xlu0 %877 }
 0x149   : > { %v901_v10 = vsel %vm485_vm2, %v884_v7, 0  ;;  %v892_v20 = vsel %vm485_vm2, %v878_v15, 0 }
 0x14b   : > { %907 = vmatpush.bf16.xpose.msrb.mxu3 %v901_v10 }
 0x14c   : > { %v448_v53 = vpop.f32.mrf.mxu0 }
 0x14d   : > { %v454_v54 = vmul.f32 0.5, %v448_v53 }
 0x14f   : > { %v2438_v55 = vpack.c.bf16 %v454_v54, %v453_v52  ;;  %776 = vmatpush.bf16.xpose.msrb.mxu2 %v766_v9 }
 0x150   : > { %v1148_v19 = vpop.permute.xlu0 %1147  ;;  %v1146_v21 = vpop.permute.xlu1 %1145 }
 0x151   : > { %875 = vrot.lane.b32.xlu1 %v2438_v55, %s2249_s10  ;;  %743 = vrot.lane.b32.xlu0 %v2438_v55, %s2248_s9  ;;  %v1165_v24 = vsel %vm485_vm2, %v1148_v19, 0  ;;  %v1162_v26 = vsel %vm485_vm2, %v1146_v21, 0  ;;  %s2266_s9 = smov 16   ;;  %s2267_s10 = smov 24  }
 0x152   : > { %1885 = vmatmul.msk.bf16.gmra.mxu1 %vm485_vm2, %v2438_v55  ;;  %611 = vrot.lane.b32.xlu2 %v2438_v55, %s2246_s7  ;;  %s2264_s7 = smov 28  }
 0x153   : > { %908 = vmatpush.bf16.xpose.msrb.mxu3 %v898_v13 }
 0x157   : > { %777 = vmatpush.bf16.xpose.msrb.mxu2 %v763_v16 }
 0x159   : > { %1141 = vrot.lane.b32.xlu1 %v2368_v34, %s2250_s11  ;;  %1143 = vrot.lane.b32.xlu0 %v2382_v39, %s2250_s11 }
 0x15b   : > { %909 = vmatpush.bf16.xpose.msrb.mxu3 %v895_v17 }
 0x15f   : > { %778 = vmatpush.bf16.xpose.msrb.mxu2 %v760_v22  ;;  %v1030_v22 = vsel %vm485_vm2, %v2488_v23, 0 }
 0x161   : > { %1137 = vrot.lane.b32.xlu1 %v2428_v50, %s2250_s11  ;;  %1005 = vrot.lane.b32.xlu0 %v2428_v50, %s2251_s12 }
 0x163   : > { %910 = vmatpush.bf16.xpose.msrb.mxu3 %v892_v20 }
 0x169   : > { %1409 = vrot.lane.b32.xlu1 %v2380_v38, %s2252_s13  ;;  %1411 = vrot.lane.b32.xlu0 %v2370_v35, %s2252_s13 }
 0x171   : > { %1139 = vrot.lane.b32.xlu1 %v2438_v55, %s2250_s11  ;;  %1007 = vrot.lane.b32.xlu0 %v2438_v55, %s2251_s12 }
 0x179   : > { %1405 = vrot.lane.b32.xlu1 %v2368_v34, %s2252_s13  ;;  %1407 = vrot.lane.b32.xlu0 %v2382_v39, %s2252_s13 }
 0x181   : > { %1271 = vrot.lane.b32.xlu1 %v2438_v55, %s2253_s14  ;;  %1269 = vrot.lane.b32.xlu0 %v2428_v50, %s2253_s14 }
 0x189   : > { %964 = vrot.lane.b32.xlu1 %v2380_v38, %s2254_s15 }
 0x19b   : > { %v874_v28 = vpop.permute.xlu2 %873 }
 0x1ac   : > { %v612_v33 = vpop.permute.xlu2 %611 }
 0x1b3   : > { %v2493_v27 = vpop.permute.xlu1 %741 }
 0x1b4   : > { %v610_v25 = vpop.permute.xlu0 %609 }
 0x1b5   : > { %1888 = vmatmul.msk.bf16.vlgmr.msra.gmra.mxu3 %vm485_vm2, %v610_v25 }
 0x1b6   : > { %1171 = vmatpush.bf16.xpose.msra.mxu3 %v1165_v24 }
 0x1be   : > { %1172 = vmatpush.bf16.xpose.msra.mxu3 %v1162_v26 }
 0x1bf   : > { %v2495_v29 = vpop.f32.mrf.mxu1 }
 0x1c0   : > { %v524_v30 = vsel %vm523_vm4, %v2495_v29, -inf }
 0x1c1   : > { %525 = vmax.xlane.f32.xlu2 %v524_v30 }
 0x1c3   : > { %v876_v31 = vpop.permute.xlu1 %875  ;;  %v2499_v32 = vpop.permute.xlu0 %743 }
 0x1c5   : > { %1889 = vmatmul.msk.bf16.gmra.mxu3 %vm485_vm2, %v612_v33 }
 0x1c7   : > { %v2502_v36 = vpop.f32.mrf.mxu1 }
 0x1c8   : > { %v527_v37 = vsel %vm523_vm4, %v2502_v36, -inf }
 0x1c9   : > { %528 = vmax.xlane.f32.xlu2 %v527_v37 }
 0x1cb   : > { %v1142_v40 = vpop.permute.xlu1 %1141  ;;  %v1144_v41 = vpop.permute.xlu0 %1143 }
 0x1cc   : > { %v1159_v42 = vsel %vm485_vm2, %v1144_v41, 0  ;;  %v1156_v45 = vsel %vm485_vm2, %v1142_v40, 0 }
 0x1cd   : > { %1173 = vmatpush.bf16.xpose.msra.mxu3 %v1159_v42 }
 0x1cf   : > { %v2507_v43 = vpop.f32.mrf.mxu1 }
 0x1d0   : > { %v530_v44 = vsel %vm523_vm4, %v2507_v43, -inf }
 0x1d1   : > { %531 = vmax.xlane.f32.xlu0 %v530_v44 }
 0x1d3   : > { %v2512_v46 = vpop.permute.xlu0 %1005  ;;  %v1138_v47 = vpop.permute.xlu1 %1137 }
 0x1d5   : > { %1896 = vmatmul.msk.bf16.vlgmr.msrb.gmra.mxu3 %vm485_vm2, %v874_v28 }
 0x1d6   : > { %1174 = vmatpush.bf16.xpose.msra.mxu3 %v1156_v45 }
 0x1d7   : > { %v2515_v48 = vpop.f32.mrf.mxu1 }
 0x1d8   : > { %v533_v49 = vsel %vm523_vm4, %v2515_v48, -inf }
 0x1d9   : > { %534 = vmax.xlane.f32.xlu1 %v533_v49 }
 0x1db   : > { %v1412_v51 = vpop.permute.xlu0 %1411  ;;  %v1410_v53 = vpop.permute.xlu1 %1409 }
 0x1dc   : > { %v1429_v52 = vsel %vm485_vm2, %v1412_v51, 0  ;;  %v1426_v54 = vsel %vm485_vm2, %v1410_v53, 0 }
 0x1de   : > { %1435 = vmatpush.bf16.xpose.msrb.mxu3 %v1429_v52 }
 0x1e1   : > { %1011 = vrot.lane.b32.xlu2 %v2382_v39, %s2251_s12 }
 0x1e3   : > { %v2523_v56 = vpop.permute.xlu0 %1007  ;;  %v1140_v57 = vpop.permute.xlu1 %1139 }
 0x1e5   : > { %1897 = vmatmul.msk.bf16.gmra.mxu3 %vm485_vm2, %v876_v31  ;;  %1403 = vrot.lane.b32.xlu0 %v2438_v55, %s2252_s13 }
 0x1e6   : > { %1436 = vmatpush.bf16.xpose.msrb.mxu3 %v1426_v54 }
 0x1e9   : > { %1009 = vrot.lane.b32.xlu2 %v2368_v34, %s2251_s12 }
 0x1eb   : > { %v1408_v58 = vpop.permute.xlu0 %1407  ;;  %v1406_v60 = vpop.permute.xlu1 %1405 }
 0x1ec   : > { %v1423_v59 = vsel %vm485_vm2, %v1408_v58, 0  ;;  %v1420_v55 = vsel %vm485_vm2, %v1406_v60, 0 }
 0x1ed   : > { %834 = vrot.lane.b32.xlu0 %v2370_v35, %s2255_s16 }
 0x1ee   : > { %1437 = vmatpush.bf16.xpose.msrb.mxu3 %v1423_v59 }
 0x1f1   : > { %1279 = vrot.lane.b32.xlu2 %v2370_v35, %s2253_s14 }
 0x1f2   : > { %1228 = vrot.lane.b32.xlu1 %v2380_v38, %s2256_s18 }
 0x1f3   : > { %v2573_v0 = vpop.permute.xlu1 %1271  ;;  %v2575_v3 = vpop.permute.xlu0 %1269 }
 0x1f5   : > { %1904 = vmatmul.msk.bf16.vlgmr.msra.gmra.mxu3 %vm485_vm2, %v1138_v47  ;;  %966 = vrot.lane.b32.xlu0 %v2370_v35, %s2254_s15 }
 0x1f6   : > { %1438 = vmatpush.bf16.xpose.msrb.mxu3 %v1420_v55 }
 0x1f9   : > { %1277 = vrot.lane.b32.xlu2 %v2380_v38, %s2253_s14 }
 0x1fb   : > { %v2581_v7 = vpop.permute.xlu1 %964 }
 0x1fd   : > { %832 = vrot.lane.b32.xlu0 %v2380_v38, %s2255_s16 }
 0x201   : > { %1275 = vrot.lane.b32.xlu2 %v2382_v39, %s2253_s14 }
 0x205   : > { %1905 = vmatmul.msk.bf16.gmra.mxu3 %vm485_vm2, %v1140_v57  ;;  %962 = vrot.lane.b32.xlu0 %v2382_v39, %s2254_s15 }
 0x209   : > { %1273 = vrot.lane.b32.xlu2 %v2368_v34, %s2253_s14 }
 0x20d   : > { %828 = vrot.lane.b32.xlu0 %v2368_v34, %s2255_s16 }
 0x211   : > { %1401 = vrot.lane.b32.xlu2 %v2428_v50, %s2252_s13 }
 0x215   : > { %960 = vrot.lane.b32.xlu0 %v2368_v34, %s2254_s15 }
 0x219   : > { %702 = vrot.lane.b32.xlu2 %v2370_v35, %s2257_s19 }
 0x21d   : > { %1230 = vrot.lane.b32.xlu0 %v2370_v35, %s2256_s18 }
 0x221   : > { %700 = vrot.lane.b32.xlu2 %v2380_v38, %s2257_s19 }
 0x225   : > { %1094 = vrot.lane.b32.xlu0 %v2382_v39, %s2258_s20 }
 0x229   : > { %698 = vrot.lane.b32.xlu2 %v2382_v39, %s2257_s19 }
 0x22d   : > { %1092 = vrot.lane.b32.xlu0 %v2368_v34, %s2258_s20 }
 0x231   : > { %696 = vrot.lane.b32.xlu2 %v2368_v34, %s2257_s19 }
 0x234   : > { %v526_v50 = vpop.xlane.xlu2 %525 }
 0x235   : > { %v536_v61 = vsub.f32 %v2495_v29, %v526_v50 }
 0x237   : > { %v540_v1 = vmul.f32 1.442695, %v536_v61 }
 0x238   : > { %v2567_v62 = vpop.f32.mrf.mxu3 }
 0x239   : > { %830 = vrot.lane.b32.xlu2 %v2382_v39, %s2255_s16  ;;  %v658_v63 = vsel %vm523_vm4, %v2567_v62, -inf  ;;  %2078 = vpow2.f32 %v540_v1 }
 0x23a   : > { %659 = vmax.xlane.f32.xlu1 %v658_v63 }
 0x23c   : > { %v529_v2 = vpop.xlane.xlu2 %528 }
 0x23d   : > { %v537_v4 = vsub.f32 %v2502_v36, %v529_v2 }
 0x23f   : > { %v542_v5 = vmul.f32 1.442695, %v537_v4  ;;  %v2583_v10 = vpop.eup %2078 }
 0x240   : > { %v2578_v6 = vpop.f32.mrf.mxu3 }
 0x241   : > { %2080 = vpow2.f32 %v542_v5  ;;  %1098 = vrot.lane.b32.xlu2 %v2370_v35, %s2258_s20  ;;  %v661_v26 = vsel %vm523_vm4, %v2578_v6, -inf }
 0x244   : > { %v1012_v8 = vpop.permute.xlu2 %1011  ;;  %v532_v9 = vpop.xlane.xlu0 %531 }
 0x245   : > { %v538_v12 = vsub.f32 %v2507_v43, %v532_v9  ;;  %v1027_v30 = vsel %vm485_vm2, %v1012_v8, 0 }
 0x247   : > { %v2585_v11 = vpop.eup %2080  ;;  %v544_v16 = vmul.f32 1.442695, %v538_v12 }
 0x248   : > { %v560_v13 = vpack.c.bf16 %v2585_v11, %v2583_v10  ;;  %v2594_v15 = vpop.f32.mrf.mxu3 }
 0x249   : > { %1096 = vrot.lane.b32.xlu2 %v2380_v38, %s2258_s20  ;;  %2082 = vpow2.f32 %v544_v16  ;;  %v664_v55 = vsel %vm523_vm4, %v2594_v15, -inf }
 0x24a   : > { %1886 = vmatmul.msk.bf16.vlgmr.msra.gmra.mxu2 %vm523_vm4, %v560_v13 }
 0x24b   : > { %1039 = vmatpush.bf16.xpose.msra.mxu2 %v1033_v14 }
 0x24c   : > { %v1010_v17 = vpop.permute.xlu2 %1009  ;;  %v535_v19 = vpop.xlane.xlu1 %534 }
 0x24d   : > { %v539_v20 = vsub.f32 %v2515_v48, %v535_v19  ;;  %v1024_v37 = vsel %vm485_vm2, %v1010_v17, 0 }
 0x24f   : > { %v546_v21 = vmul.f32 1.442695, %v539_v20  ;;  %v2603_v24 = vpop.eup %2082 }
 0x250   : > { %v2605_v25 = vpop.f32.mrf.mxu3 }
 0x251   : > { %2084 = vpow2.f32 %v546_v21  ;;  %1226 = vrot.lane.b32.xlu2 %v2382_v39, %s2256_s18 }
 0x253   : > { %1040 = vmatpush.bf16.xpose.msra.mxu2 %v1030_v22  ;;  %1494 = vrot.lane.b32.xlu1 %v2370_v35, %s2259_s22 }
 0x254   : > { %v1280_v18 = vpop.permute.xlu2 %1279 }
 0x255   : > { %v1297_v42 = vsel %vm485_vm2, %v1280_v18, 0 }
 0x257   : > { %v2609_v28 = vpop.eup %2084  ;;  %662 = vmax.xlane.f32.xlu0 %v661_v26  ;;  %v1404_v29 = vpop.permute.xlu0 %1403 }
 0x258   : > { %v561_v23 = vpack.c.bf16 %v2609_v28, %v2603_v24  ;;  %v2619_v33 = vpop.f32.mrf.mxu3 }
 0x259   : > { %1224 = vrot.lane.b32.xlu2 %v2368_v34, %s2256_s18  ;;  %v922_v60 = vsel %vm523_vm4, %v2619_v33, -inf }
 0x25a   : > { %1887 = vmatmul.msk.bf16.gmra.mxu2 %vm523_vm4, %v561_v23 }
 0x25b   : > { %1041 = vmatpush.bf16.xpose.msra.mxu2 %v1027_v30  ;;  %1492 = vrot.lane.b32.xlu1 %v2380_v38, %s2259_s22 }
 0x25c   : > { %v1278_v31 = vpop.permute.xlu2 %1277 }
 0x25d   : > { %v1294_v45 = vsel %vm485_vm2, %v1278_v31, 0 }
 0x25f   : > { %v835_v36 = vpop.permute.xlu0 %834 }
 0x260   : > { %850 = vmatpush.bf16.msrb.mxu1 %v835_v36  ;;  %v2627_v43 = vpop.f32.mrf.mxu3 }
 0x261   : > { %1360 = vrot.lane.b32.xlu2 %v2380_v38, %s2260_s21  ;;  %v925_v63 = vsel %vm523_vm4, %v2627_v43, -inf }
 0x263   : > { %1042 = vmatpush.bf16.xpose.msra.mxu2 %v1024_v37  ;;  %1490 = vrot.lane.b32.xlu1 %v2382_v39, %s2259_s22 }
 0x264   : > { %v1276_v40 = vpop.permute.xlu2 %1275  ;;  %v1229_v14 = vpop.permute.xlu1 %1228 }
 0x265   : > { %v1291_v48 = vsel %vm485_vm2, %v1276_v40, 0 }
 0x267   : > { %v967_v41 = vpop.permute.xlu0 %966 }
 0x268   : > { %v2634_v47 = vpop.f32.mrf.mxu3 }
 0x269   : > { %1358 = vrot.lane.b32.xlu2 %v2382_v39, %s2260_s21  ;;  %v928_v59 = vsel %vm523_vm4, %v2634_v47, -inf }
 0x26a   : > { %1892 = vmatmul.msk.bf16.vlgmr.msrb.gmra.mxu2 %vm485_vm2, %v2493_v27 }
 0x26b   : > { %1303 = vmatpush.bf16.xpose.msrb.mxu2 %v1297_v42  ;;  %1362 = vrot.lane.b32.xlu0 %v2370_v35, %s2260_s21 }
 0x26c   : > { %v1274_v38 = vpop.permute.xlu2 %1273 }
 0x26d   : > { %v1288_v49 = vsel %vm485_vm2, %v1274_v38, 0 }
 0x26f   : > { %v833_v44 = vpop.permute.xlu0 %832 }
 0x270   : > { %851 = vmatpush.bf16.msrb.mxu1 %v833_v44  ;;  %v2640_v27 = vpop.f32.mrf.mxu3 }
 0x271   : > { %1356 = vrot.lane.b32.xlu2 %v2368_v34, %s2260_s21  ;;  %v931_v61 = vsel %vm523_vm4, %v2640_v27, -inf }
 0x273   : > { %1304 = vmatpush.bf16.xpose.msrb.mxu2 %v1294_v45 }
 0x274   : > { %v1402_v39 = vpop.permute.xlu2 %1401 }
 0x275   : > { %1912 = vmatmul.msk.bf16.vlgmr.msrb.gmra.mxu3 %vm485_vm2, %v1402_v39 }
 0x277   : > { %v963_v54 = vpop.permute.xlu0 %962 }
 0x278   : > { %v2644_v52 = vpop.f32.mrf.mxu3 }
 0x279   : > { %v1186_v2 = vsel %vm523_vm4, %v2644_v52, -inf }
 0x27a   : > { %1893 = vmatmul.msk.bf16.gmra.mxu2 %vm485_vm2, %v2499_v32  ;;  %v667_v32 = vsel %vm523_vm4, %v2605_v25, -inf }
 0x27b   : > { %1305 = vmatpush.bf16.xpose.msrb.mxu2 %v1291_v48 }
 0x27c   : > { %v703_v35 = vpop.permute.xlu2 %702 }
 0x27d   : > { %718 = vmatpush.bf16.msrb.mxu0 %v703_v35 }
 0x280   : > { %v2650_v57 = vpop.f32.mrf.mxu3 }
 0x283   : > { %1306 = vmatpush.bf16.xpose.msrb.mxu2 %v1288_v49 }
 0x284   : > { %v701_v51 = vpop.permute.xlu2 %700 }
 0x285   : > { %1913 = vmatmul.msk.bf16.gmra.mxu3 %vm485_vm2, %v1404_v29  ;;  %719 = vmatpush.bf16.msrb.mxu0 %v701_v51 }
 0x288   : > { %v2661_v50 = vpop.f32.mrf.mxu3 }
 0x289   : > { %v1192_v9 = vsel %vm523_vm4, %v2661_v50, -inf }
 0x28a   : > { %1900 = vmatmul.msk.bf16.vlgmr.msra.gmra.mxu2 %vm485_vm2, %v2512_v46  ;;  %v829_v46 = vpop.permute.xlu0 %828 }
 0x28c   : > { %v699_v53 = vpop.permute.xlu2 %698 }
 0x28d   : > { %668 = vmax.xlane.f32.xlu1 %v667_v32  ;;  %720 = vmatpush.bf16.msrb.mxu0 %v699_v53 }
 0x290   : > { %v2669_v4 = vpop.f32.mrf.mxu3 }
 0x292   : > { %v961_v1 = vpop.permute.xlu0 %960 }
 0x294   : > { %v697_v58 = vpop.permute.xlu2 %696 }
 0x295   : > { %721 = vmatpush.bf16.msrb.mxu0 %v697_v58  ;;  %929 = vmax.xlane.f32.xlu0 %v928_v59 }
 0x296   : > { %923 = vmax.xlane.f32.xlu1 %v922_v60 }
 0x299   : > { %982 = vmatpush.bf16.msra.mxu0 %v967_v41 }
 0x29a   : > { %665 = vmax.xlane.f32.xlu2 %v664_v55  ;;  %1901 = vmatmul.msk.bf16.gmra.mxu2 %vm485_vm2, %v2523_v56  ;;  %v1195_v56 = vsel %vm523_vm4, %v2669_v4, -inf  ;;  %v1231_v5 = vpop.permute.xlu0 %1230 }
 0x29c   : > { %v831_v8 = vpop.permute.xlu2 %830 }
 0x29d   : > { %983 = vmatpush.bf16.msra.mxu0 %v2581_v7  ;;  %v1189_v7 = vsel %vm523_vm4, %v2650_v57, -inf  ;;  %852 = vmatpush.bf16.msrb.mxu1 %v831_v8 }
 0x29e   : > { %932 = vmax.xlane.f32.xlu1 %v931_v61 }
 0x2a1   : > { %984 = vmatpush.bf16.msra.mxu0 %v963_v54  ;;  %853 = vmatpush.bf16.msrb.mxu1 %v829_v46 }
 0x2a2   : > { %926 = vmax.xlane.f32.xlu2 %v925_v63  ;;  %v1095_v12 = vpop.permute.xlu0 %1094 }
 0x2a4   : > { %v1099_v13 = vpop.permute.xlu2 %1098 }
 0x2a5   : > { %985 = vmatpush.bf16.msra.mxu0 %v961_v1  ;;  %1114 = vmatpush.bf16.msra.mxu1 %v1099_v13 }
 0x2a6   : > { %1187 = vmax.xlane.f32.xlu1 %v1186_v2 }
 0x2aa   : > { %1196 = vmax.xlane.f32.xlu2 %v1195_v56  ;;  %1908 = vmatmul.msk.bf16.vlgmr.msrb.gmra.mxu2 %vm485_vm2, %v2575_v3  ;;  %v1093_v16 = vpop.permute.xlu0 %1092 }
 0x2ac   : > { %v1097_v3 = vpop.permute.xlu2 %1096 }
 0x2ad   : > { %1115 = vmatpush.bf16.msra.mxu1 %v1097_v3  ;;  %v660_v17 = vpop.xlane.xlu1 %659 }
 0x2ae   : > { %1190 = vmax.xlane.f32.xlu1 %v1189_v7  ;;  %v670_v19 = vsub.f32 %v2567_v62, %v660_v17 }
 0x2b0   : > { %v674_v20 = vmul.f32 1.442695, %v670_v19 }
 0x2b1   : > { %1116 = vmatpush.bf16.msra.mxu1 %v1095_v12 }
 0x2b2   : > { %2086 = vpow2.f32 %v674_v20 }
 0x2b4   : > { %v1227_v62 = vpop.permute.xlu2 %1226 }
 0x2b5   : > { %1117 = vmatpush.bf16.msra.mxu1 %v1093_v16 }
 0x2b6   : > { %1193 = vmax.xlane.f32.xlu1 %v1192_v9 }
 0x2b8   : > { %v2685_v29 = vpop.eup %2086 }
 0x2ba   : > { %1909 = vmatmul.msk.bf16.gmra.mxu2 %vm485_vm2, %v2573_v0 }
 0x2bc   : > { %v1225_v36 = vpop.permute.xlu2 %1224 }
 0x2c4   : > { %v2706_v38 = vpop.permute.xlu2 %1360 }
 0x2ca   : > { %v663_v21 = vpop.xlane.xlu0 %662 }
 0x2cb   : > { %v671_v22 = vsub.f32 %v2578_v6, %v663_v21  ;;  %v2696_v6 = vpop.permute.xlu1 %1494 }
 0x2cc   : > { %v2718_v49 = vpop.permute.xlu2 %1358 }
 0x2cd   : > { %v676_v18 = vmul.f32 1.442695, %v671_v22  ;;  %v2683_v26 = vpop.f32.mrf.mxu2 }
 0x2cf   : > { %2088 = vpow2.f32 %v676_v18 }
 0x2d3   : > { %v2704_v42 = vpop.permute.xlu1 %1492 }
 0x2d4   : > { %v2728_v59 = vpop.permute.xlu2 %1356 }
 0x2d5   : > { %v2687_v0 = vpop.eup %2088  ;;  %v2689_v23 = vpop.f32.mrf.mxu2 }
 0x2d6   : > { %v694_v30 = vpack.c.bf16 %v2687_v0, %v2685_v29 }
 0x2d8   : > { %1890 = vmatmul.msk.bf16.vlgmr.msrb.gmra.mxu0 %vm523_vm4, %v694_v30 }
 0x2d9   : > { %1246 = vmatpush.bf16.msrb.mxu0 %v1231_v5 }
 0x2db   : > { %v2714_v48 = vpop.permute.xlu1 %1490 }
 0x2dd   : > { %v2694_v31 = vpop.f32.mrf.mxu2  ;;  %1247 = vmatpush.bf16.msrb.mxu0 %v1229_v14  ;;  %v2755_v20 = vpop.permute.xlu0 %1362 }
 0x2e1   : > { %1248 = vmatpush.bf16.msrb.mxu0 %v1227_v62 }
 0x2e5   : > { %v2698_v37 = vpop.f32.mrf.mxu2  ;;  %1249 = vmatpush.bf16.msrb.mxu0 %v1225_v36 }
 0x2ed   : > { %v2700_v40 = vpop.f32.mrf.mxu2 }
 0x2ee   : > { %v790_v41 = vsel %vm523_vm4, %v2700_v40, -inf }
 0x2ef   : > { %791 = vmax.xlane.f32.xlu1 %v790_v41 }
 0x2f5   : > { %v2708_v44 = vpop.f32.mrf.mxu2 }
 0x2f6   : > { %v793_v45 = vsel %vm523_vm4, %v2708_v44, -inf }
 0x2f7   : > { %794 = vmax.xlane.f32.xlu1 %v793_v45 }
 0x2f8   : > { %v2712_v39 = vpop.f32.mrf.mxu3 }
 0x2f9   : > { %v1450_v35 = vsel %vm523_vm4, %v2712_v39, -inf }
 0x2fa   : > { %1451 = vmax.xlane.f32.xlu2 %v1450_v35 }
 0x2fd   : > { %v2720_v51 = vpop.f32.mrf.mxu2 }
 0x2fe   : > { %v796_v53 = vsel %vm523_vm4, %v2720_v51, -inf }
 0x2ff   : > { %797 = vmax.xlane.f32.xlu1 %v796_v53 }
 0x300   : > { %v2724_v32 = vpop.f32.mrf.mxu3  ;;  %v669_v58 = vpop.xlane.xlu1 %668 }
 0x301   : > { %v1453_v54 = vsel %vm523_vm4, %v2724_v32, -inf  ;;  %v673_v55 = vsub.f32 %v2605_v25, %v669_v58 }
 0x302   : > { %1454 = vmax.xlane.f32.xlu0 %v1453_v54 }
 0x303   : > { %v680_v63 = vmul.f32 1.442695, %v673_v55 }
 0x305   : > { %v2730_v60 = vpop.f32.mrf.mxu2  ;;  %2090 = vpow2.f32 %v680_v63 }
 0x306   : > { %v799_v46 = vsel %vm523_vm4, %v2730_v60, -inf }
 0x307   : > { %800 = vmax.xlane.f32.xlu2 %v799_v46 }
 0x308   : > { %v2751_v16 = vpop.f32.mrf.mxu3  ;;  %v930_v36 = vpop.xlane.xlu0 %929 }
 0x309   : > { %v924_v61 = vpop.xlane.xlu1 %923  ;;  %v936_v58 = vsub.f32 %v2634_v47, %v930_v36 }
 0x30a   : > { %v934_v17 = vsub.f32 %v2619_v33, %v924_v61 }
 0x30b   : > { %v2744_v12 = vpop.eup %2090  ;;  %v942_v61 = vmul.f32 1.442695, %v936_v58 }
 0x30c   : > { %v938_v21 = vmul.f32 1.442695, %v934_v17 }
 0x30d   : > { %v666_v1 = vpop.xlane.xlu2 %665  ;;  %v2735_v2 = vpop.f32.mrf.mxu2 }
 0x30e   : > { %v672_v56 = vsub.f32 %v2594_v15, %v666_v1  ;;  %v1054_v5 = vsel %vm523_vm4, %v2735_v2, -inf }
 0x30f   : > { %1055 = vmax.xlane.f32.xlu0 %v1054_v5  ;;  %v685_v5 = vsel %vm523_vm4, %v2687_v0, 0.0 }
 0x310   : > { %v678_v7 = vmul.f32 1.442695, %v672_v56  ;;  %v2761_v30 = vpop.f32.mrf.mxu3  ;;  %v682_v56 = vsel %vm523_vm4, %v2685_v29, 0.0 }
 0x311   : > { %v933_v13 = vpop.xlane.xlu1 %932  ;;  %v1459_v41 = vsel %vm523_vm4, %v2761_v30, -inf }
 0x312   : > { %2092 = vpow2.f32 %v678_v7  ;;  %v937_v53 = vsub.f32 %v2640_v27, %v933_v13 }
 0x314   : > { %v944_v55 = vmul.f32 1.442695, %v937_v53 }
 0x315   : > { %v927_v8 = vpop.xlane.xlu2 %926  ;;  %v2740_v9 = vpop.f32.mrf.mxu2 }
 0x316   : > { %v1057_v25 = vsel %vm523_vm4, %v2740_v9, -inf  ;;  %v935_v15 = vsub.f32 %v2627_v43, %v927_v8 }
 0x317   : > { %1058 = vmax.xlane.f32.xlu1 %v1057_v25 }
 0x318   : > { %v2746_v14 = vpop.eup %2092  ;;  %v940_v19 = vmul.f32 1.442695, %v935_v15 }
 0x319   : > { %v695_v3 = vpack.c.bf16 %v2744_v12, %v2746_v14  ;;  %v1188_v43 = vpop.xlane.xlu1 %1187 }
 0x31a   : > { %2094 = vpow2.f32 %v940_v19  ;;  %v1198_v8 = vsub.f32 %v2644_v52, %v1188_v43 }
 0x31b   : > { %1891 = vmatmul.msk.bf16.gmra.mxu0 %vm523_vm4, %v695_v3  ;;  %2096 = vpow2.f32 %v938_v21 }
 0x31c   : > { %2098 = vpow2.f32 %v944_v55  ;;  %v1202_v25 = vmul.f32 1.442695, %v1198_v8 }
 0x31d   : > { %v2757_v22 = vpop.f32.mrf.mxu2  ;;  %2100 = vpow2.f32 %v942_v61  ;;  %v1197_v15 = vpop.xlane.xlu2 %1196 }
 0x31e   : > { %v1060_v18 = vsel %vm523_vm4, %v2757_v22, -inf  ;;  %v1201_v19 = vsub.f32 %v2669_v4, %v1197_v15 }
 0x31f   : > { %1061 = vmax.xlane.f32.xlu0 %v1060_v18 }
 0x320   : > { %v2763_v62 = vpop.eup %2094  ;;  %v1208_v21 = vmul.f32 1.442695, %v1201_v19 }
 0x321   : > { %v2097_v35 = vpop.eup %2096  ;;  %v1191_v46 = vpop.xlane.xlu1 %1190 }
 0x322   : > { %v958_v54 = vpack.c.bf16 %v2763_v62, %v2097_v35  ;;  %v1199_v63 = vsub.f32 %v2650_v57, %v1191_v46  ;;  %v946_v47 = vsel %vm523_vm4, %v2097_v35, 0.0  ;;  %v2786_v57 = vpop.eup %2098  ;;  %v1456_v46 = vsel %vm523_vm4, %v2751_v16, -inf }
 0x323   : > { %v2790_v7 = vpop.eup %2100 }
 0x324   : > { %v959_v29 = vpack.c.bf16 %v2786_v57, %v2790_v7 }
 0x325   : > { %v2765_v33 = vpop.f32.mrf.mxu2 }
 0x326   : > { %v1063_v45 = vsel %vm523_vm4, %v2765_v33, -inf }
 0x327   : > { %1460 = vmax.xlane.f32.xlu0 %v1459_v41  ;;  %1064 = vmax.xlane.f32.xlu2 %v1063_v45 }
 0x329   : > { %v1194_v13 = vpop.xlane.xlu1 %1193 }
 0x32a   : > { %v1200_v0 = vsub.f32 %v2661_v50, %v1194_v13 }
 0x32b   : > { %1898 = vmatmul.msk.bf16.vlgmr.msra.gmra.mxu0 %vm523_vm4, %v958_v54 }
 0x32c   : > { %1510 = vmatpush.bf16.msra.mxu0 %v2696_v6  ;;  %v1204_v6 = vmul.f32 1.442695, %v1199_v63  ;;  %v1206_v52 = vmul.f32 1.442695, %v1200_v0 }
 0x32d   : > { %v2777_v1 = vpop.f32.mrf.mxu2 }
 0x32e   : > { %v1318_v27 = vsel %vm523_vm4, %v2777_v1, -inf  ;;  %2102 = vpow2.f32 %v1204_v6 }
 0x32f   : > { %1319 = vmax.xlane.f32.xlu1 %v1318_v27  ;;  %683 = vadd.xlane.f32.xlu0 %v682_v56  ;;  %2104 = vpow2.f32 %v1202_v25  ;;  %v691_v25 = vsel %vm523_vm4, %v2744_v12, 0.0  ;;  %v955_v12 = vsel %vm523_vm4, %v2786_v57, 0.0 }
 0x330   : > { %1511 = vmatpush.bf16.msra.mxu0 %v2704_v42  ;;  %947 = vadd.xlane.f32.xlu2 %v946_v47  ;;  %2106 = vpow2.f32 %v1206_v52 }
 0x331   : > { %2108 = vpow2.f32 %v1208_v21 }
 0x334   : > { %1512 = vmatpush.bf16.msra.mxu0 %v2714_v48  ;;  %v2103_v42 = vpop.eup %2102 }
 0x335   : > { %v1213_v48 = vsel %vm523_vm4, %v2103_v42, 0.0  ;;  %v2105_v3 = vpop.eup %2104  ;;  %v2857_v57 = vpop.f32.mrf.mxu2 }
 0x336   : > { %v1222_v17 = vpack.c.bf16 %v2103_v42, %v2105_v3  ;;  %v2802_v18 = vpop.eup %2106 }
 0x337   : > { %686 = vadd.xlane.f32.xlu0 %v685_v5  ;;  %v2804_v43 = vpop.eup %2108  ;;  %v1216_v52 = vsel %vm523_vm4, %v2802_v18, 0.0 }
 0x338   : > { %v1223_v36 = vpack.c.bf16 %v2804_v43, %v2802_v18  ;;  %v1321_v18 = vsel %vm523_vm4, %v2857_v57, -inf }
 0x33b   : > { %1899 = vmatmul.msk.bf16.gmra.mxu0 %vm523_vm4, %v959_v29 }
 0x33f   : > { %1214 = vadd.xlane.f32.xlu0 %v1213_v48 }
 0x348   : > { %1488 = vrot.lane.b32.xlu1 %v2368_v34, %s2259_s22 }
 0x34b   : > { %1906 = vmatmul.msk.bf16.vlgmr.msrb.gmra.mxu0 %vm523_vm4, %v1222_v17  ;;  %v688_v17 = vsel %vm523_vm4, %v2746_v14, 0.0 }
 0x35b   : > { %1907 = vmatmul.msk.bf16.gmra.mxu0 %vm523_vm4, %v1223_v36 }
 0x362   : > { %v792_v50 = vpop.xlane.xlu1 %791 }
 0x363   : > { %v802_v34 = vsub.f32 %v2700_v40, %v792_v50 }
 0x365   : > { %v806_v41 = vmul.f32 1.442695, %v802_v34 }
 0x367   : > { %2110 = vpow2.f32 %v806_v41 }
 0x36a   : > { %v795_v4 = vpop.xlane.xlu1 %794 }
 0x36b   : > { %v803_v45 = vsub.f32 %v2708_v44, %v795_v4 }
 0x36d   : > { %v808_v35 = vmul.f32 1.442695, %v803_v45  ;;  %v1452_v53 = vpop.xlane.xlu2 %1451  ;;  %v2814_v61 = vpop.eup %2110 }
 0x36e   : > { %v1462_v54 = vsub.f32 %v2712_v39, %v1452_v53 }
 0x36f   : > { %2112 = vpow2.f32 %v808_v35 }
 0x370   : > { %v1466_v58 = vmul.f32 1.442695, %v1462_v54 }
 0x372   : > { %2114 = vpow2.f32 %v1466_v58  ;;  %1457 = vmax.xlane.f32.xlu1 %v1456_v46  ;;  %v798_v55 = vpop.xlane.xlu1 %797  ;;  %v723_v58 = vpop.f32.mrf.mxu0 }
 0x373   : > { %v804_v44 = vsub.f32 %v2720_v51, %v798_v55  ;;  %v949_v51 = vsel %vm523_vm4, %v2763_v62, 0.0 }
 0x375   : > { %v2816_v40 = vpop.eup %2112  ;;  %v1455_v63 = vpop.xlane.xlu0 %1454  ;;  %v810_v5 = vmul.f32 1.442695, %v804_v44 }
 0x376   : > { %v1463_v27 = vsub.f32 %v2724_v32, %v1455_v63  ;;  %v826_v39 = vpack.c.bf16 %v2816_v40, %v2814_v61 }
 0x378   : > { %v2822_v56 = vpop.eup %2114  ;;  %v1468_v47 = vmul.f32 1.442695, %v1463_v27  ;;  %1894 = vmatmul.msk.bf16.vlgmr.msrb.gmra.mxu1 %vm523_vm4, %v826_v39 }
 0x379   : > { %1378 = vmatpush.bf16.msrb.mxu1 %v2755_v20  ;;  %v1474_v6 = vsel %vm523_vm4, %v2822_v56, 0.0 }
 0x37a   : > { %2116 = vpow2.f32 %v1468_v47  ;;  %v801_v29 = vpop.xlane.xlu2 %800  ;;  %1475 = vadd.xlane.f32.xlu0 %v1474_v6  ;;  %950 = vadd.xlane.f32.xlu1 %v949_v51  ;;  %v725_v47 = vpop.f32.mrf.mxu0 }
 0x37b   : > { %v805_v32 = vsub.f32 %v2730_v60, %v801_v29  ;;  %2118 = vpow2.f32 %v810_v5  ;;  %v1210_v60 = vsel %vm523_vm4, %v2105_v3, 0.0  ;;  %v952_v3 = vsel %vm523_vm4, %v2790_v7, 0.0 }
 0x37c   : > { %v1219_v7 = vsel %vm523_vm4, %v2804_v43, 0.0  ;;  %v2868_v43 = vpop.f32.mrf.mxu2 }
 0x37d   : > { %v812_v8 = vmul.f32 1.442695, %v805_v32  ;;  %1379 = vmatpush.bf16.msrb.mxu1 %v2706_v38  ;;  %v1324_v6 = vsel %vm523_vm4, %v2868_v43, -inf }
 0x37f   : > { %2120 = vpow2.f32 %v812_v8 }
 0x380   : > { %v2832_v42 = vpop.eup %2116 }
 0x381   : > { %v1486_v20 = vpack.c.bf16 %v2832_v42, %v2822_v56  ;;  %1380 = vmatpush.bf16.msrb.mxu1 %v2718_v49  ;;  %v1477_v62 = vsel %vm523_vm4, %v2832_v42, 0.0  ;;  %v2119_v48 = vpop.eup %2118 }
 0x382   : > { %1478 = vadd.xlane.f32.xlu2 %v1477_v62  ;;  %692 = vadd.xlane.f32.xlu0 %v691_v25  ;;  %v1056_v38 = vpop.xlane.xlu0 %1055  ;;  %v820_v51 = vsel %vm523_vm4, %v2119_v48, 0.0 }
 0x383   : > { %1211 = vadd.xlane.f32.xlu1 %v1210_v60  ;;  %v1066_v15 = vsub.f32 %v2735_v2, %v1056_v38 }
 0x384   : > { %v2876_v63 = vpop.f32.mrf.mxu2 }
 0x385   : > { %v2842_v13 = vpop.eup %2120  ;;  %1381 = vmatpush.bf16.msrb.mxu1 %v2728_v59  ;;  %v1070_v0 = vmul.f32 1.442695, %v1066_v15  ;;  %v1327_v39 = vsel %vm523_vm4, %v2876_v63, -inf }
 0x386   : > { %v827_v49 = vpack.c.bf16 %v2842_v13, %v2119_v48 }
 0x387   : > { %2122 = vpow2.f32 %v1070_v0 }
 0x388   : > { %1895 = vmatmul.msk.bf16.gmra.mxu1 %vm523_vm4, %v827_v49 }
 0x38a   : > { %956 = vadd.xlane.f32.xlu2 %v955_v12  ;;  %953 = vadd.xlane.f32.xlu0 %v952_v3  ;;  %v1059_v19 = vpop.xlane.xlu1 %1058 }
 0x38b   : > { %689 = vadd.xlane.f32.xlu1 %v688_v17  ;;  %v1067_v59 = vsub.f32 %v2740_v9, %v1059_v19 }
 0x38d   : > { %v1072_v2 = vmul.f32 1.442695, %v1067_v59  ;;  %v2861_v14 = vpop.eup %2122 }
 0x38f   : > { %2124 = vpow2.f32 %v1072_v2 }
 0x392   : > { %1217 = vadd.xlane.f32.xlu2 %v1216_v52  ;;  %v1062_v21 = vpop.xlane.xlu0 %1061 }
 0x393   : > { %1220 = vadd.xlane.f32.xlu1 %v1219_v7  ;;  %v1068_v9 = vsub.f32 %v2757_v22, %v1062_v21  ;;  %v548_v22 = vsel %vm523_vm4, %v2583_v10, 0.0  ;;  %v814_v21 = vsel %vm523_vm4, %v2814_v61, 0.0  ;;  %v817_v61 = vsel %vm523_vm4, %v2816_v40, 0.0 }
 0x394   : > { %v1078_v40 = vsel %vm523_vm4, %v2861_v14, 0.0 }
 0x395   : > { %v2125_v36 = vpop.eup %2124  ;;  %v1074_v34 = vmul.f32 1.442695, %v1068_v9 }
 0x396   : > { %v1090_v50 = vpack.c.bf16 %v2125_v36, %v2861_v14  ;;  %v1081_v62 = vsel %vm523_vm4, %v2125_v36, 0.0 }
 0x397   : > { %2126 = vpow2.f32 %v1074_v34 }
 0x398   : > { %1902 = vmatmul.msk.bf16.vlgmr.msra.gmra.mxu1 %vm523_vm4, %v1090_v50  ;;  %v2890_v8 = vpop.f32.mrf.mxu0 }
 0x39a   : > { %1322 = vmax.xlane.f32.xlu2 %v1321_v18  ;;  %v1461_v41 = vpop.xlane.xlu0 %1460  ;;  %v1065_v4 = vpop.xlane.xlu2 %1064 }
 0x39b   : > { %v1465_v45 = vsub.f32 %v2761_v30, %v1461_v41  ;;  %v1069_v35 = vsub.f32 %v2765_v33, %v1065_v4 }
 0x39d   : > { %v1472_v53 = vmul.f32 1.442695, %v1465_v45  ;;  %v1076_v54 = vmul.f32 1.442695, %v1069_v35  ;;  %v2874_v46 = vpop.eup %2126 }
 0x39f   : > { %2128 = vpow2.f32 %v1472_v53 }
 0x3a0   : > { %2130 = vpow2.f32 %v1076_v54  ;;  %v2899_v48 = vpop.f32.mrf.mxu0 }
 0x3a2   : > { %549 = vadd.xlane.f32.xlu2 %v548_v22  ;;  %v684_v33 = vpop.xlane.xlu0 %683  ;;  %v1320_v10 = vpop.xlane.xlu1 %1319 }
 0x3a3   : > { %v1330_v5 = vsub.f32 %v2777_v1, %v1320_v10  ;;  %v948_v52 = vpop.xlane.xlu2 %947 }
 0x3a5   : > { %v2129_v55 = vpop.eup %2128  ;;  %v1334_v32 = vmul.f32 1.442695, %v1330_v5  ;;  %v823_v5 = vsel %vm523_vm4, %v2842_v13, 0.0  ;;  %v1084_v13 = vsel %vm523_vm4, %v2874_v46, 0.0 }
 0x3a6   : > { %v2878_v44 = vpop.eup %2130  ;;  %v1483_v30 = vsel %vm523_vm4, %v2129_v55, 0.0 }
 0x3a7   : > { %1484 = vadd.xlane.f32.xlu0 %v1483_v30  ;;  %v1091_v27 = vpack.c.bf16 %v2878_v44, %v2874_v46  ;;  %v1087_v14 = vsel %vm523_vm4, %v2878_v44, 0.0 }
 0x3a8   : > { %v987_v0 = vpop.f32.mrf.mxu0 }
 0x3a9   : > { %1903 = vmatmul.msk.bf16.gmra.mxu1 %vm523_vm4, %v1091_v27 }
 0x3aa   : > { %1328 = vmax.xlane.f32.xlu2 %v1327_v39  ;;  %v687_v29 = vpop.xlane.xlu0 %686 }
 0x3ab   : > { %2132 = vrcp.f32 %v687_v29 }
 0x3ac   : > { %2134 = vrcp.f32 %v684_v33 }
 0x3ad   : > { %2136 = vpow2.f32 %v1334_v32 }
 0x3af   : > { %1325 = vmax.xlane.f32.xlu0 %v1324_v6 }
 0x3b0   : > { %v989_v17 = vpop.f32.mrf.mxu0 }
 0x3b1   : > { %v2133_v25 = vpop.eup %2132 }
 0x3b2   : > { %821 = vadd.xlane.f32.xlu2 %v820_v51  ;;  %v2135_v38 = vpop.eup %2134  ;;  %v738_v1 = vmul.f32 %v2133_v25, %v725_v47  ;;  %v1215_v59 = vpop.xlane.xlu0 %1214 }
 0x3b3   : > { %v2893_v15 = vpop.eup %2136  ;;  %v737_v49 = vmul.f32 %v2135_v38, %v723_v58  ;;  %v551_v58 = vsel %vm523_vm4, %v2585_v11, 0.0 }
 0x3b4   : > { %v1342_v12 = vsel %vm523_vm4, %v2893_v15, 0.0 }
 0x3b5   : > { %v2007_v3 = vpack.i.bf16 %v738_v1, %v737_v49 }
 0x3b8   : > { %v992_v19 = vpop.f32.mrf.mxu0 }
 0x3ba   : > { %1082 = vadd.xlane.f32.xlu2 %v1081_v62  ;;  %v1489_v60 = vpop.permute.xlu1 %1488 }
 0x3bb   : > { %1513 = vmatpush.bf16.msra.mxu0 %v1489_v60 }
 0x3be   : > { %1914 = vmatmul.msk.bf16.vlgmr.msra.gmra.mxu0 %vm523_vm4, %v1486_v20 }
 0x3c0   : > { %v994_v42 = vpop.f32.mrf.mxu0 }
 0x3c2   : > { %1343 = vadd.xlane.f32.xlu2 %v1342_v12 }
 0x3c3   : > { %2008 = vrot.lane.b32.xlu0 %v2007_v3, %s2261_s28 }
 0x3c8   : > { %v1251_v9 = vpop.f32.mrf.mxu0 }
 0x3e5   : > { %v1458_v2 = vpop.xlane.xlu1 %1457 }
 0x3e6   : > { %v1464_v56 = vsub.f32 %v2751_v16, %v1458_v2 }
 0x3e8   : > { %v1470_v20 = vmul.f32 1.442695, %v1464_v56 }
 0x3ea   : > { %2138 = vpow2.f32 %v1470_v20 }
 0x3eb   : > { %2140 = vrcp.f32 %v948_v52 }
 0x3ed   : > { %v2905_v7 = vpop.xlane.xlu0 %1475  ;;  %815 = vadd.xlane.f32.xlu0 %v814_v21  ;;  %v951_v36 = vpop.xlane.xlu1 %950 }
 0x3ee   : > { %2142 = vrcp.f32 %v951_v36 }
 0x3ef   : > { %2144 = vrcp.f32 %v1215_v59 }
 0x3f0   : > { %v2139_v50 = vpop.eup %2138 }
 0x3f1   : > { %v1480_v18 = vsel %vm523_vm4, %v2139_v50, 0.0  ;;  %v1487_v34 = vpack.c.bf16 %v2129_v55, %v2139_v50  ;;  %v2141_v41 = vpop.eup %2140  ;;  %v1253_v55 = vpop.f32.mrf.mxu0 }
 0x3f2   : > { %1481 = vadd.xlane.f32.xlu1 %v1480_v18  ;;  %v2917_v35 = vmul.f32 %v2141_v41, %v987_v0 }
 0x3f3   : > { %1915 = vmatmul.msk.bf16.gmra.mxu0 %vm523_vm4, %v1487_v34 }
 0x3f4   : > { %v2143_v16 = vpop.eup %2142 }
 0x3f5   : > { %v2911_v4 = vpop.xlane.xlu2 %1478  ;;  %v2913_v45 = vpop.xlane.xlu0 %692  ;;  %818 = vadd.xlane.f32.xlu0 %v817_v61  ;;  %v2919_v54 = vmul.f32 %v2143_v16, %v989_v17 }
 0x3f6   : > { %v1212_v53 = vpop.xlane.xlu1 %1211  ;;  %v2145_v30 = vpop.eup %2144 }
 0x3f7   : > { %2146 = vrcp.f32 %v1212_v53  ;;  %v2012_v22 = vpack.i.bf16 %v2919_v54, %v2917_v35  ;;  %v1266_v10 = vmul.f32 %v2145_v30, %v1253_v55 }
 0x3f9   : > { %v1256_v38 = vpop.f32.mrf.mxu0 }
 0x3fa   : > { %552 = vadd.xlane.f32.xlu1 %v551_v58 }
 0x3fd   : > { %v957_v33 = vpop.xlane.xlu2 %956  ;;  %v954_v27 = vpop.xlane.xlu0 %953  ;;  %1079 = vadd.xlane.f32.xlu0 %v1078_v40 }
 0x3fe   : > { %v2147_v39 = vpop.eup %2146  ;;  %2148 = vrcp.f32 %v957_v33  ;;  %v690_v61 = vpop.xlane.xlu1 %689 }
 0x3ff   : > { %2150 = vrcp.f32 %v954_v27  ;;  %v1265_v47 = vmul.f32 %v2147_v39, %v1251_v9  ;;  %v855_v33 = vpop.f32.mrf.mxu1 }
 0x401   : > { %v2017_v6 = vpack.i.bf16 %v1266_v10, %v1265_v47  ;;  %v1258_v9 = vpop.f32.mrf.mxu0 }
 0x402   : > { %824 = vadd.xlane.f32.xlu1 %v823_v5 }
 0x403   : > { %2018 = vrot.lane.b32.xlu2 %v2017_v6, %s2262_s29 }
 0x404   : > { %v2149_v11 = vpop.eup %2148 }
 0x405   : > { %v2151_v51 = vpop.eup %2150  ;;  %v2930_v29 = vmul.f32 %v2149_v11, %v994_v42  ;;  %v1218_v32 = vpop.xlane.xlu2 %1217  ;;  %1088 = vadd.xlane.f32.xlu0 %v1087_v14 }
 0x406   : > { %v2934_v62 = vmul.f32 %v2151_v51, %v992_v19  ;;  %2152 = vrcp.f32 %v1218_v32  ;;  %v1221_v10 = vpop.xlane.xlu1 %1220 }
 0x407   : > { %v857_v40 = vpop.f32.mrf.mxu1 }
 0x408   : > { %v2052_v25 = vpack.i.bf16 %v2930_v29, %v2934_v62  ;;  %v1938_v29 = vld [vmem:[%s3059_s4 + $0x8] sm:$0xff] }
 0x409   : > { %1713 = vmatpush.bf16.msra.mxu2 %v1938_v29 }
 0x40a   : > { %1085 = vadd.xlane.f32.xlu1 %v1084_v13 }
 0x40c   : > { %v2153_v60 = vpop.eup %2152 }
 0x40d   : > { %v1323_v1 = vpop.xlane.xlu2 %1322  ;;  %v2940_v49 = vmul.f32 %v2153_v60, %v1256_v38 }
 0x40e   : > { %v1331_v12 = vsub.f32 %v2857_v57, %v1323_v1 }
 0x40f   : > { %v860_v39 = vpop.f32.mrf.mxu1 }
 0x410   : > { %v1336_v3 = vmul.f32 1.442695, %v1331_v12 }
 0x412   : > { %2154 = vpow2.f32 %v1336_v3 }
 0x415   : > { %v550_v44 = vpop.xlane.xlu2 %549 }
 0x417   : > { %v862_v5 = vpop.f32.mrf.mxu1 }
 0x418   : > { %v2155_v0 = vpop.eup %2154 }
 0x419   : > { %v1354_v17 = vpack.c.bf16 %v2155_v0, %v2893_v15  ;;  %v1345_v19 = vsel %vm523_vm4, %v2155_v0, 0.0 }
 0x41a   : > { %1346 = vadd.xlane.f32.xlu1 %v1345_v19  ;;  %v2945_v59 = vpop.xlane.xlu0 %1484 }
 0x41b   : > { %1910 = vmatmul.msk.bf16.vlgmr.msrb.gmra.mxu1 %vm523_vm4, %v1354_v17 }
 0x41d   : > { %v1329_v46 = vpop.xlane.xlu2 %1328 }
 0x41e   : > { %v1333_v2 = vsub.f32 %v2876_v63, %v1329_v46 }
 0x41f   : > { %v1119_v1 = vpop.f32.mrf.mxu1 }
 0x420   : > { %v1340_v56 = vmul.f32 1.442695, %v1333_v2 }
 0x422   : > { %2156 = vpow2.f32 %v1340_v56  ;;  %v1326_v42 = vpop.xlane.xlu0 %1325 }
 0x423   : > { %v1332_v57 = vsub.f32 %v2868_v43, %v1326_v42 }
 0x425   : > { %v1338_v20 = vmul.f32 1.442695, %v1332_v57  ;;  %v822_v14 = vpop.xlane.xlu2 %821 }
 0x427   : > { %2158 = vpow2.f32 %v1338_v20 }
 0x428   : > { %v2157_v52 = vpop.eup %2156  ;;  %2160 = vrcp.f32 %v550_v44 }
 0x429   : > { %v1351_v15 = vsel %vm523_vm4, %v2157_v52, 0.0  ;;  %2162 = vrcp.f32 %v2905_v7 }
 0x42a   : > { %2164 = vrcp.f32 %v2911_v4 }
 0x42b   : > { %2166 = vrcp.f32 %v690_v61 }
 0x42c   : > { %1352 = vadd.xlane.f32.xlu2 %v1351_v15  ;;  %2168 = vrcp.f32 %v2913_v45  ;;  %v554_v45 = vsel %vm523_vm4, %v2603_v24, 0.0  ;;  %v1121_v15 = vpop.f32.mrf.mxu1 }
 0x42d   : > { %v2159_v21 = vpop.eup %2158  ;;  %2170 = vrcp.f32 %v1221_v10 }
 0x42e   : > { %v1348_v36 = vsel %vm523_vm4, %v2159_v21, 0.0  ;;  %v1355_v50 = vpack.c.bf16 %v2157_v52, %v2159_v21  ;;  %v2161_v63 = vpop.eup %2160 }
 0x42f   : > { %1349 = vadd.xlane.f32.xlu0 %v1348_v36  ;;  %v603_v18 = vmul.f32 %v2161_v63, %v2683_v26  ;;  %v2163_v35 = vpop.eup %2162 }
 0x430   : > { %1911 = vmatmul.msk.bf16.gmra.mxu1 %vm523_vm4, %v1355_v50  ;;  %v2165_v53 = vpop.eup %2164 }
 0x431   : > { %v2167_v55 = vpop.eup %2166 }
 0x432   : > { %v2169_v30 = vpop.eup %2168  ;;  %v739_v7 = vmul.f32 %v2167_v55, %v2890_v8 }
 0x433   : > { %2013 = vrot.lane.b32.xlu1 %v2012_v22, %s2263_s30  ;;  %v740_v4 = vmul.f32 %v2169_v30, %v2899_v48  ;;  %v2171_v8 = vpop.eup %2170 }
 0x434   : > { %v1268_v13 = vmul.f32 %v2171_v8, %v1258_v9 }
 0x435   : > { %v2954_v43 = vpop.permute.xlu0 %2008  ;;  %v2032_v27 = vpack.i.bf16 %v740_v4, %v739_v7 }
 0x436   : > { %v2010_v34 = vunpack.i.l.bf16 %v2954_v43  ;;  %v2062_v3 = vpack.i.bf16 %v1268_v13, %v2940_v49  ;;  %v2011_v0 = vunpack.i.h.bf16 %v2954_v43  ;;  %v1083_v49 = vpop.xlane.xlu2 %1082 }
 0x438   : > { %v2959_v41 = vsel %vm485_vm2, %v603_v18, %v2010_v34  ;;  %v1124_v34 = vpop.f32.mrf.mxu1 }
 0x43b   : > { %v1515_v16 = vpop.f32.mrf.mxu0 }
 0x43c   : > { %v1529_v22 = vmul.f32 %v2163_v35, %v1515_v16 }
 0x443   : > { %v1517_v54 = vpop.f32.mrf.mxu0 }
 0x444   : > { %v1530_v58 = vmul.f32 %v2165_v53, %v1517_v54  ;;  %v1126_v53 = vpop.f32.mrf.mxu1  ;;  %v1344_v54 = vpop.xlane.xlu2 %1343 }
 0x446   : > { %v2027_v26 = vpack.i.bf16 %v1530_v58, %v1529_v22 }
 0x448   : > { %2028 = vrot.lane.b32.xlu0 %v2027_v26, %s2264_s7  ;;  %v557_v26 = vsel %vm523_vm4, %v2609_v28, 0.0 }
 0x450   : > { %2033 = vrot.lane.b32.xlu0 %v2032_v27, %s2261_s28 }
 0x45d   : > { %555 = vadd.xlane.f32.xlu1 %v554_v45 }
 0x460   : > { %v816_v47 = vpop.xlane.xlu0 %815 }
 0x461   : > { %2172 = vrcp.f32 %v816_v47 }
 0x465   : > { %v1482_v6 = vpop.xlane.xlu1 %1481 }
 0x467   : > { %v2173_v51 = vpop.eup %2172 }
 0x468   : > { %v819_v11 = vpop.xlane.xlu0 %818  ;;  %v869_v60 = vmul.f32 %v2173_v51, %v855_v33 }
 0x469   : > { %2174 = vrcp.f32 %v819_v11 }
 0x46d   : > { %v553_v48 = vpop.xlane.xlu1 %552 }
 0x46e   : > { %2176 = vrcp.f32 %v553_v48 }
 0x46f   : > { %v2175_v32 = vpop.eup %2174  ;;  %2178 = vrcp.f32 %v2945_v59 }
 0x470   : > { %v870_v38 = vmul.f32 %v2175_v32, %v857_v40  ;;  %v1520_v24 = vpop.f32.mrf.mxu0  ;;  %2180 = vrcp.f32 %v1482_v6  ;;  %v1080_v2 = vpop.xlane.xlu0 %1079 }
 0x471   : > { %2182 = vrcp.f32 %v822_v14  ;;  %v2981_v40 = vpop.permute.xlu2 %2018 }
 0x472   : > { %v2022_v12 = vpack.i.bf16 %v870_v38, %v869_v60 }
 0x474   : > { %v2177_v44 = vpop.eup %2176  ;;  %2023 = vrot.lane.b32.xlu2 %v2022_v12, %s2265_s8 }
 0x475   : > { %v604_v17 = vmul.f32 %v2177_v44, %v2689_v23  ;;  %v825_v19 = vpop.xlane.xlu1 %824  ;;  %v2179_v46 = vpop.eup %2178 }
 0x476   : > { %2063 = vrot.lane.b32.xlu1 %v2062_v3, %s2262_s29  ;;  %2184 = vrcp.f32 %v825_v19  ;;  %v2181_v56 = vpop.eup %2180 }
 0x477   : > { %v2976_v59 = vsel %vm485_vm2, %v604_v17, %v2011_v0  ;;  %v1531_v57 = vmul.f32 %v2181_v56, %v1520_v24  ;;  %v2183_v52 = vpop.eup %2182  ;;  %2186 = vrcp.f32 %v1080_v2 }
 0x478   : > { %v1522_v42 = vpop.f32.mrf.mxu0  ;;  %2188 = vrcp.f32 %v1083_v49  ;;  %v871_v23 = vmul.f32 %v2183_v52, %v860_v39  ;;  %v1089_v45 = vpop.xlane.xlu0 %1088 }
 0x479   : > { %v1532_v20 = vmul.f32 %v2179_v46, %v1522_v42  ;;  %2190 = vrcp.f32 %v1344_v54 }
 0x47b   : > { %v2072_v21 = vpack.i.bf16 %v1532_v20, %v1531_v57 }
 0x47c   : > { %v2185_v36 = vpop.eup %2184 }
 0x47d   : > { %v872_v50 = vmul.f32 %v2185_v36, %v862_v5  ;;  %v2187_v9 = vpop.eup %2186  ;;  %v1086_v35 = vpop.xlane.xlu1 %1085 }
 0x47e   : > { %v2189_v43 = vpop.eup %2188  ;;  %v1133_v18 = vmul.f32 %v2187_v9, %v1119_v1 }
 0x47f   : > { %v2037_v63 = vpack.i.bf16 %v872_v50, %v871_v23  ;;  %v1134_v16 = vmul.f32 %v2189_v43, %v1121_v15  ;;  %v2191_v55 = vpop.eup %2190 }
 0x481   : > { %2038 = vrot.lane.b32.xlu0 %v2037_v63, %s2265_s8  ;;  %v2042_v61 = vpack.i.bf16 %v1134_v16, %v1133_v18 }
 0x489   : > { %2043 = vrot.lane.b32.xlu0 %v2042_v61, %s2266_s9 }
 0x48d   : > { %v1347_v22 = vpop.xlane.xlu1 %1346 }
 0x48e   : > { %2192 = vrcp.f32 %v1347_v22 }
 0x48f   : > { %2194 = vrcp.f32 %v1086_v35 }
 0x490   : > { %2196 = vrcp.f32 %v1089_v45 }
 0x494   : > { %v2193_v30 = vpop.eup %2192 }
 0x495   : > { %v2195_v39 = vpop.eup %2194 }
 0x496   : > { %v2197_v28 = vpop.eup %2196  ;;  %v1135_v5 = vmul.f32 %v2195_v39, %v1124_v34 }
 0x497   : > { %v1136_v11 = vmul.f32 %v2197_v28, %v1126_v53 }
 0x498   : > { %v1383_v58 = vpop.f32.mrf.mxu1 }
 0x499   : > { %v1397_v7 = vmul.f32 %v2191_v55, %v1383_v58  ;;  %v2057_v8 = vpack.i.bf16 %v1136_v11, %v1135_v5 }
 0x49d   : > { %558 = vadd.xlane.f32.xlu2 %v557_v26 }
 0x49f   : > { %v1353_v10 = vpop.xlane.xlu2 %1352 }
 0x4a0   : > { %v1385_v33 = vpop.f32.mrf.mxu1  ;;  %2198 = vrcp.f32 %v1353_v10 }
 0x4a1   : > { %v1398_v4 = vmul.f32 %v2193_v30, %v1385_v33 }
 0x4a2   : > { %v1350_v47 = vpop.xlane.xlu0 %1349 }
 0x4a3   : > { %v2047_v27 = vpack.i.bf16 %v1398_v4, %v1397_v7  ;;  %2200 = vrcp.f32 %v1350_v47 }
 0x4a5   : > { %2048 = vrot.lane.b32.xlu0 %v2047_v27, %s2267_s10  ;;  %v2014_v0 = vpop.permute.xlu1 %2013 }
 0x4a6   : > { %v2199_v51 = vpop.eup %2198  ;;  %v2016_v56 = vunpack.i.h.bf16 %v2014_v0  ;;  %v2015_v42 = vunpack.i.l.bf16 %v2014_v0 }
 0x4a9   : > { %v2201_v48 = vpop.eup %2200 }
 0x4ad   : > { %2053 = vrot.lane.b32.xlu0 %v2052_v25, %s2263_s30  ;;  %v1388_v6 = vpop.f32.mrf.mxu1  ;;  %v1937_v25 = vld [vmem:[%s3059_s4] sm:$0xff] }
 0x4ae   : > { %v1399_v14 = vmul.f32 %v2201_v48, %v1388_v6  ;;  %1714 = vmatpush.bf16.msra.mxu2 %v1937_v25 }
 0x4b5   : > { %2058 = vrot.lane.b32.xlu0 %v2057_v8, %s2266_s9  ;;  %v1390_v32 = vpop.f32.mrf.mxu1 }
 0x4b6   : > { %v1400_v13 = vmul.f32 %v2199_v51, %v1390_v32 }
 0x4b8   : > { %v2067_v60 = vpack.i.bf16 %v1400_v13, %v1399_v14 }
 0x4ba   : > { %2068 = vrot.lane.b32.xlu2 %v2067_v60, %s2267_s10  ;;  %v2029_v62 = vpop.permute.xlu0 %2028 }
 0x4bb   : > { %v2031_v36 = vunpack.i.h.bf16 %v2029_v62  ;;  %v2030_v9 = vunpack.i.l.bf16 %v2029_v62 }
 0x4bd   : > { %2073 = vrot.lane.b32.xlu0 %v2072_v21, %s2264_s7  ;;  %v2020_v21 = vunpack.i.l.bf16 %v2981_v40 }
 0x4c2   : > { %v2034_v38 = vpop.permute.xlu0 %2033 }
 0x4c3   : > { %v2036_v55 = vunpack.i.h.bf16 %v2034_v38  ;;  %v2035_v7 = vunpack.i.l.bf16 %v2034_v38 }
 0x4ce   : > { %v2024_v1 = vpop.permute.xlu2 %2023 }
 0x4cf   : > { %v2026_v12 = vunpack.i.h.bf16 %v2024_v1  ;;  %v2025_v3 = vunpack.i.l.bf16 %v2024_v1 }
 0x4d0   : > { %v556_v23 = vpop.xlane.xlu1 %555 }
 0x4d1   : > { %v1650_v17 = vsel %vm1649_vm5, %v2959_v41, %v2025_v3  ;;  %v1651_v19 = vsel %vm1649_vm5, %v2976_v59, %v2026_v12  ;;  %v2021_v41 = vunpack.i.h.bf16 %v2981_v40 }
 0x4d2   : > { %v1655_v49 = vsel %vm1654_vm6, %v1650_v17, %v2015_v42  ;;  %v1656_v57 = vsel %vm1654_vm6, %v1651_v19, %v2016_v56  ;;  %v2077_v17 = vld [vmem:[%s3060_s5] ss:$0 sm:$0xff] }
 0x4e8   : > { %v2064_v6 = vpop.permute.xlu1 %2063 }
 0x4e9   : > { %v2066_v48 = vunpack.i.h.bf16 %v2064_v6  ;;  %v2065_v32 = vunpack.i.l.bf16 %v2064_v6 }
 0x4f3   : > { %v2039_v24 = vpop.permute.xlu0 %2038 }
 0x4f4   : > { %v2040_v33 = vunpack.i.l.bf16 %v2039_v24  ;;  %v2041_v45 = vunpack.i.h.bf16 %v2039_v24 }
 0x4fb   : > { %v2044_v44 = vpop.permute.xlu0 %2043 }
 0x4fc   : > { %v2046_v46 = vunpack.i.h.bf16 %v2044_v44  ;;  %v2045_v2 = vunpack.i.l.bf16 %v2044_v44 }
 0x4fe   : > { %v1660_v20 = vsel %vm1659_vm7, %v1655_v49, %v2045_v2  ;;  %v1661_v52 = vsel %vm1659_vm7, %v1656_v57, %v2046_v46 }
 0x4ff   : > { %v1665_v43 = vsel %vm1664_vm8, %v1660_v20, %v2020_v21  ;;  %v1666_v18 = vsel %vm1664_vm8, %v1661_v52, %v2021_v41 }
 0x510   : > { %v559_v15 = vpop.xlane.xlu2 %558 }
 0x511   : > { %2202 = vrcp.f32 %v559_v15 }
 0x512   : > { %2204 = vrcp.f32 %v556_v23 }
 0x517   : > { %v2049_v59 = vpop.permute.xlu0 %2048  ;;  %v2203_v54 = vpop.eup %2202 }
 0x518   : > { %v2051_v50 = vunpack.i.h.bf16 %v2049_v59  ;;  %v2050_v63 = vunpack.i.l.bf16 %v2049_v59  ;;  %v2205_v58 = vpop.eup %2204  ;;  %v606_v26 = vmul.f32 %v2203_v54, %v2698_v37  ;;  %v2069_v14 = vpop.permute.xlu2 %2068 }
 0x519   : > { %v605_v30 = vmul.f32 %v2205_v58, %v2694_v31  ;;  %v2071_v29 = vunpack.i.h.bf16 %v2069_v14  ;;  %v2070_v62 = vunpack.i.l.bf16 %v2069_v14 }
 0x51a   : > { %v1670_v34 = vsel %vm1669_vm9, %v1665_v43, %v2050_v63  ;;  %v1671_v16 = vsel %vm1669_vm9, %v1666_v18, %v2051_v50  ;;  %v1648_v4 = vsel %vm485_vm2, %v606_v26, %v2036_v55 }
 0x51b   : > { %v1675_v61 = vsel %vm1674_vm10, %v1670_v34, %v2030_v9  ;;  %v1676_v35 = vsel %vm1674_vm10, %v1671_v16, %v2031_v36  ;;  %v1647_v10 = vsel %vm485_vm2, %v605_v30, %v2035_v7  ;;  %v1653_v37 = vsel %vm1649_vm5, %v1648_v4, %v2041_v45 }
 0x51c   : > { %v1679_v53 = vpack.c.bf16 %v1676_v35, %v1675_v61  ;;  %v1652_v5 = vsel %vm1649_vm5, %v1647_v10, %v2040_v33 }
 0x51e   : > { %1924 = vmatmul.msk.bf16.vlgmr.msra.gmra.mxu2 %vm425_vm3, %v1679_v53 }
 0x51f   : > { %v2054_v22 = vpop.permute.xlu0 %2053 }
 0x520   : > { %v2056_v27 = vunpack.i.h.bf16 %v2054_v22  ;;  %v2055_v40 = vunpack.i.l.bf16 %v2054_v22 }
 0x522   : > { %v1658_v11 = vsel %vm1654_vm6, %v1653_v37, %v2056_v27  ;;  %v1657_v31 = vsel %vm1654_vm6, %v1652_v5, %v2055_v40 }
 0x527   : > { %v2059_v39 = vpop.permute.xlu0 %2058 }
 0x528   : > { %v2061_v47 = vunpack.i.h.bf16 %v2059_v39  ;;  %v2060_v28 = vunpack.i.l.bf16 %v2059_v39 }
 0x52a   : > { %v1662_v8 = vsel %vm1659_vm7, %v1657_v31, %v2060_v28  ;;  %v1663_v51 = vsel %vm1659_vm7, %v1658_v11, %v2061_v47 }
 0x52b   : > { %v1667_v13 = vsel %vm1664_vm8, %v1662_v8, %v2065_v32  ;;  %v1668_v60 = vsel %vm1664_vm8, %v1663_v51, %v2066_v48 }
 0x52c   : > { %v1672_v1 = vsel %vm1669_vm9, %v1667_v13, %v2070_v62  ;;  %v1673_v12 = vsel %vm1669_vm9, %v1668_v60, %v2071_v29 }
 0x52f   : > { %v2074_v25 = vpop.permute.xlu0 %2073 }
 0x530   : > { %v2076_v38 = vunpack.i.h.bf16 %v2074_v25  ;;  %v2075_v24 = vunpack.i.l.bf16 %v2074_v25 }
 0x532   : > { %v1677_v3 = vsel %vm1674_vm10, %v1672_v1, %v2075_v24  ;;  %v1678_v44 = vsel %vm1674_vm10, %v1673_v12, %v2076_v38 }
 0x533   : > { %v1680_v0 = vpack.c.bf16 %v1678_v44, %v1677_v3 }
 0x535   : > { %1925 = vmatmul.msk.bf16.gmra.mxu2 %vm425_vm3, %v1680_v0 }
 0x5a1   : > { %v1716_v19 = vpop.f32.mrf.mxu2 }
 0x5a2   : > { %v1717_v46 = vadd.f32 %v2077_v17, %v1716_v19 }
 0x5a4   : > { %1726 = vst.msk [vmem:[%s2344_s17] sm:$0xff] %vm425_vm3, %v1717_v46 }
 0x5a9   : > { %v1718_v2 = vpop.f32.mrf.mxu2 }
 0x5aa   : > { %v1719_v56 = vadd.f32 %v2077_v17, %v1718_v2 }
 0x5ac   : > { %1727 = vst.msk [vmem:[%s2344_s17 + $0x8] sm:$0xff] %vm425_vm3, %v1719_v56 }
 0x5b8   : > { %v1721_v42 = vpop.f32.mrf.mxu2 }
 0x5b9   : > { %v1722_v49 = vadd.f32 %v2077_v17, %v1721_v42 }
 0x5bb   : > { %1728 = vst.msk [vmem:[%s2344_s17 + $0x10] sm:$0xff] %vm425_vm3, %v1722_v49 }
 0x5c0   : > { %v1723_v57 = vpop.f32.mrf.mxu2 }
 0x5c1   : > { %v1724_v20 = vadd.f32 %v2077_v17, %v1723_v57 }
 0x5c3   : > { %1729 = vst.msk [vmem:[%s2344_s17 + $0x18] sm:$0xff] %vm425_vm3, %v1724_v20 }
 0x5c4 PF: > { %s16_s25 = sadd.s32 1, %s2244_s25   ;;  %s3062_s21 = smov %s2236_s23 }
 0x5c5   : > { %p13_p8 = scmp.ge.s32.totalorder %s16_s25, 6   ;;  %s3063_s22 = smov %s2240_s24 }
 0x5c6   : > { %s3064_s23 = smov %s3067_s26  ;;  %s3065_s24 = smov %s3071_s27 }
 0x5c7   :  { %15 = sbr.rel (!%p13_p8) target bundleno = 3 (0x3), region = 81 }

// kernel: block_forward.14
= control target key start
LH: loop header
LB: loop body
LE: loop exit
PB: predicated region body
PF: predicated region fallthrough
CT: control target
= control target key end

     0   :  { %s349_s12 = smov 0   ;;  %s375_s0 = inlined_call_operand.vmem [shape: f32[128,32], index: 0, kind: input, shape index: {}]   ;;  %s376_s1 = inlined_call_operand.vmem [shape: bf16[32,128], index: 1, kind: input, shape index: {}]   ;;  %s377_s2 = inlined_call_operand.vmem [shape: f32[1,128], index: 2, kind: input, shape index: {}]   ;;  %s378_s3 = inlined_call_operand.vmem [shape: f32[128,128], index: 3, kind: output, shape index: {}]  }
   0x1 LB: > { %s287_s13 = sadd.s32 4294967295, %s327_s12   ;;  %p291_p0 = scmp.ge.s32.totalorder %s327_s12, 1  ;;  %s327_s12 = sphi %s349_s12, %s13_s12  }
   0x2   : > { %p138_p1 = scmp.lt.s32.totalorder %s327_s12, 5 }
   0x4   : > { %p139_p2 = pnand %p291_p0, %p138_p1 }
   0x5   : > { %s292_s16 = sshll.u32 (!%p139_p2), %s287_s13, 2 }
   0x6   : > { %142 = sbr.rel (%p139_p2) target bundleno = 157 (0x9d), region = 32  ;;  %p163_p3 = scmp.lt.s32.totalorder (!%p139_p2), %s292_s16, 15 }
   0xb   : > { %v309_v0 = vld [vmem:[%s376_s1 + $0x8] sm:$0xff]  ;;  %v308_v1 = vld [vmem:[%s376_s1] sm:$0xff]  ;;  %s380_s16 = smov (!%p163_p3, %s292_s16), 15  ;;  %vm201_vm0 = vcmask 261120  }
   0xc   : > { %214 = vmatpush.bf16.msra.mxu0 %v309_v0  ;;  %310 = vmatpush.bf16.msra.mxu1 %v309_v0  ;;  %s293_s19 = sshll.u32 %s380_s16, 3  ;;  %v320_v8 = vld [vmem:[%s377_s2] ss:$0 sm:$0xff] }
   0xd   : > { %s166_s22 = scalar_lea.vmem %s375_s0, %s293_s19  ;;  %s172_s27 = scalar_lea.vmem %s378_s3, %s293_s19 }
   0xe   : > { %v175_v2 = vld [vmem:[%s166_s22] sm:$0xff]  ;;  %v176_v3 = vld [vmem:[%s166_s22 + $0x8] sm:$0xff]  ;;  %v177_v4 = vld [vmem:[%s166_s22 + $0x10] sm:$0xff] }
   0xf   : > { %v179_v5 = vpack.c.bf16 %v176_v3, %v175_v2  ;;  %v178_v6 = vld [vmem:[%s166_s22 + $0x18] sm:$0xff] }
  0x10   : > { %215 = vmatpush.bf16.msra.mxu0 %v308_v1  ;;  %311 = vmatpush.bf16.msra.mxu1 %v308_v1  ;;  %v180_v7 = vpack.c.bf16 %v178_v6, %v177_v4 }
  0x13   : > { %304 = vmatmul.msk.bf16.vlgmr.msra.gmra.mxu0 %vm201_vm0, %v179_v5  ;;  %305 = vmatmul.msk.bf16.vlgmr.msra.gmra.mxu1 %vm201_vm0, %v180_v7 }
  0x90   : > { %v217_v9 = vpop.f32.mrf.mxu0  ;;  %v222_v11 = vpop.f32.mrf.mxu1 }
  0x91   : > { %v218_v10 = vadd.f32 %v320_v8, %v217_v9  ;;  %v223_v12 = vadd.f32 %v320_v8, %v222_v11 }
  0x93   : > { %227 = vst [vmem:[%s172_s27] sm:$0xff] %v218_v10 }
  0x94   : > { %229 = vst [vmem:[%s172_s27 + $0x10] sm:$0xff] %v223_v12 }
  0x98   : > { %v219_v13 = vpop.f32.mrf.mxu0  ;;  %v224_v15 = vpop.f32.mrf.mxu1 }
  0x99   : > { %v220_v14 = vadd.f32 %v320_v8, %v219_v13  ;;  %v225_v16 = vadd.f32 %v320_v8, %v224_v15 }
  0x9b   : > { %228 = vst [vmem:[%s172_s27 + $0x8] sm:$0xff] %v220_v14 }
  0x9c   : > { %230 = vst [vmem:[%s172_s27 + $0x18] sm:$0xff] %v225_v16 }
  0x9d PF: > { %s13_s12 = sadd.s32 1, %s327_s12  }
  0x9e   : > { %p10_p4 = scmp.ge.s32.totalorder %s13_s12, 6  }
  0xa0   :  { %12 = sbr.rel (!%p10_p4) target bundleno = 1 (0x1), region = 62 }

// kernel: tile.28
= control target key start
LH: loop header
LB: loop body
LE: loop exit
PB: predicated region body
PF: predicated region fallthrough
CT: control target
= control target key end

     0   :  { %s22_s0 = inlined_call_operand.vmem [shape: f32[128], index: 0, kind: input, shape index: {}]   ;;  %s23_s1 = inlined_call_operand.vmem [shape: f32[8,128], index: 1, kind: output, shape index: {}]  }
   0x1   :  { %v4_v0 = vld [vmem:[%s22_s0] ss:$0 sm:$0xff] }
   0x2   :  { %5 = vst [vmem:[%s23_s1] sm:$0xff] %v4_v0 }

// kernel: block_forward.16
= control target key start
LH: loop header
LB: loop body
LE: loop exit
PB: predicated region body
PF: predicated region fallthrough
CT: control target
= control target key end

     0   :  { %s600_s12 = smov 0   ;;  %s758_s0 = inlined_call_operand.vmem [shape: f32[128,128], index: 0, kind: input, shape index: {}]   ;;  %s759_s1 = inlined_call_operand.vmem [shape: bf16[128,32], index: 1, kind: input, shape index: {}]   ;;  %s760_s2 = inlined_call_operand.vmem [shape: f32[1,32], index: 2, kind: input, shape index: {}]   ;;  %s761_s3 = inlined_call_operand.vmem [shape: f32[128,32], index: 3, kind: output, shape index: {}]  }
   0x1 LB: > { %s488_s13 = sadd.s32 4294967295, %s578_s12   ;;  %p492_p0 = scmp.ge.s32.totalorder %s578_s12, 1  ;;  %s578_s12 = sphi %s600_s12, %s13_s12  }
   0x2   : > { %p138_p1 = scmp.lt.s32.totalorder %s578_s12, 5 }
   0x4   : > { %p139_p2 = pnand %p492_p0, %p138_p1 }
   0x5   : > { %s493_s16 = sshll.u32 (!%p139_p2), %s488_s13, 2 }
   0x6   : > { %142 = sbr.rel (%p139_p2) target bundleno = 211 (0xd3), region = 32  ;;  %p163_p3 = scmp.lt.s32.totalorder (!%p139_p2), %s493_s16, 15 }
   0xb   : > { %v538_v0 = vld [vmem:[%s759_s1 + $0x38] sm:$0xff]  ;;  %v537_v1 = vld [vmem:[%s759_s1 + $0x30] sm:$0xff]  ;;  %s777_s16 = smov (!%p163_p3, %s493_s16), 15  ;;  %v536_v2 = vld [vmem:[%s759_s1 + $0x28] sm:$0xff] }
   0xc   : > { %408 = vmatpush.bf16.msra.mxu0 %v538_v0  ;;  %539 = vmatpush.bf16.msra.mxu1 %v538_v0  ;;  %s494_s19 = sshll.u32 %s777_s16, 3  ;;  %v535_v8 = vld [vmem:[%s759_s1 + $0x20] sm:$0xff]  ;;  %v534_v19 = vld [vmem:[%s759_s1 + $0x18] sm:$0xff]  ;;  %v533_v24 = vld [vmem:[%s759_s1 + $0x10] sm:$0xff] }
   0xd   : > { %s166_s24 = scalar_lea.vmem %s758_s0, %s494_s19  ;;  %v532_v28 = vld [vmem:[%s759_s1 + $0x8] sm:$0xff]  ;;  %v531_v40 = vld [vmem:[%s759_s1] sm:$0xff]  ;;  %s172_s13 = scalar_lea.vmem %s761_s3, %s494_s19 }
   0xe   : > { %v625_v3 = vld [vmem:[%s166_s24] sm:$0xff]  ;;  %v627_v4 = vld [vmem:[%s166_s24 + $0x8] sm:$0xff]  ;;  %v629_v5 = vld [vmem:[%s166_s24 + $0x10] sm:$0xff] }
   0xf   : > { %v632_v6 = vmul.f32 0.70710677, %v625_v3  ;;  %v635_v7 = vmul.f32 0.70710677, %v627_v4  ;;  %v640_v9 = vld [vmem:[%s166_s24 + $0x18] sm:$0xff] }
  0x10   : > { %409 = vmatpush.bf16.msra.mxu0 %v537_v1  ;;  %540 = vmatpush.bf16.msra.mxu1 %v537_v1  ;;  %v643_v10 = vmul.f32 0.70710677, %v629_v5  ;;  %v652_v13 = vmul.f32 0.70710677, %v640_v9 }
  0x11   : > { %v646_v11 = vand.u32 2147483647, %v632_v6  ;;  %v649_v12 = vand.u32 2147483647, %v635_v7 }
  0x12   : > { %v655_v14 = vand.u32 2147483647, %v643_v10  ;;  %v660_v17 = vand.u32 2147483647, %v652_v13 }
  0x13   : > { %v190_v15 = vmul.f32 0.3275911, %v646_v11  ;;  %v191_v16 = vmul.f32 0.3275911, %v649_v12  ;;  %v294_v33 = vsub.f32 0.0, %v646_v11  ;;  %v295_v35 = vsub.f32 0.0, %v649_v12 }
  0x14   : > { %410 = vmatpush.bf16.msra.mxu0 %v536_v2  ;;  %541 = vmatpush.bf16.msra.mxu1 %v536_v2  ;;  %v192_v18 = vmul.f32 0.3275911, %v655_v14  ;;  %v193_v22 = vmul.f32 0.3275911, %v660_v17 }
  0x15   : > { %v194_v20 = vadd.f32 1.0, %v190_v15  ;;  %v195_v21 = vadd.f32 1.0, %v191_v16 }
  0x16   : > { %v196_v23 = vadd.f32 1.0, %v192_v18  ;;  %v670_v25 = vadd.f32 1.0, %v193_v22  ;;  %v296_v18 = vsub.f32 0.0, %v655_v14 }
  0x17   : > { %556 = vrcp.f32 %v194_v20  ;;  %v207_v26 = vand.u32 2147483647, %v194_v20  ;;  %v209_v29 = vand.u32 2147483648, %v194_v20  ;;  %v222_v32 = vand.u32 2147483647, %v195_v21 }
  0x18   : > { %411 = vmatpush.bf16.msra.mxu0 %v535_v8  ;;  %542 = vmatpush.bf16.msra.mxu1 %v535_v8  ;;  %558 = vrcp.f32 %v195_v21  ;;  %vm203_vm0 = vweird.f32 %v194_v20  ;;  %vm218_vm1 = vweird.f32 %v195_v21  ;;  %v224_v39 = vand.u32 2147483648, %v195_v21 }
  0x19   : > { %560 = vrcp.f32 %v196_v23  ;;  %vm678_vm3 = vcmp.eq.f32.partialorder %v207_v26, 8.507059e+37  ;;  %v210_v41 = vor.u32 1.1754944e-38, %v209_v29  ;;  %vm685_vm5 = vcmp.eq.f32.partialorder %v222_v32, 8.507059e+37 }
  0x1a   : > { %562 = vrcp.f32 %v670_v25  ;;  %v237_v46 = vand.u32 2147483647, %v196_v23  ;;  %v239_v47 = vand.u32 2147483648, %v196_v23  ;;  %vm233_vm7 = vweird.f32 %v196_v23 }
  0x1b   : > { %v225_v54 = vor.u32 1.1754944e-38, %v224_v39  ;;  %vm248_vm10 = vweird.f32 %v670_v25  ;;  %v252_v55 = vand.u32 2147483647, %v670_v25  ;;  %v254_v59 = vand.u32 2147483648, %v670_v25 }
  0x1c   : > { %412 = vmatpush.bf16.msra.mxu0 %v534_v19  ;;  %543 = vmatpush.bf16.msra.mxu1 %v534_v19  ;;  %vm710_vm12 = vcmp.eq.f32.partialorder %v237_v46, 8.507059e+37  ;;  %v240_v63 = vor.u32 1.1754944e-38, %v239_v47  ;;  %v297_v32 = vsub.f32 0.0, %v660_v17 }
  0x1d   : > { %v557_v27 = vpop.eup %556  ;;  %vm253_vm15 = vcmp.eq.f32.partialorder %v252_v55, 8.507059e+37 }
  0x1e   : > { %v559_v30 = vpop.eup %558  ;;  %v199_v31 = vmul.f32 %v557_v27, %v194_v20  ;;  %vm204_vm2 = vweird.f32 %v557_v27  ;;  %v298_v20 = vmul.f32 %v294_v33, %v646_v11 }
  0x1f   : > { %v214_v34 = vmul.f32 %v559_v30, %v195_v21  ;;  %v561_v36 = vpop.eup %560  ;;  %vm219_vm4 = vweird.f32 %v559_v30  ;;  %vm690_vm6 = vmor %vm203_vm0, %vm204_vm2  ;;  %vm318_vm0 = vcmp.lt.f32.partialorder %v632_v6, 0.0  ;;  %vm320_vm2 = vcmp.lt.f32.partialorder %v643_v10, 0.0 }
  0x20   : > { %413 = vmatpush.bf16.msra.mxu0 %v533_v24  ;;  %544 = vmatpush.bf16.msra.mxu1 %v533_v24  ;;  %v200_v37 = vsub.f32 1.0, %v199_v31  ;;  %v229_v43 = vmul.f32 %v561_v36, %v196_v23  ;;  %vm234_vm8 = vweird.f32 %v561_v36  ;;  %v563_v51 = vpop.eup %562  ;;  %vm695_vm9 = vmor %vm218_vm1, %vm219_vm4  ;;  %v299_v24 = vmul.f32 %v295_v35, %v649_v12 }
  0x21   : > { %v215_v42 = vsub.f32 1.0, %v214_v34  ;;  %v244_v58 = vmul.f32 %v563_v51, %v670_v25  ;;  %vm706_vm11 = vmor %vm233_vm7, %vm234_vm8  ;;  %vm249_vm13 = vweird.f32 %v563_v51  ;;  %v300_v12 = vmul.f32 %v296_v18, %v655_v14 }
  0x22   : > { %v201_v44 = vmul.f32 %v557_v27, %v200_v37  ;;  %v230_v50 = vsub.f32 1.0, %v229_v43  ;;  %vm730_vm14 = vmor %vm248_vm10, %vm249_vm13  ;;  %v302_v34 = vmul.f32 1.442695, %v298_v20  ;;  %v304_v37 = vmul.f32 1.442695, %v299_v24 }
  0x23   : > { %v216_v49 = vmul.f32 %v559_v30, %v215_v42  ;;  %v245_v8 = vsub.f32 1.0, %v244_v58  ;;  %v301_v43 = vmul.f32 %v297_v32, %v660_v17  ;;  %vm319_vm1 = vcmp.lt.f32.partialorder %v635_v7, 0.0 }
  0x24   : > { %414 = vmatpush.bf16.msra.mxu0 %v532_v28  ;;  %545 = vmatpush.bf16.msra.mxu1 %v532_v28  ;;  %v202_v52 = vadd.f32 %v557_v27, %v201_v44  ;;  %v231_v57 = vmul.f32 %v561_v36, %v230_v50  ;;  %v255_v28 = vor.u32 1.1754944e-38, %v254_v59  ;;  %v306_v44 = vmul.f32 1.442695, %v300_v12 }
  0x25   : > { %v217_v56 = vadd.f32 %v559_v30, %v216_v49  ;;  %v246_v22 = vmul.f32 %v563_v51, %v245_v8  ;;  %564 = vpow2.f32 %v302_v34  ;;  %vm427_vm4 = vcmask 261120  }
  0x26   : > { %v206_v60 = vsel %vm690_vm6, %v557_v27, %v202_v52  ;;  %v232_v2 = vadd.f32 %v561_v36, %v231_v57  ;;  %566 = vpow2.f32 %v304_v37  ;;  %v308_v52 = vmul.f32 1.442695, %v301_v43 }
  0x27   : > { %v211_v0 = vsel %vm678_vm3, %v210_v41, %v206_v60  ;;  %v221_v1 = vsel %vm695_vm9, %v559_v30, %v217_v56  ;;  %v247_v11 = vadd.f32 %v563_v51, %v246_v22  ;;  %568 = vpow2.f32 %v306_v44 }
  0x28   : > { %415 = vmatpush.bf16.msra.mxu0 %v531_v40  ;;  %546 = vmatpush.bf16.msra.mxu1 %v531_v40  ;;  %v226_v15 = vsel %vm685_vm5, %v225_v54, %v221_v1  ;;  %v258_v16 = vmul.f32 1.0614054, %v211_v0  ;;  %v236_v21 = vsel %vm706_vm11, %v561_v36, %v232_v2  ;;  %570 = vpow2.f32 %v308_v52 }
  0x29   : > { %v259_v19 = vmul.f32 1.0614054, %v226_v15  ;;  %v241_v26 = vsel %vm710_vm12, %v240_v63, %v236_v21  ;;  %v251_v35 = vsel %vm730_vm14, %v563_v51, %v247_v11  ;;  %v179_v11 = vmul.f32 0.5, %v627_v4 }
  0x2a   : > { %v262_v23 = vadd.f32 -1.4531521, %v258_v16  ;;  %v260_v30 = vmul.f32 1.0614054, %v241_v26  ;;  %v256_v38 = vsel %vm253_vm15, %v255_v28, %v251_v35  ;;  %vm321_vm3 = vcmp.lt.f32.partialorder %v652_v13, 0.0 }
  0x2b   : > { %v263_v29 = vadd.f32 -1.4531521, %v259_v19  ;;  %v261_v40 = vmul.f32 1.0614054, %v256_v38  ;;  %v565_v57 = vpop.eup %564  ;;  %v181_v37 = vmul.f32 0.5, %v640_v9 }
  0x2c   : > { %v266_v31 = vmul.f32 %v262_v23, %v211_v0  ;;  %v264_v25 = vadd.f32 -1.4531521, %v260_v30  ;;  %v567_v60 = vpop.eup %566 }
  0x2d   : > { %v267_v33 = vmul.f32 %v263_v29, %v226_v15  ;;  %v265_v46 = vadd.f32 -1.4531521, %v261_v40  ;;  %v569_v2 = vpop.eup %568 }
  0x2e   : > { %v270_v36 = vadd.f32 1.4214138, %v266_v31  ;;  %v268_v41 = vmul.f32 %v264_v25, %v241_v26  ;;  %v571_v24 = vpop.eup %570 }
  0x2f   : > { %v271_v39 = vadd.f32 1.4214138, %v267_v33  ;;  %v269_v49 = vmul.f32 %v265_v46, %v256_v38 }
  0x30   : > { %v274_v42 = vmul.f32 %v270_v36, %v211_v0  ;;  %v272_v14 = vadd.f32 1.4214138, %v268_v41 }
  0x31   : > { %v275_v45 = vmul.f32 %v271_v39, %v226_v15  ;;  %v273_v54 = vadd.f32 1.4214138, %v269_v49 }
  0x32   : > { %v278_v47 = vadd.f32 -0.28449672, %v274_v42  ;;  %v276_v50 = vmul.f32 %v272_v14, %v241_v26  ;;  %v555_v42 = vld [vmem:[%s760_s2] ss:$0 sm:$0xff] }
  0x33   : > { %v279_v48 = vadd.f32 -0.28449672, %v275_v45  ;;  %v277_v17 = vmul.f32 %v273_v54, %v256_v38 }
  0x34   : > { %v282_v51 = vmul.f32 %v278_v47, %v211_v0  ;;  %v280_v55 = vadd.f32 -0.28449672, %v276_v50 }
  0x35   : > { %v283_v53 = vmul.f32 %v279_v48, %v226_v15  ;;  %v281_v63 = vadd.f32 -0.28449672, %v277_v17 }
  0x36   : > { %v286_v56 = vadd.f32 0.2548296, %v282_v51  ;;  %v284_v59 = vmul.f32 %v280_v55, %v241_v26 }
  0x37   : > { %v287_v58 = vadd.f32 0.2548296, %v283_v53  ;;  %v285_v18 = vmul.f32 %v281_v63, %v256_v38 }
  0x38   : > { %v290_v61 = vmul.f32 %v286_v56, %v211_v0  ;;  %v288_v1 = vadd.f32 0.2548296, %v284_v59  ;;  %v178_v0 = vmul.f32 0.5, %v625_v3  ;;  %v180_v3 = vmul.f32 0.5, %v629_v5 }
  0x39   : > { %v291_v62 = vmul.f32 %v287_v58, %v226_v15  ;;  %v289_v22 = vadd.f32 0.2548296, %v285_v18 }
  0x3a   : > { %v310_v8 = vmul.f32 %v565_v57, %v290_v61  ;;  %v292_v19 = vmul.f32 %v288_v1, %v241_v26 }
  0x3b   : > { %v311_v16 = vmul.f32 %v567_v60, %v291_v62  ;;  %v293_v28 = vmul.f32 %v289_v22, %v256_v38 }
  0x3c   : > { %v314_v20 = vsub.f32 1.0, %v310_v8  ;;  %v312_v23 = vmul.f32 %v569_v2, %v292_v19 }
  0x3d   : > { %v315_v21 = vsub.f32 1.0, %v311_v16  ;;  %v313_v32 = vmul.f32 %v571_v24, %v293_v28 }
  0x3e   : > { %v322_v27 = vsub.f32 0.0, %v314_v20  ;;  %v316_v29 = vsub.f32 1.0, %v312_v23 }
  0x3f   : > { %v323_v15 = vsub.f32 0.0, %v315_v21  ;;  %v317_v34 = vsub.f32 1.0, %v313_v32 }
  0x40   : > { %v326_v30 = vsel %vm318_vm0, %v322_v27, %v314_v20  ;;  %v324_v6 = vsub.f32 0.0, %v316_v29 }
  0x41   : > { %v327_v26 = vsel %vm319_vm1, %v323_v15, %v315_v21  ;;  %v330_v31 = vadd.f32 1.0, %v326_v30  ;;  %v325_v36 = vsub.f32 0.0, %v317_v34 }
  0x42   : > { %v331_v12 = vadd.f32 1.0, %v327_v26  ;;  %v328_v35 = vsel %vm320_vm2, %v324_v6, %v316_v29 }
  0x43   : > { %v334_v33 = vmul.f32 %v330_v31, %v178_v0  ;;  %v332_v25 = vadd.f32 1.0, %v328_v35  ;;  %v329_v10 = vsel %vm321_vm3, %v325_v36, %v317_v34 }
  0x44   : > { %v335_v7 = vmul.f32 %v331_v12, %v179_v11  ;;  %v333_v38 = vadd.f32 1.0, %v329_v10 }
  0x45   : > { %v336_v39 = vmul.f32 %v332_v25, %v180_v3 }
  0x46   : > { %v338_v4 = vpack.c.bf16 %v335_v7, %v334_v33  ;;  %v337_v40 = vmul.f32 %v333_v38, %v181_v37 }
  0x48   : > { %416 = vmatmul.bf16.vlgmr.msra.gmra.mxu0 %v338_v4  ;;  %v339_v41 = vpack.c.bf16 %v337_v40, %v336_v39 }
  0x4a   : > { %421 = vmatmul.bf16.vlgmr.msra.gmra.mxu1 %v339_v41 }
  0xc5   : > { %v417_v5 = vpop.f32.mrf.mxu0 }
  0xc6   : > { %v418_v13 = vadd.f32 %v555_v42, %v417_v5 }
  0xc7   : > { %v422_v9 = vpop.f32.mrf.mxu1 }
  0xc8   : > { %428 = vst.msk [vmem:[%s172_s13] sm:$0xff] %vm427_vm4, %v418_v13  ;;  %v423_v43 = vadd.f32 %v555_v42, %v422_v9 }
  0xca   : > { %430 = vst.msk [vmem:[%s172_s13 + $0x10] sm:$0xff] %vm427_vm4, %v423_v43 }
  0xcd   : > { %v419_v44 = vpop.f32.mrf.mxu0 }
  0xce   : > { %v420_v45 = vadd.f32 %v555_v42, %v419_v44 }
  0xcf   : > { %v424_v46 = vpop.f32.mrf.mxu1 }
  0xd0   : > { %429 = vst.msk [vmem:[%s172_s13 + $0x8] sm:$0xff] %vm427_vm4, %v420_v45  ;;  %v425_v14 = vadd.f32 %v555_v42, %v424_v46 }
  0xd2   : > { %431 = vst.msk [vmem:[%s172_s13 + $0x18] sm:$0xff] %vm427_vm4, %v425_v14 }
  0xd3 PF: > { %s13_s12 = sadd.s32 1, %s578_s12  }
  0xd4   : > { %p10_p4 = scmp.ge.s32.totalorder %s13_s12, 6  }
  0xd6   :  { %12 = sbr.rel (!%p10_p4) target bundleno = 1 (0x1), region = 62 }

// kernel: block_forward.15
= control target key start
LH: loop header
LB: loop body
LE: loop exit
PB: predicated region body
PF: predicated region fallthrough
CT: control target
= control target key end

     0   :  { %s992_s12 = smov 0   ;;  %s994_s13 = smov 0   ;;  %s1260_s0 = inlined_call_operand.vmem [shape: f32[2,2,6,1280], index: 0, kind: input, shape index: {}]   ;;  %s1261_s1 = inlined_call_operand.vmem [shape: f32[9,1024], index: 1, kind: input, shape index: {}]   ;;  %s1262_s2 = inlined_call_operand.vmem [shape: f32[1,1024], index: 2, kind: input, shape index: {}]   ;;  %s1263_s3 = inlined_call_operand.vmem [shape: f32[2,2,4,1024], index: 3, kind: output, shape index: {}]  }
   0x1   :  { %s996_s14 = smov 0   ;;  %s998_s15 = smov 0  }
   0x2   :  { %s1000_s16 = smov 0  }
   0x3 LB: > { %s22_s17 = sadd.s32 1, %s962_s14  ;;  %s25_s18 = sadd.s32 1, %s966_s15  ;;  %s970_s16 = sphi %s1000_s16, %s13_s16   ;;  %s966_s15 = sphi %s998_s15, %s1267_s15   ;;  %s962_s14 = sphi %s996_s14, %s1266_s14   ;;  %s958_s13 = sphi %s994_s13, %s1265_s13   ;;  %s954_s12 = sphi %s992_s12, %s1264_s12  }
   0x4   : > { %p23_p0 = scmp.ge.s32.totalorder %s22_s17, 2  ;;  %p867_p1 = scmp.ge.s32.totalorder %s970_s16, 1 }
   0x5   : > { %p157_p2 = scmp.lt.s32.totalorder %s970_s16, 5 }
   0x6   : > { %s1269_s17 = smov (%p23_p0, %s22_s17), 0  ;;  %s1271_s18 = smov (!%p23_p0, %s25_s18), %s966_s15 }
   0x7   : > { %p158_p3 = pnand %p867_p1, %p157_p2  ;;  %p27_p4 = scmp.ge.s32.totalorder %s1271_s18, 2 }
   0x8   : > { %p189_p5 = scmp.lt.s32.totalorder (!%p158_p3), %s958_s13, 1  ;;  %p191_p6 = scmp.lt.s32.totalorder (!%p158_p3), %s954_s12, 1 }
   0x9   : > { %s1273_s18 = smov (%p27_p4, %s1271_s18), 0  ;;  %161 = sbr.rel (%p158_p3) target bundleno = 100 (0x64), region = 32 }
   0xe   : > { %v217_v0 = vld [vmem:[%s1262_s2] sm:$0xff]  ;;  %s1275_s13 = smov (!%p189_p5, %s958_s13), 1  ;;  %s1277_s12 = smov (!%p191_p6, %s954_s12), 1  ;;  %vm755_vm0 = vcmask 1043456  }
   0xf   : > { %v235_v1 = vld [vmem:[%s1261_s1] ss:$8 sm:$0xf]  ;;  %v219_v2 = vperm.slane %v217_v0, 0  ;;  %s891_s25 = smul.u32 20, %s1275_s13  ;;  %v220_v4 = vperm.slane %v217_v0, 1 }
  0x10   : > { %v236_v3 = vld [vmem:[%s1261_s1] ss:$8 sm:$0xf0]  ;;  %v221_v5 = vperm.slane %v217_v0, 2  ;;  %v222_v6 = vperm.slane %v217_v0, 3  ;;  %s890_s26 = smul.u32 10, %s1277_s12 }
  0x11   : > { %v237_v7 = vor.u32 %v236_v3, %v235_v1  ;;  %v223_v8 = vperm.slane %v217_v0, 4  ;;  %v224_v9 = vperm.slane %v217_v0, 5  ;;  %v225_v10 = vperm.slane %v217_v0, 6  ;;  %v872_v12 = vld [vmem:[%s1261_s1 + $0x3] ss:$8 sm:$0xf] }
  0x12   : > { %v226_v11 = vperm.slane %v217_v0, 7  ;;  %v873_v13 = vld [vmem:[%s1261_s1 + $0x3] ss:$8 sm:$0xf0]  ;;  %s195_s4 = sadd.s32 %s891_s25, %s890_s26  ;;  %s870_s25 = sshll.u32 %s1275_s13, 4 }
  0x13   : > { %v239_v14 = vperm.slane %v237_v7, 0  ;;  %v240_v15 = vperm.slane %v237_v7, 1  ;;  %v241_v16 = vperm.slane %v237_v7, 2  ;;  %v242_v17 = vperm.slane %v237_v7, 3  ;;  %s868_s5 = sshll.u32 %s195_s4, 3 }
  0x14   : > { %v243_v18 = vperm.slane %v237_v7, 4  ;;  %v244_v19 = vperm.slane %v237_v7, 5  ;;  %v245_v20 = vperm.slane %v237_v7, 6  ;;  %v246_v21 = vperm.slane %v237_v7, 7  ;;  %s1046_s8 = scalar_lea.vmem %s1260_s0, %s868_s5 }
  0x15   : > { %v874_v22 = vld [vmem:[%s1261_s1 + $0x6] ss:$8 sm:$0xf]  ;;  %v1055_v24 = vld [vmem:[%s1046_s8] sm:$0x3f]  ;;  %v274_v33 = vor.u32 %v873_v13, %v872_v12 }
  0x16   : > { %v875_v23 = vld [vmem:[%s1261_s1 + $0x6] ss:$8 sm:$0xf0]  ;;  %v1058_v25 = vld [vmem:[%s1046_s8 + $0x8] sm:$0x3f]  ;;  %v255_v30 = vmul.f32 %v239_v14, %v1055_v24 }
  0x17   : > { %v1061_v26 = vld [vmem:[%s1046_s8 + $0x10] sm:$0x3f]  ;;  %v1064_v27 = vld [vmem:[%s1046_s8 + $0x18] sm:$0x3f]  ;;  %v1067_v28 = vld [vmem:[%s1046_s8 + $0x20] sm:$0x3f]  ;;  %v256_v31 = vmul.f32 %v240_v15, %v1058_v25  ;;  %v335_v39 = vor.u32 %v875_v23, %v874_v22 }
  0x18   : > { %v1070_v29 = vld [vmem:[%s1046_s8 + $0x28] sm:$0x3f]  ;;  %v257_v32 = vmul.f32 %v241_v16, %v1061_v26  ;;  %v1076_v34 = vld [vmem:[%s1046_s8 + $0x30] sm:$0x3f]  ;;  %v1079_v35 = vld [vmem:[%s1046_s8 + $0x38] sm:$0x3f]  ;;  %v258_v36 = vmul.f32 %v242_v17, %v1064_v27  ;;  %v259_v37 = vmul.f32 %v243_v18, %v1067_v28  ;;  %v263_v42 = vadd.f32 %v255_v30, %v219_v2 }
  0x19   : > { %v260_v38 = vmul.f32 %v244_v19, %v1070_v29  ;;  %v261_v40 = vmul.f32 %v245_v20, %v1076_v34  ;;  %v262_v41 = vmul.f32 %v246_v21, %v1079_v35  ;;  %v264_v43 = vadd.f32 %v256_v31, %v220_v4 }
  0x1a   : > { %v265_v44 = vadd.f32 %v257_v32, %v221_v5  ;;  %v266_v45 = vadd.f32 %v258_v36, %v222_v6  ;;  %v267_v46 = vadd.f32 %v259_v37, %v223_v8  ;;  %v276_v50 = vperm.slane %v274_v33, 0 }
  0x1b   : > { %v268_v47 = vadd.f32 %v260_v38, %v224_v9  ;;  %v269_v48 = vadd.f32 %v261_v40, %v225_v10  ;;  %v270_v49 = vadd.f32 %v262_v41, %v226_v11  ;;  %v277_v51 = vperm.slane %v274_v33, 1 }
  0x1c   : > { %v278_v52 = vperm.slane %v274_v33, 2  ;;  %v279_v53 = vperm.slane %v274_v33, 3  ;;  %v280_v54 = vperm.slane %v274_v33, 4  ;;  %v281_v55 = vperm.slane %v274_v33, 5 }
  0x1d   : > { %v282_v56 = vperm.slane %v274_v33, 6  ;;  %v283_v57 = vperm.slane %v274_v33, 7  ;;  %v292_v58 = vmul.f32 %v276_v50, %v1055_v24  ;;  %v293_v59 = vmul.f32 %v277_v51, %v1058_v25 }
  0x1e   : > { %v294_v60 = vmul.f32 %v278_v52, %v1061_v26  ;;  %v295_v61 = vmul.f32 %v279_v53, %v1064_v27  ;;  %v296_v62 = vmul.f32 %v280_v54, %v1067_v28  ;;  %v297_v63 = vmul.f32 %v281_v55, %v1070_v29 }
  0x1f   : > { %v298_v0 = vmul.f32 %v282_v56, %v1076_v34  ;;  %v299_v1 = vmul.f32 %v283_v57, %v1079_v35  ;;  %v308_v2 = vrot.slane %v292_v58, 1  ;;  %v309_v3 = vrot.slane %v293_v59, 1  ;;  %v876_v56 = vld [vmem:[%s1261_s1 + $0x1] ss:$8 sm:$0xf] }
  0x20   : > { %v310_v4 = vrot.slane %v294_v60, 1  ;;  %v311_v5 = vrot.slane %v295_v61, 1  ;;  %v312_v6 = vrot.slane %v296_v62, 1  ;;  %v313_v7 = vrot.slane %v297_v63, 1 }
  0x21   : > { %v314_v8 = vrot.slane %v298_v0, 1  ;;  %v315_v9 = vrot.slane %v299_v1, 1  ;;  %v324_v10 = vadd.f32 %v308_v2, %v263_v42  ;;  %v325_v11 = vadd.f32 %v309_v3, %v264_v43  ;;  %v877_v57 = vld [vmem:[%s1261_s1 + $0x1] ss:$8 sm:$0xf0] }
  0x22   : > { %v326_v12 = vadd.f32 %v310_v4, %v265_v44  ;;  %v327_v13 = vadd.f32 %v311_v5, %v266_v45  ;;  %v328_v14 = vadd.f32 %v312_v6, %v267_v46  ;;  %v329_v15 = vadd.f32 %v313_v7, %v268_v47  ;;  %v1103_v47 = vld [vmem:[%s1046_s8 + $0x40] sm:$0x3f]  ;;  %v880_v0 = vld [vmem:[%s1261_s1 + $0x7] ss:$8 sm:$0xf] }
  0x23   : > { %v330_v16 = vadd.f32 %v314_v8, %v269_v48  ;;  %v331_v17 = vadd.f32 %v315_v9, %v270_v49  ;;  %v337_v18 = vperm.slane %v335_v39, 0  ;;  %v338_v19 = vperm.slane %v335_v39, 1  ;;  %v878_v58 = vld [vmem:[%s1261_s1 + $0x4] ss:$8 sm:$0xf] }
  0x24   : > { %v339_v20 = vperm.slane %v335_v39, 2  ;;  %v340_v21 = vperm.slane %v335_v39, 3  ;;  %v341_v22 = vperm.slane %v335_v39, 4  ;;  %v342_v23 = vperm.slane %v335_v39, 5 }
  0x25   : > { %v343_v30 = vperm.slane %v335_v39, 6  ;;  %v344_v31 = vperm.slane %v335_v39, 7  ;;  %v353_v32 = vmul.f32 %v337_v18, %v1055_v24  ;;  %v354_v33 = vmul.f32 %v338_v19, %v1058_v25  ;;  %v879_v59 = vld [vmem:[%s1261_s1 + $0x4] ss:$8 sm:$0xf0] }
  0x26   : > { %v355_v36 = vmul.f32 %v339_v20, %v1061_v26  ;;  %v356_v37 = vmul.f32 %v340_v21, %v1064_v27  ;;  %v357_v38 = vmul.f32 %v341_v22, %v1067_v28  ;;  %v358_v40 = vmul.f32 %v342_v23, %v1070_v29  ;;  %v881_v1 = vld [vmem:[%s1261_s1 + $0x7] ss:$8 sm:$0xf0]  ;;  %v882_v2 = vld [vmem:[%s1261_s1 + $0x2] ss:$8 sm:$0xf] }
  0x27   : > { %v359_v41 = vmul.f32 %v343_v30, %v1076_v34  ;;  %v360_v42 = vmul.f32 %v344_v31, %v1079_v35  ;;  %v369_v43 = vrot.slane %v353_v32, 2  ;;  %v370_v44 = vrot.slane %v354_v33, 2  ;;  %v883_v3 = vld [vmem:[%s1261_s1 + $0x2] ss:$8 sm:$0xf0] }
  0x28   : > { %v371_v45 = vrot.slane %v355_v36, 2  ;;  %v372_v39 = vrot.slane %v356_v37, 2  ;;  %v373_v46 = vrot.slane %v357_v38, 2  ;;  %v374_v24 = vrot.slane %v358_v40, 2 }
  0x29   : > { %v375_v48 = vrot.slane %v359_v41, 2  ;;  %v376_v49 = vrot.slane %v360_v42, 2  ;;  %v385_v50 = vadd.f32 %v369_v43, %v324_v10  ;;  %v386_v51 = vadd.f32 %v370_v44, %v325_v11  ;;  %v884_v4 = vld [vmem:[%s1261_s1 + $0x5] ss:$8 sm:$0xf] }
  0x2a   : > { %v387_v52 = vadd.f32 %v371_v45, %v326_v12  ;;  %v388_v53 = vadd.f32 %v372_v39, %v327_v13  ;;  %v389_v54 = vadd.f32 %v373_v46, %v328_v14  ;;  %v390_v55 = vadd.f32 %v374_v24, %v329_v15  ;;  %v885_v5 = vld [vmem:[%s1261_s1 + $0x5] ss:$8 sm:$0xf0]  ;;  %v886_v14 = vld [vmem:[%s1261_s1 + $0x40] ss:$8 sm:$0xf] }
  0x2b   : > { %v391_v60 = vadd.f32 %v375_v48, %v330_v16  ;;  %v392_v61 = vadd.f32 %v376_v49, %v331_v17  ;;  %v401_v62 = vrot.slane %v1058_v25, 1  ;;  %v402_v63 = vrot.slane %v1061_v26, 1  ;;  %v887_v19 = vld [vmem:[%s1261_s1 + $0x40] ss:$8 sm:$0xf0] }
  0x2c   : > { %v403_v6 = vrot.slane %v1064_v27, 1  ;;  %v404_v7 = vrot.slane %v1067_v28, 1  ;;  %v405_v8 = vrot.slane %v1070_v29, 1  ;;  %v406_v9 = vrot.slane %v1076_v34, 1 }
  0x2d   : > { %v407_v10 = vrot.slane %v1079_v35, 1  ;;  %v408_v11 = vrot.slane %v1103_v47, 1  ;;  %v417_v12 = vadd.f32 %v401_v62, %v385_v50  ;;  %v418_v13 = vadd.f32 %v402_v63, %v386_v51 }
  0x2e   : > { %v419_v15 = vadd.f32 %v403_v6, %v387_v52  ;;  %v420_v16 = vadd.f32 %v404_v7, %v388_v53  ;;  %v421_v17 = vadd.f32 %v405_v8, %v389_v54  ;;  %v422_v18 = vadd.f32 %v406_v9, %v390_v55 }
  0x2f   : > { %v423_v20 = vadd.f32 %v407_v10, %v391_v60  ;;  %v424_v21 = vadd.f32 %v408_v11, %v392_v61  ;;  %v428_v22 = vor.u32 %v877_v57, %v876_v56  ;;  %v465_v23 = vor.u32 %v879_v59, %v878_v58 }
  0x30   : > { %v1149_v30 = vor.u32 %v881_v1, %v880_v0  ;;  %v1151_v31 = vor.u32 %v883_v3, %v882_v2  ;;  %v1153_v32 = vor.u32 %v885_v5, %v884_v4  ;;  %v1155_v33 = vor.u32 %v887_v19, %v886_v14 }
  0x31   : > { %v430_v36 = vperm.slane %v428_v22, 0  ;;  %v431_v37 = vperm.slane %v428_v22, 1  ;;  %v432_v38 = vperm.slane %v428_v22, 2  ;;  %v433_v40 = vperm.slane %v428_v22, 3 }
  0x32   : > { %v434_v41 = vperm.slane %v428_v22, 4  ;;  %v435_v42 = vperm.slane %v428_v22, 5  ;;  %v436_v43 = vperm.slane %v428_v22, 6  ;;  %v437_v44 = vperm.slane %v428_v22, 7 }
  0x33   : > { %v446_v45 = vmul.f32 %v430_v36, %v1058_v25  ;;  %v447_v39 = vmul.f32 %v431_v37, %v1061_v26  ;;  %v448_v46 = vmul.f32 %v432_v38, %v1064_v27  ;;  %v449_v24 = vmul.f32 %v433_v40, %v1067_v28 }
  0x34   : > { %v450_v48 = vmul.f32 %v434_v41, %v1070_v29  ;;  %v451_v49 = vmul.f32 %v435_v42, %v1076_v34  ;;  %v452_v50 = vmul.f32 %v436_v43, %v1079_v35  ;;  %v453_v51 = vmul.f32 %v437_v44, %v1103_v47 }
  0x35   : > { %v454_v52 = vadd.f32 %v446_v45, %v417_v12  ;;  %v455_v53 = vadd.f32 %v447_v39, %v418_v13  ;;  %v456_v54 = vadd.f32 %v448_v46, %v419_v15  ;;  %v457_v55 = vadd.f32 %v449_v24, %v420_v16 }
  0x36   : > { %v458_v56 = vadd.f32 %v450_v48, %v421_v17  ;;  %v459_v57 = vadd.f32 %v451_v49, %v422_v18  ;;  %v460_v58 = vadd.f32 %v452_v50, %v423_v20  ;;  %v461_v59 = vadd.f32 %v453_v51, %v424_v21 }
  0x37   : > { %v467_v60 = vperm.slane %v465_v23, 0  ;;  %v468_v61 = vperm.slane %v465_v23, 1  ;;  %v469_v62 = vperm.slane %v465_v23, 2  ;;  %v470_v63 = vperm.slane %v465_v23, 3 }
  0x38   : > { %v471_v0 = vperm.slane %v465_v23, 4  ;;  %v472_v1 = vperm.slane %v465_v23, 5  ;;  %v473_v2 = vperm.slane %v465_v23, 6  ;;  %v474_v3 = vperm.slane %v465_v23, 7 }
  0x39   : > { %v483_v4 = vmul.f32 %v467_v60, %v1058_v25  ;;  %v484_v5 = vmul.f32 %v468_v61, %v1061_v26  ;;  %v485_v6 = vmul.f32 %v469_v62, %v1064_v27  ;;  %v486_v7 = vmul.f32 %v470_v63, %v1067_v28 }
  0x3a   : > { %v487_v8 = vmul.f32 %v471_v0, %v1070_v29  ;;  %v488_v9 = vmul.f32 %v472_v1, %v1076_v34  ;;  %v489_v10 = vmul.f32 %v473_v2, %v1079_v35  ;;  %v490_v11 = vmul.f32 %v474_v3, %v1103_v47 }
  0x3b   : > { %v499_v12 = vrot.slane %v483_v4, 1  ;;  %v500_v13 = vrot.slane %v484_v5, 1  ;;  %v501_v14 = vrot.slane %v485_v6, 1  ;;  %v502_v15 = vrot.slane %v486_v7, 1  ;;  %v1190_v6 = vld [vmem:[%s1046_s8 + $0x48] sm:$0x3f] }
  0x3c   : > { %v503_v16 = vrot.slane %v487_v8, 1  ;;  %v504_v17 = vrot.slane %v488_v9, 1  ;;  %v505_v18 = vrot.slane %v489_v10, 1  ;;  %v506_v19 = vrot.slane %v490_v11, 1  ;;  %s869_s8 = sshll.u32 %s1277_s12, 3 }
  0x3d   : > { %v515_v20 = vadd.f32 %v499_v12, %v454_v52  ;;  %v516_v21 = vadd.f32 %v500_v13, %v455_v53  ;;  %v517_v22 = vadd.f32 %v501_v14, %v456_v54  ;;  %v518_v23 = vadd.f32 %v502_v15, %v457_v55  ;;  %s204_s12 = sadd.s32 %s870_s25, %s869_s8 }
  0x3e   : > { %v519_v36 = vadd.f32 %v503_v16, %v458_v56  ;;  %v520_v37 = vadd.f32 %v504_v17, %v459_v57  ;;  %v521_v38 = vadd.f32 %v505_v18, %v460_v58  ;;  %v522_v40 = vadd.f32 %v506_v19, %v461_v59  ;;  %s871_s13 = sshll.u32 %s204_s12, 2 }
  0x3f   : > { %v528_v41 = vperm.slane %v1149_v30, 0  ;;  %v529_v42 = vperm.slane %v1149_v30, 1  ;;  %v530_v43 = vperm.slane %v1149_v30, 2  ;;  %v531_v44 = vperm.slane %v1149_v30, 3  ;;  %s206_s28 = scalar_lea.vmem %s1263_s3, %s871_s13 }
  0x40   : > { %v532_v45 = vperm.slane %v1149_v30, 4  ;;  %v533_v39 = vperm.slane %v1149_v30, 5  ;;  %v534_v46 = vperm.slane %v1149_v30, 6  ;;  %v535_v24 = vperm.slane %v1149_v30, 7 }
  0x41   : > { %v544_v48 = vmul.f32 %v528_v41, %v1058_v25  ;;  %v545_v49 = vmul.f32 %v529_v42, %v1061_v26  ;;  %v546_v50 = vmul.f32 %v530_v43, %v1064_v27  ;;  %v547_v51 = vmul.f32 %v531_v44, %v1067_v28 }
  0x42   : > { %v548_v52 = vmul.f32 %v532_v45, %v1070_v29  ;;  %v549_v53 = vmul.f32 %v533_v39, %v1076_v34  ;;  %v550_v54 = vmul.f32 %v534_v46, %v1079_v35  ;;  %v551_v55 = vmul.f32 %v535_v24, %v1103_v47 }
  0x43   : > { %v560_v56 = vrot.slane %v544_v48, 2  ;;  %v561_v57 = vrot.slane %v545_v49, 2  ;;  %v562_v30 = vrot.slane %v546_v50, 2  ;;  %v563_v58 = vrot.slane %v547_v51, 2 }
  0x44   : > { %v564_v25 = vrot.slane %v548_v52, 2  ;;  %v565_v59 = vrot.slane %v549_v53, 2  ;;  %v566_v60 = vrot.slane %v550_v54, 2  ;;  %v567_v61 = vrot.slane %v551_v55, 2 }
  0x45   : > { %v576_v62 = vadd.f32 %v560_v56, %v515_v20  ;;  %v577_v63 = vadd.f32 %v561_v57, %v516_v21  ;;  %v578_v0 = vadd.f32 %v562_v30, %v517_v22  ;;  %v579_v1 = vadd.f32 %v563_v58, %v518_v23 }
  0x46   : > { %v580_v2 = vadd.f32 %v564_v25, %v519_v36  ;;  %v581_v3 = vadd.f32 %v565_v59, %v520_v37  ;;  %v582_v4 = vadd.f32 %v566_v60, %v521_v38  ;;  %v583_v5 = vadd.f32 %v567_v61, %v522_v40 }
  0x47   : > { %v589_v7 = vperm.slane %v1151_v31, 0  ;;  %v590_v8 = vperm.slane %v1151_v31, 1  ;;  %v591_v9 = vperm.slane %v1151_v31, 2  ;;  %v592_v10 = vperm.slane %v1151_v31, 3 }
  0x48   : > { %v593_v11 = vperm.slane %v1151_v31, 4  ;;  %v594_v12 = vperm.slane %v1151_v31, 5  ;;  %v595_v13 = vperm.slane %v1151_v31, 6  ;;  %v596_v14 = vperm.slane %v1151_v31, 7 }
  0x49   : > { %v605_v15 = vmul.f32 %v589_v7, %v1061_v26  ;;  %v606_v16 = vmul.f32 %v590_v8, %v1064_v27  ;;  %v607_v17 = vmul.f32 %v591_v9, %v1067_v28  ;;  %v608_v18 = vmul.f32 %v592_v10, %v1070_v29 }
  0x4a   : > { %v609_v19 = vmul.f32 %v593_v11, %v1076_v34  ;;  %v610_v20 = vmul.f32 %v594_v12, %v1079_v35  ;;  %v611_v21 = vmul.f32 %v595_v13, %v1103_v47  ;;  %v612_v22 = vmul.f32 %v596_v14, %v1190_v6 }
  0x4b   : > { %v613_v23 = vadd.f32 %v605_v15, %v576_v62  ;;  %v614_v36 = vadd.f32 %v606_v16, %v577_v63  ;;  %v615_v37 = vadd.f32 %v607_v17, %v578_v0  ;;  %v616_v31 = vadd.f32 %v608_v18, %v579_v1 }
  0x4c   : > { %v617_v38 = vadd.f32 %v609_v19, %v580_v2  ;;  %v618_v40 = vadd.f32 %v610_v20, %v581_v3  ;;  %v619_v41 = vadd.f32 %v611_v21, %v582_v4  ;;  %v620_v42 = vadd.f32 %v612_v22, %v583_v5 }
  0x4d   : > { %v626_v43 = vperm.slane %v1153_v32, 0  ;;  %v627_v44 = vperm.slane %v1153_v32, 1  ;;  %v628_v45 = vperm.slane %v1153_v32, 2  ;;  %v629_v39 = vperm.slane %v1153_v32, 3 }
  0x4e   : > { %v630_v46 = vperm.slane %v1153_v32, 4  ;;  %v631_v24 = vperm.slane %v1153_v32, 5  ;;  %v632_v48 = vperm.slane %v1153_v32, 6  ;;  %v633_v49 = vperm.slane %v1153_v32, 7 }
  0x4f   : > { %v642_v50 = vmul.f32 %v626_v43, %v1061_v26  ;;  %v643_v51 = vmul.f32 %v627_v44, %v1064_v27  ;;  %v644_v52 = vmul.f32 %v628_v45, %v1067_v28  ;;  %v645_v53 = vmul.f32 %v629_v39, %v1070_v29 }
  0x50   : > { %v646_v54 = vmul.f32 %v630_v46, %v1076_v34  ;;  %v647_v55 = vmul.f32 %v631_v24, %v1079_v35  ;;  %v648_v56 = vmul.f32 %v632_v48, %v1103_v47  ;;  %v649_v57 = vmul.f32 %v633_v49, %v1190_v6 }
  0x51   : > { %v658_v30 = vrot.slane %v642_v50, 1  ;;  %v659_v32 = vrot.slane %v643_v51, 1  ;;  %v660_v58 = vrot.slane %v644_v52, 1  ;;  %v661_v25 = vrot.slane %v645_v53, 1 }
  0x52   : > { %v662_v59 = vrot.slane %v646_v54, 1  ;;  %v663_v60 = vrot.slane %v647_v55, 1  ;;  %v664_v61 = vrot.slane %v648_v56, 1  ;;  %v665_v62 = vrot.slane %v649_v57, 1 }
  0x53   : > { %v674_v63 = vadd.f32 %v658_v30, %v613_v23  ;;  %v675_v0 = vadd.f32 %v659_v32, %v614_v36  ;;  %v676_v1 = vadd.f32 %v660_v58, %v615_v37  ;;  %v677_v2 = vadd.f32 %v661_v25, %v616_v31 }
  0x54   : > { %v678_v3 = vadd.f32 %v662_v59, %v617_v38  ;;  %v679_v4 = vadd.f32 %v663_v60, %v618_v40  ;;  %v680_v5 = vadd.f32 %v664_v61, %v619_v41  ;;  %v681_v7 = vadd.f32 %v665_v62, %v620_v42 }
  0x55   : > { %v687_v8 = vperm.slane %v1155_v33, 0  ;;  %v688_v9 = vperm.slane %v1155_v33, 1  ;;  %v689_v10 = vperm.slane %v1155_v33, 2  ;;  %v690_v11 = vperm.slane %v1155_v33, 3 }
  0x56   : > { %v691_v12 = vperm.slane %v1155_v33, 4  ;;  %v692_v13 = vperm.slane %v1155_v33, 5  ;;  %v693_v14 = vperm.slane %v1155_v33, 6  ;;  %v694_v15 = vperm.slane %v1155_v33, 7 }
  0x57   : > { %v703_v16 = vmul.f32 %v687_v8, %v1061_v26  ;;  %v704_v17 = vmul.f32 %v688_v9, %v1064_v27  ;;  %v705_v18 = vmul.f32 %v689_v10, %v1067_v28  ;;  %v706_v19 = vmul.f32 %v690_v11, %v1070_v29 }
  0x58   : > { %v707_v20 = vmul.f32 %v691_v12, %v1076_v34  ;;  %v708_v21 = vmul.f32 %v692_v13, %v1079_v35  ;;  %v709_v22 = vmul.f32 %v693_v14, %v1103_v47  ;;  %v710_v23 = vmul.f32 %v694_v15, %v1190_v6 }
  0x59   : > { %v719_v36 = vrot.slane %v703_v16, 2  ;;  %v720_v37 = vrot.slane %v704_v17, 2  ;;  %v721_v33 = vrot.slane %v705_v18, 2  ;;  %v722_v31 = vrot.slane %v706_v19, 2 }
  0x5a   : > { %v723_v26 = vrot.slane %v707_v20, 2  ;;  %v724_v38 = vrot.slane %v708_v21, 2  ;;  %v725_v27 = vrot.slane %v709_v22, 2  ;;  %v726_v40 = vrot.slane %v710_v23, 2 }
  0x5b   : > { %v735_v28 = vadd.f32 %v719_v36, %v674_v63  ;;  %v736_v41 = vadd.f32 %v720_v37, %v675_v0  ;;  %v737_v29 = vadd.f32 %v721_v33, %v676_v1  ;;  %v738_v42 = vadd.f32 %v722_v31, %v677_v2 }
  0x5c   : > { %v739_v34 = vadd.f32 %v723_v26, %v678_v3  ;;  %v740_v43 = vadd.f32 %v724_v38, %v679_v4  ;;  %v741_v35 = vadd.f32 %v725_v27, %v680_v5  ;;  %v742_v44 = vadd.f32 %v726_v40, %v681_v7 }
  0x5d   : > { %v751_v47 = vrot.slane %v736_v41, 4  ;;  %v752_v6 = vrot.slane %v738_v42, 4 }
  0x5e   : > { %v753_v45 = vrot.slane %v740_v43, 4  ;;  %v754_v39 = vrot.slane %v742_v44, 4 }
  0x5f   : > { %v756_v46 = vsel %vm755_vm0, %v735_v28, %v751_v47  ;;  %v757_v24 = vsel %vm755_vm0, %v737_v29, %v752_v6 }
  0x60   : > { %v758_v48 = vsel %vm755_vm0, %v739_v34, %v753_v45  ;;  %v759_v49 = vsel %vm755_vm0, %v741_v35, %v754_v39  ;;  %764 = vst [vmem:[%s206_s28] sm:$0xff] %v756_v46 }
  0x61   : > { %765 = vst [vmem:[%s206_s28 + $0x8] sm:$0xff] %v757_v24 }
  0x62   : > { %766 = vst [vmem:[%s206_s28 + $0x10] sm:$0xff] %v758_v48 }
  0x63   : > { %767 = vst [vmem:[%s206_s28 + $0x18] sm:$0xff] %v759_v49 }
  0x64 PF: > { %s13_s16 = sadd.s32 1, %s970_s16   ;;  %s1264_s12 = smov %s962_s14 }
  0x65   : > { %p10_p7 = scmp.ge.s32.totalorder %s13_s16, 6   ;;  %s1265_s13 = smov %s966_s15 }
  0x66   : > { %s1266_s14 = smov %s1269_s17  ;;  %s1267_s15 = smov %s1273_s18 }
  0x67   :  { %12 = sbr.rel (!%p10_p7) target bundleno = 3 (0x3), region = 70 }

</bundles_post_ra>
